<compile_context>
chip_gen: v7x
topology: tpu7x:2x2x1
jax: 0.10.0
libtpu: 0.0.40
codegen_flags: <defaults>
</compile_context>

<pallas_src>
import functools

import numpy as np

import jax
import jax.numpy as jnp
from jax.experimental import pallas as pl
from jax.experimental.pallas import tpu as pltpu

_K = 4          # kernel size of every conv / deconv in the module
_BN_EPS = 1e-5


# ----------------------------------------------------------------------------
# Host-side construction of the per-layer (S, M, bias) matrices
# ----------------------------------------------------------------------------
def _bn_fold_np(b, bn):
    """Return (scale, bias_eff) with BN folded (inference mode)."""
    if bn is None:
        return np.ones_like(b), b
    gamma, beta, mean, var = bn
    s = gamma / np.sqrt(var + _BN_EPS)
    return s, (b - mean) * s + beta


def _conv_mats(w, scale, Hin, Win):
    """Conv2d(Cin->Cout, K=4, stride=2, pad=1).  w: (Cout,Cin,4,4) numpy f32."""
    Cout, Cin, K, _ = w.shape
    Hout, Wout = Hin // 2, Win // 2
    ws = w * scale[:, None, None, None]                      # fold BN scale
    S = np.zeros((K, Hout, Hin), np.float32)
    for ki in range(K):
        for ho in range(Hout):
            hi = 2 * ho + ki - 1
            if 0 <= hi < Hin:
                S[ki, ho, hi] = 1.0
    M = np.zeros((K, Win * Cin, Wout * Cout), np.float32)
    for ki in range(K):
        for wo in range(Wout):
            for kj in range(K):
                wi = 2 * wo + kj - 1
                if 0 <= wi < Win:
                    M[ki, wi * Cin:(wi + 1) * Cin,
                          wo * Cout:(wo + 1) * Cout] = ws[:, :, ki, kj].T
    return S, M, Hout, Wout, Cout


def _deconv_mats(w, scale, Hin, Win):
    """ConvTranspose2d(Cin->Cout, K=4, stride=2, pad=1).  w: (Cin,Cout,4,4)."""
    Cin, Cout, K, _ = w.shape
    Hout, Wout = Hin * 2, Win * 2
    ws = w * scale[None, :, None, None]                      # fold BN scale
    S = np.zeros((K, Hout, Hin), np.float32)
    for ki in range(K):
        for hi in range(Hin):
            ho = 2 * hi + ki - 1                             # ki == ho + 1 - 2*hi
            if 0 <= ho < Hout:
                S[ki, ho, hi] = 1.0
    M = np.zeros((K, Win * Cin, Wout * Cout), np.float32)
    for ki in range(K):
        for wi in range(Win):
            for kj in range(K):
                wo = 2 * wi + kj - 1                         # kj == wo + 1 - 2*wi
                if 0 <= wo < Wout:
                    M[ki, wi * Cin:(wi + 1) * Cin,
                          wo * Cout:(wo + 1) * Cout] = ws[:, :, ki, kj]
    return S, M, Hout, Wout, Cout


def build_kernel_params(params, H=32, W=32):
    """Turn PyTorch-style params into the fused-kernel operand list."""
    arrays, acts = [], []
    Hc, Wc, Co = H, W, None
    n_dec = len(params["dec"])

    def _prep(layer, is_deconv, act, Hc, Wc):
        w = np.asarray(layer["w"], np.float32)
        b = np.asarray(layer["b"], np.float32)
        bn = layer["bn"]
        if bn is not None:
            bn = tuple(np.asarray(t, np.float32) for t in bn)
        s, b_eff = _bn_fold_np(b, bn)
        if is_deconv:
            S, M, Hc, Wc, Co = _deconv_mats(w, s, Hc, Wc)
        else:
            S, M, Hc, Wc, Co = _conv_mats(w, s, Hc, Wc)
        b_row = np.tile(b_eff, Wc).reshape(1, Wc * Co)
        arrays.extend([jnp.asarray(S, jnp.bfloat16),
                       jnp.asarray(M, jnp.bfloat16),
                       jnp.asarray(b_row, jnp.float32)])
        acts.append(act)
        return Hc, Wc, Co

    for layer in params["enc"]:
        Hc, Wc, Co = _prep(layer, False, "relu", Hc, Wc)
    for li, layer in enumerate(params["dec"]):
        Hc, Wc, Co = _prep(layer, True,
                           "tanh" if li == n_dec - 1 else "relu", Hc, Wc)
    return arrays, tuple(acts), (Hc, Wc, Co)


# ----------------------------------------------------------------------------
# The single fused Pallas kernel: whole network for one image, all in VMEM
# ----------------------------------------------------------------------------
def _fused_autoencoder_kernel(*refs, acts):
    x_ref = refs[0]
    o_ref = refs[-1]
    prm = refs[1:-1]                       # 3 refs per layer: S, M, bias-row

    X = x_ref[0].astype(jnp.bfloat16)      # (H, W*C) for this image
    Y = None
    for li, act in enumerate(acts):
        S_ref = prm[3 * li]                # (4, Hout, Hin)  bf16
        M_ref = prm[3 * li + 1]            # (4, Win*Cin, Wout*Cout) bf16
        b_ref = prm[3 * li + 2]            # (1, Wout*Cout)  f32
        Hout = S_ref.shape[1]
        Kout = M_ref.shape[2]

        acc = jnp.zeros((Hout, Kout), jnp.float32)
        for ki in range(S_ref.shape[0]):
            # H-dimension taps via a 0/1 selection matrix (exact in bf16) ...
            rows = jnp.dot(S_ref[ki], X, preferred_element_type=jnp.float32)
            # ... W / channel mixing via the banded weight matrix on the MXU.
            acc = acc + jnp.dot(rows.astype(jnp.bfloat16), M_ref[ki],
                                preferred_element_type=jnp.float32)
        acc = acc + b_ref[...]             # folded conv-bias + BN (f32, VPU)
        if act == "relu":
            Y = jnp.maximum(acc, 0.0)
        else:
            Y = jnp.tanh(acc)              # EUP
        X = Y.astype(jnp.bfloat16)         # feed next layer in bf16

    o_ref[0] = Y.astype(o_ref.dtype)


def autoencoder_forward(x_nchw, arrays, acts, out_hwc):
    """NCHW in, NCHW out — matches the PyTorch module."""
    N, C, H, W = x_nchw.shape
    x2d = jnp.transpose(x_nchw, (0, 2, 3, 1)).reshape(N, H, W * C)
    Ho, Wo, Co = out_hwc

    in_specs = [pl.BlockSpec((1, H, W * C), lambda i: (i, 0, 0))]
    for a in arrays:
        if a.ndim == 3:
            in_specs.append(pl.BlockSpec(a.shape, lambda i: (0, 0, 0)))
        else:
            in_specs.append(pl.BlockSpec(a.shape, lambda i: (0, 0)))

    out = pl.pallas_call(
        functools.partial(_fused_autoencoder_kernel, acts=acts),
        out_shape=jax.ShapeDtypeStruct((N, Ho, Wo * Co), jnp.float32),
        grid=(N,),
        in_specs=in_specs,
        out_specs=pl.BlockSpec((1, Ho, Wo * Co), lambda i: (i, 0, 0)),
        compiler_params=pltpu.CompilerParams(
            dimension_semantics=("parallel",),
            vmem_limit_bytes=32 * 1024 * 1024),
    )(x2d, *arrays)

    return jnp.transpose(out.reshape(N, Ho, Wo, Co), (0, 3, 1, 2))


# ----------------------------------------------------------------------------
# Deterministic parameter construction (matches module shapes)
# ----------------------------------------------------------------------------
def _make_bn(key, c):
    k0, k1, k2, k3 = jax.random.split(key, 4)
    gamma = jax.random.uniform(k0, (c,), jnp.float32, 0.8, 1.2)
    beta = jax.random.normal(k1, (c,), jnp.float32) * 0.05
    mean = jax.random.normal(k2, (c,), jnp.float32) * 0.05
    var = jax.random.uniform(k3, (c,), jnp.float32, 0.5, 1.5)
    return (gamma, beta, mean, var)


def init_params(key):
    enc_io = [(3, 16), (16, 32), (32, 64), (64, 128)]
    dec_io = [(128, 64), (64, 32), (32, 16), (16, 3)]
    params = {"enc": [], "dec": []}
    keys = jax.random.split(key, 16)
    i = 0
    for cin, cout in enc_io:
        kw, kb, kbn = keys[i], keys[i + 1], jax.random.fold_in(keys[i], 7)
        i += 2
        w = jax.random.normal(kw, (cout, cin, _K, _K), jnp.float32) * 0.05
        b = jax.random.normal(kb, (cout,), jnp.float32) * 0.05
        params["enc"].append({"w": w, "b": b, "bn": _make_bn(kbn, cout)})
    for li, (cin, cout) in enumerate(dec_io):
        kw, kb, kbn = keys[i], keys[i + 1], jax.random.fold_in(keys[i], 11)
        i += 2
        w = jax.random.normal(kw, (cin, cout, _K, _K), jnp.float32) * 0.05
        b = jax.random.normal(kb, (cout,), jnp.float32) * 0.05
        bn = _make_bn(kbn, cout) if li < 3 else None   # last layer: tanh, no BN
        params["dec"].append({"w": w, "b": b, "bn": bn})
    return params


# ----------------------------------------------------------------------------
# Plain-JAX (XLA) reference of the same network, for in-script verification
# ----------------------------------------------------------------------------
def _ref_im2col(x, K, stride, pad):
    N, H, W, C = x.shape
    xp = jnp.pad(x, ((0, 0), (pad, pad), (pad, pad), (0, 0)))
    Ho = (H + 2 * pad - K) // stride + 1
    Wo = (W + 2 * pad - K) // stride + 1
    cols = []
    for ki in range(K):
        for kj in range(K):
            cols.append(xp[:, ki:ki + (Ho - 1) * stride + 1:stride,
                              kj:kj + (Wo - 1) * stride + 1:stride, :])
    patches = jnp.stack(cols, axis=3)
    return patches.reshape(N * Ho * Wo, K * K * C), Ho, Wo


def _ref_fold_bn(b, bn, eps=_BN_EPS):
    if bn is None:
        return jnp.ones_like(b), b
    gamma, beta, mean, var = bn
    s = gamma / jnp.sqrt(var + eps)
    return s, (b - mean) * s + beta


def _ref_act(y, act):
    return jnp.maximum(y, 0.0) if act == "relu" else jnp.tanh(y)


def _ref_conv(x, w, b, bn, act, stride=2, pad=1):
    Cout, Cin, K, _ = w.shape
    A, Ho, Wo = _ref_im2col(x, K, stride, pad)
    Wm = jnp.transpose(w, (2, 3, 1, 0)).reshape(K * K * Cin, Cout)
    s, bias = _ref_fold_bn(b, bn)
    y = (A @ Wm) * s + bias
    return _ref_act(y, act).reshape(x.shape[0], Ho, Wo, Cout)


def _ref_deconv(x, w, b, bn, act, stride=2, pad=1):
    Cin, Cout, K, _ = w.shape
    N, H, W, C = x.shape
    xd = jnp.zeros((N, (H - 1) * stride + 1, (W - 1) * stride + 1, C), x.dtype)
    xd = xd.at[:, ::stride, ::stride, :].set(x)
    w_eq = jnp.transpose(w[:, :, ::-1, ::-1], (2, 3, 0, 1))   # (K,K,Cin,Cout)
    A, Ho, Wo = _ref_im2col(xd, K, 1, K - 1 - pad)
    Wm = w_eq.reshape(K * K * Cin, Cout)
    s, bias = _ref_fold_bn(b, bn)
    y = (A @ Wm) * s + bias
    return _ref_act(y, act).reshape(N, Ho, Wo, Cout)


def reference_forward(x_nchw, params):
    x = jnp.transpose(x_nchw, (0, 2, 3, 1))
    for layer in params["enc"]:
        x = _ref_conv(x, layer["w"], layer["b"], layer["bn"], "relu")
    nd = len(params["dec"])
    for li, layer in enumerate(params["dec"]):
        act = "tanh" if li == nd - 1 else "relu"
        x = _ref_deconv(x, layer["w"], layer["b"], layer["bn"], act)
    return jnp.transpose(x, (0, 3, 1, 2))


# ----------------------------------------------------------------------------
if __name__ == "__main__":
    key = jax.random.PRNGKey(0)
    k_p, k_x = jax.random.split(key)
    params = init_params(k_p)
    arrays, acts, out_hwc = build_kernel_params(params, H=32, W=32)
    x = jax.random.normal(k_x, (2, 3, 32, 32), jnp.float32)   # GTSRB-like input

    fwd = jax.jit(lambda xx: autoencoder_forward(xx, arrays, acts, out_hwc))
    y = fwd(x)
    jax.block_until_ready(y)

    assert y.shape == (2, 3, 32, 32), y.shape
    assert bool(jnp.all(jnp.isfinite(y)))
    assert bool(jnp.all(jnp.abs(y) <= 1.0 + 1e-6))            # tanh output range

    # Cross-check the fused bf16 kernel against an f32 plain-JAX reference of
    # the exact same network; tolerance covers bf16 rounding of weights/acts.
    y_ref = jax.jit(lambda xx: reference_forward(xx, params))(x)
    err = float(jnp.max(jnp.abs(y - y_ref)))
    assert err < 0.08, f"kernel/reference mismatch: max abs err {err}"

    print("KERNEL_OK")
</pallas_src>

<mosaic_0001>
module attributes {stable_mosaic.version = 11 : i64} {
  func.func @_fused_autoencoder_kernel(%arg0: i32, %arg1: memref<1x32x96xf32, #tpu.memory_space<vmem>>, %arg2: memref<4x16x32xbf16, #tpu.memory_space<vmem>>, %arg3: memref<4x96x256xbf16, #tpu.memory_space<vmem>>, %arg4: memref<1x256xf32, #tpu.memory_space<vmem>>, %arg5: memref<4x8x16xbf16, #tpu.memory_space<vmem>>, %arg6: memref<4x256x256xbf16, #tpu.memory_space<vmem>>, %arg7: memref<1x256xf32, #tpu.memory_space<vmem>>, %arg8: memref<4x4x8xbf16, #tpu.memory_space<vmem>>, %arg9: memref<4x256x256xbf16, #tpu.memory_space<vmem>>, %arg10: memref<1x256xf32, #tpu.memory_space<vmem>>, %arg11: memref<4x2x4xbf16, #tpu.memory_space<vmem>>, %arg12: memref<4x256x256xbf16, #tpu.memory_space<vmem>>, %arg13: memref<1x256xf32, #tpu.memory_space<vmem>>, %arg14: memref<4x4x2xbf16, #tpu.memory_space<vmem>>, %arg15: memref<4x256x256xbf16, #tpu.memory_space<vmem>>, %arg16: memref<1x256xf32, #tpu.memory_space<vmem>>, %arg17: memref<4x8x4xbf16, #tpu.memory_space<vmem>>, %arg18: memref<4x256x256xbf16, #tpu.memory_space<vmem>>, %arg19: memref<1x256xf32, #tpu.memory_space<vmem>>, %arg20: memref<4x16x8xbf16, #tpu.memory_space<vmem>>, %arg21: memref<4x256x256xbf16, #tpu.memory_space<vmem>>, %arg22: memref<1x256xf32, #tpu.memory_space<vmem>>, %arg23: memref<4x32x16xbf16, #tpu.memory_space<vmem>>, %arg24: memref<4x256x96xbf16, #tpu.memory_space<vmem>>, %arg25: memref<1x96xf32, #tpu.memory_space<vmem>>, %arg26: memref<1x32x96xf32, #tpu.memory_space<vmem>>) attributes {dimension_semantics = [#tpu.dimension_semantics<parallel>], iteration_bounds = array<i64: 2>, scalar_prefetch = 0 : i64, scratch_operands = 0 : i64, tpu.core_type = #tpu.core_type<tc>, window_params = [{transform_indices = @transform_0, window_bounds = array<i64: 1, 32, 96>}, {pipeline_mode = #tpu.pipeline_mode<synchronous>, transform_indices = @transform_1, window_bounds = array<i64: 4, 16, 32>}, {pipeline_mode = #tpu.pipeline_mode<synchronous>, transform_indices = @transform_2, window_bounds = array<i64: 4, 96, 256>}, {pipeline_mode = #tpu.pipeline_mode<synchronous>, transform_indices = @transform_3, window_bounds = array<i64: 1, 256>}, {pipeline_mode = #tpu.pipeline_mode<synchronous>, transform_indices = @transform_4, window_bounds = array<i64: 4, 8, 16>}, {pipeline_mode = #tpu.pipeline_mode<synchronous>, transform_indices = @transform_5, window_bounds = array<i64: 4, 256, 256>}, {pipeline_mode = #tpu.pipeline_mode<synchronous>, transform_indices = @transform_6, window_bounds = array<i64: 1, 256>}, {pipeline_mode = #tpu.pipeline_mode<synchronous>, transform_indices = @transform_7, window_bounds = array<i64: 4, 4, 8>}, {pipeline_mode = #tpu.pipeline_mode<synchronous>, transform_indices = @transform_8, window_bounds = array<i64: 4, 256, 256>}, {pipeline_mode = #tpu.pipeline_mode<synchronous>, transform_indices = @transform_9, window_bounds = array<i64: 1, 256>}, {pipeline_mode = #tpu.pipeline_mode<synchronous>, transform_indices = @transform_10, window_bounds = array<i64: 4, 2, 4>}, {pipeline_mode = #tpu.pipeline_mode<synchronous>, transform_indices = @transform_11, window_bounds = array<i64: 4, 256, 256>}, {pipeline_mode = #tpu.pipeline_mode<synchronous>, transform_indices = @transform_12, window_bounds = array<i64: 1, 256>}, {pipeline_mode = #tpu.pipeline_mode<synchronous>, transform_indices = @transform_13, window_bounds = array<i64: 4, 4, 2>}, {pipeline_mode = #tpu.pipeline_mode<synchronous>, transform_indices = @transform_14, window_bounds = array<i64: 4, 256, 256>}, {pipeline_mode = #tpu.pipeline_mode<synchronous>, transform_indices = @transform_15, window_bounds = array<i64: 1, 256>}, {pipeline_mode = #tpu.pipeline_mode<synchronous>, transform_indices = @transform_16, window_bounds = array<i64: 4, 8, 4>}, {pipeline_mode = #tpu.pipeline_mode<synchronous>, transform_indices = @transform_17, window_bounds = array<i64: 4, 256, 256>}, {pipeline_mode = #tpu.pipeline_mode<synchronous>, transform_indices = @transform_18, window_bounds = array<i64: 1, 256>}, {pipeline_mode = #tpu.pipeline_mode<synchronous>, transform_indices = @transform_19, window_bounds = array<i64: 4, 16, 8>}, {pipeline_mode = #tpu.pipeline_mode<synchronous>, transform_indices = @transform_20, window_bounds = array<i64: 4, 256, 256>}, {pipeline_mode = #tpu.pipeline_mode<synchronous>, transform_indices = @transform_21, window_bounds = array<i64: 1, 256>}, {pipeline_mode = #tpu.pipeline_mode<synchronous>, transform_indices = @transform_22, window_bounds = array<i64: 4, 32, 16>}, {pipeline_mode = #tpu.pipeline_mode<synchronous>, transform_indices = @transform_23, window_bounds = array<i64: 4, 256, 96>}, {pipeline_mode = #tpu.pipeline_mode<synchronous>, transform_indices = @transform_24, window_bounds = array<i64: 1, 96>}, {transform_indices = @transform_25, window_bounds = array<i64: 1, 32, 96>}]} {
    %c0 = arith.constant 0 : index
    %c0_0 = arith.constant 0 : index
    %c0_1 = arith.constant 0 : index
    %0 = vector.load %arg1[%c0, %c0_0, %c0_1] : memref<1x32x96xf32, #tpu.memory_space<vmem>>, vector<1x32x96xf32>
    %1 = vector.shape_cast %0 : vector<1x32x96xf32> to vector<32x96xf32>
    %2 = arith.truncf %1 : vector<32x96xf32> to vector<32x96xbf16>
    %cst = arith.constant 0.000000e+00 : f32
    %3 = vector.broadcast %cst : f32 to vector<16x256xf32>
    %c0_2 = arith.constant 0 : index
    %c0_3 = arith.constant 0 : index
    %c0_4 = arith.constant 0 : index
    %4 = vector.load %arg2[%c0_2, %c0_3, %c0_4] : memref<4x16x32xbf16, #tpu.memory_space<vmem>>, vector<1x16x32xbf16>
    %5 = vector.shape_cast %4 : vector<1x16x32xbf16> to vector<16x32xbf16>
    %cst_5 = arith.constant dense<0.000000e+00> : vector<16x96xf32>
    %6 = tpu.matmul %5, %2, %cst_5 {dimension_numbers = #tpu.dot_dimension_numbers<[1], [0], [0], [1], [0, 0, 1, 1], [], []>} : vector<16x32xbf16>, vector<32x96xbf16>, vector<16x96xf32> -> vector<16x96xf32>
    %7 = arith.truncf %6 : vector<16x96xf32> to vector<16x96xbf16>
    %c0_6 = arith.constant 0 : index
    %c0_7 = arith.constant 0 : index
    %c0_8 = arith.constant 0 : index
    %8 = vector.load %arg3[%c0_6, %c0_7, %c0_8] : memref<4x96x256xbf16, #tpu.memory_space<vmem>>, vector<1x96x256xbf16>
    %9 = vector.shape_cast %8 : vector<1x96x256xbf16> to vector<96x256xbf16>
    %cst_9 = arith.constant dense<0.000000e+00> : vector<16x256xf32>
    %10 = tpu.matmul %7, %9, %cst_9 {dimension_numbers = #tpu.dot_dimension_numbers<[1], [0], [0], [1], [0, 0, 1, 1], [], []>} : vector<16x96xbf16>, vector<96x256xbf16>, vector<16x256xf32> -> vector<16x256xf32>
    %11 = arith.addf %3, %10 : vector<16x256xf32>
    %c1 = arith.constant 1 : index
    %c0_10 = arith.constant 0 : index
    %c0_11 = arith.constant 0 : index
    %12 = vector.load %arg2[%c1, %c0_10, %c0_11] : memref<4x16x32xbf16, #tpu.memory_space<vmem>>, vector<1x16x32xbf16>
    %13 = vector.shape_cast %12 : vector<1x16x32xbf16> to vector<16x32xbf16>
    %cst_12 = arith.constant dense<0.000000e+00> : vector<16x96xf32>
    %14 = tpu.matmul %13, %2, %cst_12 {dimension_numbers = #tpu.dot_dimension_numbers<[1], [0], [0], [1], [0, 0, 1, 1], [], []>} : vector<16x32xbf16>, vector<32x96xbf16>, vector<16x96xf32> -> vector<16x96xf32>
    %15 = arith.truncf %14 : vector<16x96xf32> to vector<16x96xbf16>
    %c1_13 = arith.constant 1 : index
    %c0_14 = arith.constant 0 : index
    %c0_15 = arith.constant 0 : index
    %16 = vector.load %arg3[%c1_13, %c0_14, %c0_15] : memref<4x96x256xbf16, #tpu.memory_space<vmem>>, vector<1x96x256xbf16>
    %17 = vector.shape_cast %16 : vector<1x96x256xbf16> to vector<96x256xbf16>
    %cst_16 = arith.constant dense<0.000000e+00> : vector<16x256xf32>
    %18 = tpu.matmul %15, %17, %cst_16 {dimension_numbers = #tpu.dot_dimension_numbers<[1], [0], [0], [1], [0, 0, 1, 1], [], []>} : vector<16x96xbf16>, vector<96x256xbf16>, vector<16x256xf32> -> vector<16x256xf32>
    %19 = arith.addf %11, %18 : vector<16x256xf32>
    %c2 = arith.constant 2 : index
    %c0_17 = arith.constant 0 : index
    %c0_18 = arith.constant 0 : index
    %20 = vector.load %arg2[%c2, %c0_17, %c0_18] : memref<4x16x32xbf16, #tpu.memory_space<vmem>>, vector<1x16x32xbf16>
    %21 = vector.shape_cast %20 : vector<1x16x32xbf16> to vector<16x32xbf16>
    %cst_19 = arith.constant dense<0.000000e+00> : vector<16x96xf32>
    %22 = tpu.matmul %21, %2, %cst_19 {dimension_numbers = #tpu.dot_dimension_numbers<[1], [0], [0], [1], [0, 0, 1, 1], [], []>} : vector<16x32xbf16>, vector<32x96xbf16>, vector<16x96xf32> -> vector<16x96xf32>
    %23 = arith.truncf %22 : vector<16x96xf32> to vector<16x96xbf16>
    %c2_20 = arith.constant 2 : index
    %c0_21 = arith.constant 0 : index
    %c0_22 = arith.constant 0 : index
    %24 = vector.load %arg3[%c2_20, %c0_21, %c0_22] : memref<4x96x256xbf16, #tpu.memory_space<vmem>>, vector<1x96x256xbf16>
    %25 = vector.shape_cast %24 : vector<1x96x256xbf16> to vector<96x256xbf16>
    %cst_23 = arith.constant dense<0.000000e+00> : vector<16x256xf32>
    %26 = tpu.matmul %23, %25, %cst_23 {dimension_numbers = #tpu.dot_dimension_numbers<[1], [0], [0], [1], [0, 0, 1, 1], [], []>} : vector<16x96xbf16>, vector<96x256xbf16>, vector<16x256xf32> -> vector<16x256xf32>
    %27 = arith.addf %19, %26 : vector<16x256xf32>
    %c3 = arith.constant 3 : index
    %c0_24 = arith.constant 0 : index
    %c0_25 = arith.constant 0 : index
    %28 = vector.load %arg2[%c3, %c0_24, %c0_25] : memref<4x16x32xbf16, #tpu.memory_space<vmem>>, vector<1x16x32xbf16>
    %29 = vector.shape_cast %28 : vector<1x16x32xbf16> to vector<16x32xbf16>
    %cst_26 = arith.constant dense<0.000000e+00> : vector<16x96xf32>
    %30 = tpu.matmul %29, %2, %cst_26 {dimension_numbers = #tpu.dot_dimension_numbers<[1], [0], [0], [1], [0, 0, 1, 1], [], []>} : vector<16x32xbf16>, vector<32x96xbf16>, vector<16x96xf32> -> vector<16x96xf32>
    %31 = arith.truncf %30 : vector<16x96xf32> to vector<16x96xbf16>
    %c3_27 = arith.constant 3 : index
    %c0_28 = arith.constant 0 : index
    %c0_29 = arith.constant 0 : index
    %32 = vector.load %arg3[%c3_27, %c0_28, %c0_29] : memref<4x96x256xbf16, #tpu.memory_space<vmem>>, vector<1x96x256xbf16>
    %33 = vector.shape_cast %32 : vector<1x96x256xbf16> to vector<96x256xbf16>
    %cst_30 = arith.constant dense<0.000000e+00> : vector<16x256xf32>
    %34 = tpu.matmul %31, %33, %cst_30 {dimension_numbers = #tpu.dot_dimension_numbers<[1], [0], [0], [1], [0, 0, 1, 1], [], []>} : vector<16x96xbf16>, vector<96x256xbf16>, vector<16x256xf32> -> vector<16x256xf32>
    %35 = arith.addf %27, %34 : vector<16x256xf32>
    %c0_31 = arith.constant 0 : index
    %c0_32 = arith.constant 0 : index
    %36 = vector.load %arg4[%c0_31, %c0_32] : memref<1x256xf32, #tpu.memory_space<vmem>>, vector<1x256xf32>
    %37 = vector.broadcast %36 : vector<1x256xf32> to vector<16x256xf32>
    %38 = arith.addf %35, %37 : vector<16x256xf32>
    %cst_33 = arith.constant 0.000000e+00 : f32
    %39 = vector.broadcast %cst_33 : f32 to vector<16x256xf32>
    %40 = arith.maximumf %38, %39 : vector<16x256xf32>
    %41 = arith.truncf %40 : vector<16x256xf32> to vector<16x256xbf16>
    %cst_34 = arith.constant 0.000000e+00 : f32
    %42 = vector.broadcast %cst_34 : f32 to vector<8x256xf32>
    %c0_35 = arith.constant 0 : index
    %c0_36 = arith.constant 0 : index
    %c0_37 = arith.constant 0 : index
    %43 = vector.load %arg5[%c0_35, %c0_36, %c0_37] : memref<4x8x16xbf16, #tpu.memory_space<vmem>>, vector<1x8x16xbf16>
    %44 = vector.shape_cast %43 : vector<1x8x16xbf16> to vector<8x16xbf16>
    %cst_38 = arith.constant dense<0.000000e+00> : vector<8x256xf32>
    %45 = tpu.matmul %44, %41, %cst_38 {dimension_numbers = #tpu.dot_dimension_numbers<[1], [0], [0], [1], [0, 0, 1, 1], [], []>} : vector<8x16xbf16>, vector<16x256xbf16>, vector<8x256xf32> -> vector<8x256xf32>
    %46 = arith.truncf %45 : vector<8x256xf32> to vector<8x256xbf16>
    %c0_39 = arith.constant 0 : index
    %c0_40 = arith.constant 0 : index
    %c0_41 = arith.constant 0 : index
    %47 = vector.load %arg6[%c0_39, %c0_40, %c0_41] : memref<4x256x256xbf16, #tpu.memory_space<vmem>>, vector<1x256x256xbf16>
    %48 = vector.shape_cast %47 : vector<1x256x256xbf16> to vector<256x256xbf16>
    %cst_42 = arith.constant dense<0.000000e+00> : vector<8x256xf32>
    %49 = tpu.matmul %46, %48, %cst_42 {dimension_numbers = #tpu.dot_dimension_numbers<[1], [0], [0], [1], [0, 0, 1, 1], [], []>} : vector<8x256xbf16>, vector<256x256xbf16>, vector<8x256xf32> -> vector<8x256xf32>
    %50 = arith.addf %42, %49 : vector<8x256xf32>
    %c1_43 = arith.constant 1 : index
    %c0_44 = arith.constant 0 : index
    %c0_45 = arith.constant 0 : index
    %51 = vector.load %arg5[%c1_43, %c0_44, %c0_45] : memref<4x8x16xbf16, #tpu.memory_space<vmem>>, vector<1x8x16xbf16>
    %52 = vector.shape_cast %51 : vector<1x8x16xbf16> to vector<8x16xbf16>
    %cst_46 = arith.constant dense<0.000000e+00> : vector<8x256xf32>
    %53 = tpu.matmul %52, %41, %cst_46 {dimension_numbers = #tpu.dot_dimension_numbers<[1], [0], [0], [1], [0, 0, 1, 1], [], []>} : vector<8x16xbf16>, vector<16x256xbf16>, vector<8x256xf32> -> vector<8x256xf32>
    %54 = arith.truncf %53 : vector<8x256xf32> to vector<8x256xbf16>
    %c1_47 = arith.constant 1 : index
    %c0_48 = arith.constant 0 : index
    %c0_49 = arith.constant 0 : index
    %55 = vector.load %arg6[%c1_47, %c0_48, %c0_49] : memref<4x256x256xbf16, #tpu.memory_space<vmem>>, vector<1x256x256xbf16>
    %56 = vector.shape_cast %55 : vector<1x256x256xbf16> to vector<256x256xbf16>
    %cst_50 = arith.constant dense<0.000000e+00> : vector<8x256xf32>
    %57 = tpu.matmul %54, %56, %cst_50 {dimension_numbers = #tpu.dot_dimension_numbers<[1], [0], [0], [1], [0, 0, 1, 1], [], []>} : vector<8x256xbf16>, vector<256x256xbf16>, vector<8x256xf32> -> vector<8x256xf32>
    %58 = arith.addf %50, %57 : vector<8x256xf32>
    %c2_51 = arith.constant 2 : index
    %c0_52 = arith.constant 0 : index
    %c0_53 = arith.constant 0 : index
    %59 = vector.load %arg5[%c2_51, %c0_52, %c0_53] : memref<4x8x16xbf16, #tpu.memory_space<vmem>>, vector<1x8x16xbf16>
    %60 = vector.shape_cast %59 : vector<1x8x16xbf16> to vector<8x16xbf16>
    %cst_54 = arith.constant dense<0.000000e+00> : vector<8x256xf32>
    %61 = tpu.matmul %60, %41, %cst_54 {dimension_numbers = #tpu.dot_dimension_numbers<[1], [0], [0], [1], [0, 0, 1, 1], [], []>} : vector<8x16xbf16>, vector<16x256xbf16>, vector<8x256xf32> -> vector<8x256xf32>
    %62 = arith.truncf %61 : vector<8x256xf32> to vector<8x256xbf16>
    %c2_55 = arith.constant 2 : index
    %c0_56 = arith.constant 0 : index
    %c0_57 = arith.constant 0 : index
    %63 = vector.load %arg6[%c2_55, %c0_56, %c0_57] : memref<4x256x256xbf16, #tpu.memory_space<vmem>>, vector<1x256x256xbf16>
    %64 = vector.shape_cast %63 : vector<1x256x256xbf16> to vector<256x256xbf16>
    %cst_58 = arith.constant dense<0.000000e+00> : vector<8x256xf32>
    %65 = tpu.matmul %62, %64, %cst_58 {dimension_numbers = #tpu.dot_dimension_numbers<[1], [0], [0], [1], [0, 0, 1, 1], [], []>} : vector<8x256xbf16>, vector<256x256xbf16>, vector<8x256xf32> -> vector<8x256xf32>
    %66 = arith.addf %58, %65 : vector<8x256xf32>
    %c3_59 = arith.constant 3 : index
    %c0_60 = arith.constant 0 : index
    %c0_61 = arith.constant 0 : index
    %67 = vector.load %arg5[%c3_59, %c0_60, %c0_61] : memref<4x8x16xbf16, #tpu.memory_space<vmem>>, vector<1x8x16xbf16>
    %68 = vector.shape_cast %67 : vector<1x8x16xbf16> to vector<8x16xbf16>
    %cst_62 = arith.constant dense<0.000000e+00> : vector<8x256xf32>
    %69 = tpu.matmul %68, %41, %cst_62 {dimension_numbers = #tpu.dot_dimension_numbers<[1], [0], [0], [1], [0, 0, 1, 1], [], []>} : vector<8x16xbf16>, vector<16x256xbf16>, vector<8x256xf32> -> vector<8x256xf32>
    %70 = arith.truncf %69 : vector<8x256xf32> to vector<8x256xbf16>
    %c3_63 = arith.constant 3 : index
    %c0_64 = arith.constant 0 : index
    %c0_65 = arith.constant 0 : index
    %71 = vector.load %arg6[%c3_63, %c0_64, %c0_65] : memref<4x256x256xbf16, #tpu.memory_space<vmem>>, vector<1x256x256xbf16>
    %72 = vector.shape_cast %71 : vector<1x256x256xbf16> to vector<256x256xbf16>
    %cst_66 = arith.constant dense<0.000000e+00> : vector<8x256xf32>
    %73 = tpu.matmul %70, %72, %cst_66 {dimension_numbers = #tpu.dot_dimension_numbers<[1], [0], [0], [1], [0, 0, 1, 1], [], []>} : vector<8x256xbf16>, vector<256x256xbf16>, vector<8x256xf32> -> vector<8x256xf32>
    %74 = arith.addf %66, %73 : vector<8x256xf32>
    %c0_67 = arith.constant 0 : index
    %c0_68 = arith.constant 0 : index
    %75 = vector.load %arg7[%c0_67, %c0_68] : memref<1x256xf32, #tpu.memory_space<vmem>>, vector<1x256xf32>
    %76 = vector.broadcast %75 : vector<1x256xf32> to vector<8x256xf32>
    %77 = arith.addf %74, %76 : vector<8x256xf32>
    %cst_69 = arith.constant 0.000000e+00 : f32
    %78 = vector.broadcast %cst_69 : f32 to vector<8x256xf32>
    %79 = arith.maximumf %77, %78 : vector<8x256xf32>
    %80 = arith.truncf %79 : vector<8x256xf32> to vector<8x256xbf16>
    %cst_70 = arith.constant 0.000000e+00 : f32
    %81 = vector.broadcast %cst_70 : f32 to vector<4x256xf32>
    %c0_71 = arith.constant 0 : index
    %c0_72 = arith.constant 0 : index
    %c0_73 = arith.constant 0 : index
    %82 = vector.load %arg8[%c0_71, %c0_72, %c0_73] : memref<4x4x8xbf16, #tpu.memory_space<vmem>>, vector<1x4x8xbf16>
    %83 = vector.shape_cast %82 : vector<1x4x8xbf16> to vector<4x8xbf16>
    %cst_74 = arith.constant dense<0.000000e+00> : vector<4x256xf32>
    %84 = tpu.matmul %83, %80, %cst_74 {dimension_numbers = #tpu.dot_dimension_numbers<[1], [0], [0], [1], [0, 0, 1, 1], [], []>} : vector<4x8xbf16>, vector<8x256xbf16>, vector<4x256xf32> -> vector<4x256xf32>
    %85 = arith.truncf %84 : vector<4x256xf32> to vector<4x256xbf16>
    %c0_75 = arith.constant 0 : index
    %c0_76 = arith.constant 0 : index
    %c0_77 = arith.constant 0 : index
    %86 = vector.load %arg9[%c0_75, %c0_76, %c0_77] : memref<4x256x256xbf16, #tpu.memory_space<vmem>>, vector<1x256x256xbf16>
    %87 = vector.shape_cast %86 : vector<1x256x256xbf16> to vector<256x256xbf16>
    %cst_78 = arith.constant dense<0.000000e+00> : vector<4x256xf32>
    %88 = tpu.matmul %85, %87, %cst_78 {dimension_numbers = #tpu.dot_dimension_numbers<[1], [0], [0], [1], [0, 0, 1, 1], [], []>} : vector<4x256xbf16>, vector<256x256xbf16>, vector<4x256xf32> -> vector<4x256xf32>
    %89 = arith.addf %81, %88 : vector<4x256xf32>
    %c1_79 = arith.constant 1 : index
    %c0_80 = arith.constant 0 : index
    %c0_81 = arith.constant 0 : index
    %90 = vector.load %arg8[%c1_79, %c0_80, %c0_81] : memref<4x4x8xbf16, #tpu.memory_space<vmem>>, vector<1x4x8xbf16>
    %91 = vector.shape_cast %90 : vector<1x4x8xbf16> to vector<4x8xbf16>
    %cst_82 = arith.constant dense<0.000000e+00> : vector<4x256xf32>
    %92 = tpu.matmul %91, %80, %cst_82 {dimension_numbers = #tpu.dot_dimension_numbers<[1], [0], [0], [1], [0, 0, 1, 1], [], []>} : vector<4x8xbf16>, vector<8x256xbf16>, vector<4x256xf32> -> vector<4x256xf32>
    %93 = arith.truncf %92 : vector<4x256xf32> to vector<4x256xbf16>
    %c1_83 = arith.constant 1 : index
    %c0_84 = arith.constant 0 : index
    %c0_85 = arith.constant 0 : index
    %94 = vector.load %arg9[%c1_83, %c0_84, %c0_85] : memref<4x256x256xbf16, #tpu.memory_space<vmem>>, vector<1x256x256xbf16>
    %95 = vector.shape_cast %94 : vector<1x256x256xbf16> to vector<256x256xbf16>
    %cst_86 = arith.constant dense<0.000000e+00> : vector<4x256xf32>
    %96 = tpu.matmul %93, %95, %cst_86 {dimension_numbers = #tpu.dot_dimension_numbers<[1], [0], [0], [1], [0, 0, 1, 1], [], []>} : vector<4x256xbf16>, vector<256x256xbf16>, vector<4x256xf32> -> vector<4x256xf32>
    %97 = arith.addf %89, %96 : vector<4x256xf32>
    %c2_87 = arith.constant 2 : index
    %c0_88 = arith.constant 0 : index
    %c0_89 = arith.constant 0 : index
    %98 = vector.load %arg8[%c2_87, %c0_88, %c0_89] : memref<4x4x8xbf16, #tpu.memory_space<vmem>>, vector<1x4x8xbf16>
    %99 = vector.shape_cast %98 : vector<1x4x8xbf16> to vector<4x8xbf16>
    %cst_90 = arith.constant dense<0.000000e+00> : vector<4x256xf32>
    %100 = tpu.matmul %99, %80, %cst_90 {dimension_numbers = #tpu.dot_dimension_numbers<[1], [0], [0], [1], [0, 0, 1, 1], [], []>} : vector<4x8xbf16>, vector<8x256xbf16>, vector<4x256xf32> -> vector<4x256xf32>
    %101 = arith.truncf %100 : vector<4x256xf32> to vector<4x256xbf16>
    %c2_91 = arith.constant 2 : index
    %c0_92 = arith.constant 0 : index
    %c0_93 = arith.constant 0 : index
    %102 = vector.load %arg9[%c2_91, %c0_92, %c0_93] : memref<4x256x256xbf16, #tpu.memory_space<vmem>>, vector<1x256x256xbf16>
    %103 = vector.shape_cast %102 : vector<1x256x256xbf16> to vector<256x256xbf16>
    %cst_94 = arith.constant dense<0.000000e+00> : vector<4x256xf32>
    %104 = tpu.matmul %101, %103, %cst_94 {dimension_numbers = #tpu.dot_dimension_numbers<[1], [0], [0], [1], [0, 0, 1, 1], [], []>} : vector<4x256xbf16>, vector<256x256xbf16>, vector<4x256xf32> -> vector<4x256xf32>
    %105 = arith.addf %97, %104 : vector<4x256xf32>
    %c3_95 = arith.constant 3 : index
    %c0_96 = arith.constant 0 : index
    %c0_97 = arith.constant 0 : index
    %106 = vector.load %arg8[%c3_95, %c0_96, %c0_97] : memref<4x4x8xbf16, #tpu.memory_space<vmem>>, vector<1x4x8xbf16>
    %107 = vector.shape_cast %106 : vector<1x4x8xbf16> to vector<4x8xbf16>
    %cst_98 = arith.constant dense<0.000000e+00> : vector<4x256xf32>
    %108 = tpu.matmul %107, %80, %cst_98 {dimension_numbers = #tpu.dot_dimension_numbers<[1], [0], [0], [1], [0, 0, 1, 1], [], []>} : vector<4x8xbf16>, vector<8x256xbf16>, vector<4x256xf32> -> vector<4x256xf32>
    %109 = arith.truncf %108 : vector<4x256xf32> to vector<4x256xbf16>
    %c3_99 = arith.constant 3 : index
    %c0_100 = arith.constant 0 : index
    %c0_101 = arith.constant 0 : index
    %110 = vector.load %arg9[%c3_99, %c0_100, %c0_101] : memref<4x256x256xbf16, #tpu.memory_space<vmem>>, vector<1x256x256xbf16>
    %111 = vector.shape_cast %110 : vector<1x256x256xbf16> to vector<256x256xbf16>
    %cst_102 = arith.constant dense<0.000000e+00> : vector<4x256xf32>
    %112 = tpu.matmul %109, %111, %cst_102 {dimension_numbers = #tpu.dot_dimension_numbers<[1], [0], [0], [1], [0, 0, 1, 1], [], []>} : vector<4x256xbf16>, vector<256x256xbf16>, vector<4x256xf32> -> vector<4x256xf32>
    %113 = arith.addf %105, %112 : vector<4x256xf32>
    %c0_103 = arith.constant 0 : index
    %c0_104 = arith.constant 0 : index
    %114 = vector.load %arg10[%c0_103, %c0_104] : memref<1x256xf32, #tpu.memory_space<vmem>>, vector<1x256xf32>
    %115 = vector.broadcast %114 : vector<1x256xf32> to vector<4x256xf32>
    %116 = arith.addf %113, %115 : vector<4x256xf32>
    %cst_105 = arith.constant 0.000000e+00 : f32
    %117 = vector.broadcast %cst_105 : f32 to vector<4x256xf32>
    %118 = arith.maximumf %116, %117 : vector<4x256xf32>
    %119 = arith.truncf %118 : vector<4x256xf32> to vector<4x256xbf16>
    %cst_106 = arith.constant 0.000000e+00 : f32
    %120 = vector.broadcast %cst_106 : f32 to vector<2x256xf32>
    %c0_107 = arith.constant 0 : index
    %c0_108 = arith.constant 0 : index
    %c0_109 = arith.constant 0 : index
    %121 = vector.load %arg11[%c0_107, %c0_108, %c0_109] : memref<4x2x4xbf16, #tpu.memory_space<vmem>>, vector<1x2x4xbf16>
    %122 = vector.shape_cast %121 : vector<1x2x4xbf16> to vector<2x4xbf16>
    %cst_110 = arith.constant dense<0.000000e+00> : vector<2x256xf32>
    %123 = tpu.matmul %122, %119, %cst_110 {dimension_numbers = #tpu.dot_dimension_numbers<[1], [0], [0], [1], [0, 0, 1, 1], [], []>} : vector<2x4xbf16>, vector<4x256xbf16>, vector<2x256xf32> -> vector<2x256xf32>
    %124 = arith.truncf %123 : vector<2x256xf32> to vector<2x256xbf16>
    %c0_111 = arith.constant 0 : index
    %c0_112 = arith.constant 0 : index
    %c0_113 = arith.constant 0 : index
    %125 = vector.load %arg12[%c0_111, %c0_112, %c0_113] : memref<4x256x256xbf16, #tpu.memory_space<vmem>>, vector<1x256x256xbf16>
    %126 = vector.shape_cast %125 : vector<1x256x256xbf16> to vector<256x256xbf16>
    %cst_114 = arith.constant dense<0.000000e+00> : vector<2x256xf32>
    %127 = tpu.matmul %124, %126, %cst_114 {dimension_numbers = #tpu.dot_dimension_numbers<[1], [0], [0], [1], [0, 0, 1, 1], [], []>} : vector<2x256xbf16>, vector<256x256xbf16>, vector<2x256xf32> -> vector<2x256xf32>
    %128 = arith.addf %120, %127 : vector<2x256xf32>
    %c1_115 = arith.constant 1 : index
    %c0_116 = arith.constant 0 : index
    %c0_117 = arith.constant 0 : index
    %129 = vector.load %arg11[%c1_115, %c0_116, %c0_117] : memref<4x2x4xbf16, #tpu.memory_space<vmem>>, vector<1x2x4xbf16>
    %130 = vector.shape_cast %129 : vector<1x2x4xbf16> to vector<2x4xbf16>
    %cst_118 = arith.constant dense<0.000000e+00> : vector<2x256xf32>
    %131 = tpu.matmul %130, %119, %cst_118 {dimension_numbers = #tpu.dot_dimension_numbers<[1], [0], [0], [1], [0, 0, 1, 1], [], []>} : vector<2x4xbf16>, vector<4x256xbf16>, vector<2x256xf32> -> vector<2x256xf32>
    %132 = arith.truncf %131 : vector<2x256xf32> to vector<2x256xbf16>
    %c1_119 = arith.constant 1 : index
    %c0_120 = arith.constant 0 : index
    %c0_121 = arith.constant 0 : index
    %133 = vector.load %arg12[%c1_119, %c0_120, %c0_121] : memref<4x256x256xbf16, #tpu.memory_space<vmem>>, vector<1x256x256xbf16>
    %134 = vector.shape_cast %133 : vector<1x256x256xbf16> to vector<256x256xbf16>
    %cst_122 = arith.constant dense<0.000000e+00> : vector<2x256xf32>
    %135 = tpu.matmul %132, %134, %cst_122 {dimension_numbers = #tpu.dot_dimension_numbers<[1], [0], [0], [1], [0, 0, 1, 1], [], []>} : vector<2x256xbf16>, vector<256x256xbf16>, vector<2x256xf32> -> vector<2x256xf32>
    %136 = arith.addf %128, %135 : vector<2x256xf32>
    %c2_123 = arith.constant 2 : index
    %c0_124 = arith.constant 0 : index
    %c0_125 = arith.constant 0 : index
    %137 = vector.load %arg11[%c2_123, %c0_124, %c0_125] : memref<4x2x4xbf16, #tpu.memory_space<vmem>>, vector<1x2x4xbf16>
    %138 = vector.shape_cast %137 : vector<1x2x4xbf16> to vector<2x4xbf16>
    %cst_126 = arith.constant dense<0.000000e+00> : vector<2x256xf32>
    %139 = tpu.matmul %138, %119, %cst_126 {dimension_numbers = #tpu.dot_dimension_numbers<[1], [0], [0], [1], [0, 0, 1, 1], [], []>} : vector<2x4xbf16>, vector<4x256xbf16>, vector<2x256xf32> -> vector<2x256xf32>
    %140 = arith.truncf %139 : vector<2x256xf32> to vector<2x256xbf16>
    %c2_127 = arith.constant 2 : index
    %c0_128 = arith.constant 0 : index
    %c0_129 = arith.constant 0 : index
    %141 = vector.load %arg12[%c2_127, %c0_128, %c0_129] : memref<4x256x256xbf16, #tpu.memory_space<vmem>>, vector<1x256x256xbf16>
    %142 = vector.shape_cast %141 : vector<1x256x256xbf16> to vector<256x256xbf16>
    %cst_130 = arith.constant dense<0.000000e+00> : vector<2x256xf32>
    %143 = tpu.matmul %140, %142, %cst_130 {dimension_numbers = #tpu.dot_dimension_numbers<[1], [0], [0], [1], [0, 0, 1, 1], [], []>} : vector<2x256xbf16>, vector<256x256xbf16>, vector<2x256xf32> -> vector<2x256xf32>
    %144 = arith.addf %136, %143 : vector<2x256xf32>
    %c3_131 = arith.constant 3 : index
    %c0_132 = arith.constant 0 : index
    %c0_133 = arith.constant 0 : index
    %145 = vector.load %arg11[%c3_131, %c0_132, %c0_133] : memref<4x2x4xbf16, #tpu.memory_space<vmem>>, vector<1x2x4xbf16>
    %146 = vector.shape_cast %145 : vector<1x2x4xbf16> to vector<2x4xbf16>
    %cst_134 = arith.constant dense<0.000000e+00> : vector<2x256xf32>
    %147 = tpu.matmul %146, %119, %cst_134 {dimension_numbers = #tpu.dot_dimension_numbers<[1], [0], [0], [1], [0, 0, 1, 1], [], []>} : vector<2x4xbf16>, vector<4x256xbf16>, vector<2x256xf32> -> vector<2x256xf32>
    %148 = arith.truncf %147 : vector<2x256xf32> to vector<2x256xbf16>
    %c3_135 = arith.constant 3 : index
    %c0_136 = arith.constant 0 : index
    %c0_137 = arith.constant 0 : index
    %149 = vector.load %arg12[%c3_135, %c0_136, %c0_137] : memref<4x256x256xbf16, #tpu.memory_space<vmem>>, vector<1x256x256xbf16>
    %150 = vector.shape_cast %149 : vector<1x256x256xbf16> to vector<256x256xbf16>
    %cst_138 = arith.constant dense<0.000000e+00> : vector<2x256xf32>
    %151 = tpu.matmul %148, %150, %cst_138 {dimension_numbers = #tpu.dot_dimension_numbers<[1], [0], [0], [1], [0, 0, 1, 1], [], []>} : vector<2x256xbf16>, vector<256x256xbf16>, vector<2x256xf32> -> vector<2x256xf32>
    %152 = arith.addf %144, %151 : vector<2x256xf32>
    %c0_139 = arith.constant 0 : index
    %c0_140 = arith.constant 0 : index
    %153 = vector.load %arg13[%c0_139, %c0_140] : memref<1x256xf32, #tpu.memory_space<vmem>>, vector<1x256xf32>
    %154 = vector.broadcast %153 : vector<1x256xf32> to vector<2x256xf32>
    %155 = arith.addf %152, %154 : vector<2x256xf32>
    %cst_141 = arith.constant 0.000000e+00 : f32
    %156 = vector.broadcast %cst_141 : f32 to vector<2x256xf32>
    %157 = arith.maximumf %155, %156 : vector<2x256xf32>
    %158 = arith.truncf %157 : vector<2x256xf32> to vector<2x256xbf16>
    %cst_142 = arith.constant 0.000000e+00 : f32
    %159 = vector.broadcast %cst_142 : f32 to vector<4x256xf32>
    %c0_143 = arith.constant 0 : index
    %c0_144 = arith.constant 0 : index
    %c0_145 = arith.constant 0 : index
    %160 = vector.load %arg14[%c0_143, %c0_144, %c0_145] : memref<4x4x2xbf16, #tpu.memory_space<vmem>>, vector<1x4x2xbf16>
    %161 = vector.shape_cast %160 : vector<1x4x2xbf16> to vector<4x2xbf16>
    %cst_146 = arith.constant dense<0.000000e+00> : vector<4x256xf32>
    %162 = tpu.matmul %161, %158, %cst_146 {dimension_numbers = #tpu.dot_dimension_numbers<[1], [0], [0], [1], [0, 0, 1, 1], [], []>} : vector<4x2xbf16>, vector<2x256xbf16>, vector<4x256xf32> -> vector<4x256xf32>
    %163 = arith.truncf %162 : vector<4x256xf32> to vector<4x256xbf16>
    %c0_147 = arith.constant 0 : index
    %c0_148 = arith.constant 0 : index
    %c0_149 = arith.constant 0 : index
    %164 = vector.load %arg15[%c0_147, %c0_148, %c0_149] : memref<4x256x256xbf16, #tpu.memory_space<vmem>>, vector<1x256x256xbf16>
    %165 = vector.shape_cast %164 : vector<1x256x256xbf16> to vector<256x256xbf16>
    %cst_150 = arith.constant dense<0.000000e+00> : vector<4x256xf32>
    %166 = tpu.matmul %163, %165, %cst_150 {dimension_numbers = #tpu.dot_dimension_numbers<[1], [0], [0], [1], [0, 0, 1, 1], [], []>} : vector<4x256xbf16>, vector<256x256xbf16>, vector<4x256xf32> -> vector<4x256xf32>
    %167 = arith.addf %159, %166 : vector<4x256xf32>
    %c1_151 = arith.constant 1 : index
    %c0_152 = arith.constant 0 : index
    %c0_153 = arith.constant 0 : index
    %168 = vector.load %arg14[%c1_151, %c0_152, %c0_153] : memref<4x4x2xbf16, #tpu.memory_space<vmem>>, vector<1x4x2xbf16>
    %169 = vector.shape_cast %168 : vector<1x4x2xbf16> to vector<4x2xbf16>
    %cst_154 = arith.constant dense<0.000000e+00> : vector<4x256xf32>
    %170 = tpu.matmul %169, %158, %cst_154 {dimension_numbers = #tpu.dot_dimension_numbers<[1], [0], [0], [1], [0, 0, 1, 1], [], []>} : vector<4x2xbf16>, vector<2x256xbf16>, vector<4x256xf32> -> vector<4x256xf32>
    %171 = arith.truncf %170 : vector<4x256xf32> to vector<4x256xbf16>
    %c1_155 = arith.constant 1 : index
    %c0_156 = arith.constant 0 : index
    %c0_157 = arith.constant 0 : index
    %172 = vector.load %arg15[%c1_155, %c0_156, %c0_157] : memref<4x256x256xbf16, #tpu.memory_space<vmem>>, vector<1x256x256xbf16>
    %173 = vector.shape_cast %172 : vector<1x256x256xbf16> to vector<256x256xbf16>
    %cst_158 = arith.constant dense<0.000000e+00> : vector<4x256xf32>
    %174 = tpu.matmul %171, %173, %cst_158 {dimension_numbers = #tpu.dot_dimension_numbers<[1], [0], [0], [1], [0, 0, 1, 1], [], []>} : vector<4x256xbf16>, vector<256x256xbf16>, vector<4x256xf32> -> vector<4x256xf32>
    %175 = arith.addf %167, %174 : vector<4x256xf32>
    %c2_159 = arith.constant 2 : index
    %c0_160 = arith.constant 0 : index
    %c0_161 = arith.constant 0 : index
    %176 = vector.load %arg14[%c2_159, %c0_160, %c0_161] : memref<4x4x2xbf16, #tpu.memory_space<vmem>>, vector<1x4x2xbf16>
    %177 = vector.shape_cast %176 : vector<1x4x2xbf16> to vector<4x2xbf16>
    %cst_162 = arith.constant dense<0.000000e+00> : vector<4x256xf32>
    %178 = tpu.matmul %177, %158, %cst_162 {dimension_numbers = #tpu.dot_dimension_numbers<[1], [0], [0], [1], [0, 0, 1, 1], [], []>} : vector<4x2xbf16>, vector<2x256xbf16>, vector<4x256xf32> -> vector<4x256xf32>
    %179 = arith.truncf %178 : vector<4x256xf32> to vector<4x256xbf16>
    %c2_163 = arith.constant 2 : index
    %c0_164 = arith.constant 0 : index
    %c0_165 = arith.constant 0 : index
    %180 = vector.load %arg15[%c2_163, %c0_164, %c0_165] : memref<4x256x256xbf16, #tpu.memory_space<vmem>>, vector<1x256x256xbf16>
    %181 = vector.shape_cast %180 : vector<1x256x256xbf16> to vector<256x256xbf16>
    %cst_166 = arith.constant dense<0.000000e+00> : vector<4x256xf32>
    %182 = tpu.matmul %179, %181, %cst_166 {dimension_numbers = #tpu.dot_dimension_numbers<[1], [0], [0], [1], [0, 0, 1, 1], [], []>} : vector<4x256xbf16>, vector<256x256xbf16>, vector<4x256xf32> -> vector<4x256xf32>
    %183 = arith.addf %175, %182 : vector<4x256xf32>
    %c3_167 = arith.constant 3 : index
    %c0_168 = arith.constant 0 : index
    %c0_169 = arith.constant 0 : index
    %184 = vector.load %arg14[%c3_167, %c0_168, %c0_169] : memref<4x4x2xbf16, #tpu.memory_space<vmem>>, vector<1x4x2xbf16>
    %185 = vector.shape_cast %184 : vector<1x4x2xbf16> to vector<4x2xbf16>
    %cst_170 = arith.constant dense<0.000000e+00> : vector<4x256xf32>
    %186 = tpu.matmul %185, %158, %cst_170 {dimension_numbers = #tpu.dot_dimension_numbers<[1], [0], [0], [1], [0, 0, 1, 1], [], []>} : vector<4x2xbf16>, vector<2x256xbf16>, vector<4x256xf32> -> vector<4x256xf32>
    %187 = arith.truncf %186 : vector<4x256xf32> to vector<4x256xbf16>
    %c3_171 = arith.constant 3 : index
    %c0_172 = arith.constant 0 : index
    %c0_173 = arith.constant 0 : index
    %188 = vector.load %arg15[%c3_171, %c0_172, %c0_173] : memref<4x256x256xbf16, #tpu.memory_space<vmem>>, vector<1x256x256xbf16>
    %189 = vector.shape_cast %188 : vector<1x256x256xbf16> to vector<256x256xbf16>
    %cst_174 = arith.constant dense<0.000000e+00> : vector<4x256xf32>
    %190 = tpu.matmul %187, %189, %cst_174 {dimension_numbers = #tpu.dot_dimension_numbers<[1], [0], [0], [1], [0, 0, 1, 1], [], []>} : vector<4x256xbf16>, vector<256x256xbf16>, vector<4x256xf32> -> vector<4x256xf32>
    %191 = arith.addf %183, %190 : vector<4x256xf32>
    %c0_175 = arith.constant 0 : index
    %c0_176 = arith.constant 0 : index
    %192 = vector.load %arg16[%c0_175, %c0_176] : memref<1x256xf32, #tpu.memory_space<vmem>>, vector<1x256xf32>
    %193 = vector.broadcast %192 : vector<1x256xf32> to vector<4x256xf32>
    %194 = arith.addf %191, %193 : vector<4x256xf32>
    %cst_177 = arith.constant 0.000000e+00 : f32
    %195 = vector.broadcast %cst_177 : f32 to vector<4x256xf32>
    %196 = arith.maximumf %194, %195 : vector<4x256xf32>
    %197 = arith.truncf %196 : vector<4x256xf32> to vector<4x256xbf16>
    %cst_178 = arith.constant 0.000000e+00 : f32
    %198 = vector.broadcast %cst_178 : f32 to vector<8x256xf32>
    %c0_179 = arith.constant 0 : index
    %c0_180 = arith.constant 0 : index
    %c0_181 = arith.constant 0 : index
    %199 = vector.load %arg17[%c0_179, %c0_180, %c0_181] : memref<4x8x4xbf16, #tpu.memory_space<vmem>>, vector<1x8x4xbf16>
    %200 = vector.shape_cast %199 : vector<1x8x4xbf16> to vector<8x4xbf16>
    %cst_182 = arith.constant dense<0.000000e+00> : vector<8x256xf32>
    %201 = tpu.matmul %200, %197, %cst_182 {dimension_numbers = #tpu.dot_dimension_numbers<[1], [0], [0], [1], [0, 0, 1, 1], [], []>} : vector<8x4xbf16>, vector<4x256xbf16>, vector<8x256xf32> -> vector<8x256xf32>
    %202 = arith.truncf %201 : vector<8x256xf32> to vector<8x256xbf16>
    %c0_183 = arith.constant 0 : index
    %c0_184 = arith.constant 0 : index
    %c0_185 = arith.constant 0 : index
    %203 = vector.load %arg18[%c0_183, %c0_184, %c0_185] : memref<4x256x256xbf16, #tpu.memory_space<vmem>>, vector<1x256x256xbf16>
    %204 = vector.shape_cast %203 : vector<1x256x256xbf16> to vector<256x256xbf16>
    %cst_186 = arith.constant dense<0.000000e+00> : vector<8x256xf32>
    %205 = tpu.matmul %202, %204, %cst_186 {dimension_numbers = #tpu.dot_dimension_numbers<[1], [0], [0], [1], [0, 0, 1, 1], [], []>} : vector<8x256xbf16>, vector<256x256xbf16>, vector<8x256xf32> -> vector<8x256xf32>
    %206 = arith.addf %198, %205 : vector<8x256xf32>
    %c1_187 = arith.constant 1 : index
    %c0_188 = arith.constant 0 : index
    %c0_189 = arith.constant 0 : index
    %207 = vector.load %arg17[%c1_187, %c0_188, %c0_189] : memref<4x8x4xbf16, #tpu.memory_space<vmem>>, vector<1x8x4xbf16>
    %208 = vector.shape_cast %207 : vector<1x8x4xbf16> to vector<8x4xbf16>
    %cst_190 = arith.constant dense<0.000000e+00> : vector<8x256xf32>
    %209 = tpu.matmul %208, %197, %cst_190 {dimension_numbers = #tpu.dot_dimension_numbers<[1], [0], [0], [1], [0, 0, 1, 1], [], []>} : vector<8x4xbf16>, vector<4x256xbf16>, vector<8x256xf32> -> vector<8x256xf32>
    %210 = arith.truncf %209 : vector<8x256xf32> to vector<8x256xbf16>
    %c1_191 = arith.constant 1 : index
    %c0_192 = arith.constant 0 : index
    %c0_193 = arith.constant 0 : index
    %211 = vector.load %arg18[%c1_191, %c0_192, %c0_193] : memref<4x256x256xbf16, #tpu.memory_space<vmem>>, vector<1x256x256xbf16>
    %212 = vector.shape_cast %211 : vector<1x256x256xbf16> to vector<256x256xbf16>
    %cst_194 = arith.constant dense<0.000000e+00> : vector<8x256xf32>
    %213 = tpu.matmul %210, %212, %cst_194 {dimension_numbers = #tpu.dot_dimension_numbers<[1], [0], [0], [1], [0, 0, 1, 1], [], []>} : vector<8x256xbf16>, vector<256x256xbf16>, vector<8x256xf32> -> vector<8x256xf32>
    %214 = arith.addf %206, %213 : vector<8x256xf32>
    %c2_195 = arith.constant 2 : index
    %c0_196 = arith.constant 0 : index
    %c0_197 = arith.constant 0 : index
    %215 = vector.load %arg17[%c2_195, %c0_196, %c0_197] : memref<4x8x4xbf16, #tpu.memory_space<vmem>>, vector<1x8x4xbf16>
    %216 = vector.shape_cast %215 : vector<1x8x4xbf16> to vector<8x4xbf16>
    %cst_198 = arith.constant dense<0.000000e+00> : vector<8x256xf32>
    %217 = tpu.matmul %216, %197, %cst_198 {dimension_numbers = #tpu.dot_dimension_numbers<[1], [0], [0], [1], [0, 0, 1, 1], [], []>} : vector<8x4xbf16>, vector<4x256xbf16>, vector<8x256xf32> -> vector<8x256xf32>
    %218 = arith.truncf %217 : vector<8x256xf32> to vector<8x256xbf16>
    %c2_199 = arith.constant 2 : index
    %c0_200 = arith.constant 0 : index
    %c0_201 = arith.constant 0 : index
    %219 = vector.load %arg18[%c2_199, %c0_200, %c0_201] : memref<4x256x256xbf16, #tpu.memory_space<vmem>>, vector<1x256x256xbf16>
    %220 = vector.shape_cast %219 : vector<1x256x256xbf16> to vector<256x256xbf16>
    %cst_202 = arith.constant dense<0.000000e+00> : vector<8x256xf32>
    %221 = tpu.matmul %218, %220, %cst_202 {dimension_numbers = #tpu.dot_dimension_numbers<[1], [0], [0], [1], [0, 0, 1, 1], [], []>} : vector<8x256xbf16>, vector<256x256xbf16>, vector<8x256xf32> -> vector<8x256xf32>
    %222 = arith.addf %214, %221 : vector<8x256xf32>
    %c3_203 = arith.constant 3 : index
    %c0_204 = arith.constant 0 : index
    %c0_205 = arith.constant 0 : index
    %223 = vector.load %arg17[%c3_203, %c0_204, %c0_205] : memref<4x8x4xbf16, #tpu.memory_space<vmem>>, vector<1x8x4xbf16>
    %224 = vector.shape_cast %223 : vector<1x8x4xbf16> to vector<8x4xbf16>
    %cst_206 = arith.constant dense<0.000000e+00> : vector<8x256xf32>
    %225 = tpu.matmul %224, %197, %cst_206 {dimension_numbers = #tpu.dot_dimension_numbers<[1], [0], [0], [1], [0, 0, 1, 1], [], []>} : vector<8x4xbf16>, vector<4x256xbf16>, vector<8x256xf32> -> vector<8x256xf32>
    %226 = arith.truncf %225 : vector<8x256xf32> to vector<8x256xbf16>
    %c3_207 = arith.constant 3 : index
    %c0_208 = arith.constant 0 : index
    %c0_209 = arith.constant 0 : index
    %227 = vector.load %arg18[%c3_207, %c0_208, %c0_209] : memref<4x256x256xbf16, #tpu.memory_space<vmem>>, vector<1x256x256xbf16>
    %228 = vector.shape_cast %227 : vector<1x256x256xbf16> to vector<256x256xbf16>
    %cst_210 = arith.constant dense<0.000000e+00> : vector<8x256xf32>
    %229 = tpu.matmul %226, %228, %cst_210 {dimension_numbers = #tpu.dot_dimension_numbers<[1], [0], [0], [1], [0, 0, 1, 1], [], []>} : vector<8x256xbf16>, vector<256x256xbf16>, vector<8x256xf32> -> vector<8x256xf32>
    %230 = arith.addf %222, %229 : vector<8x256xf32>
    %c0_211 = arith.constant 0 : index
    %c0_212 = arith.constant 0 : index
    %231 = vector.load %arg19[%c0_211, %c0_212] : memref<1x256xf32, #tpu.memory_space<vmem>>, vector<1x256xf32>
    %232 = vector.broadcast %231 : vector<1x256xf32> to vector<8x256xf32>
    %233 = arith.addf %230, %232 : vector<8x256xf32>
    %cst_213 = arith.constant 0.000000e+00 : f32
    %234 = vector.broadcast %cst_213 : f32 to vector<8x256xf32>
    %235 = arith.maximumf %233, %234 : vector<8x256xf32>
    %236 = arith.truncf %235 : vector<8x256xf32> to vector<8x256xbf16>
    %cst_214 = arith.constant 0.000000e+00 : f32
    %237 = vector.broadcast %cst_214 : f32 to vector<16x256xf32>
    %c0_215 = arith.constant 0 : index
    %c0_216 = arith.constant 0 : index
    %c0_217 = arith.constant 0 : index
    %238 = vector.load %arg20[%c0_215, %c0_216, %c0_217] : memref<4x16x8xbf16, #tpu.memory_space<vmem>>, vector<1x16x8xbf16>
    %239 = vector.shape_cast %238 : vector<1x16x8xbf16> to vector<16x8xbf16>
    %cst_218 = arith.constant dense<0.000000e+00> : vector<16x256xf32>
    %240 = tpu.matmul %239, %236, %cst_218 {dimension_numbers = #tpu.dot_dimension_numbers<[1], [0], [0], [1], [0, 0, 1, 1], [], []>} : vector<16x8xbf16>, vector<8x256xbf16>, vector<16x256xf32> -> vector<16x256xf32>
    %241 = arith.truncf %240 : vector<16x256xf32> to vector<16x256xbf16>
    %c0_219 = arith.constant 0 : index
    %c0_220 = arith.constant 0 : index
    %c0_221 = arith.constant 0 : index
    %242 = vector.load %arg21[%c0_219, %c0_220, %c0_221] : memref<4x256x256xbf16, #tpu.memory_space<vmem>>, vector<1x256x256xbf16>
    %243 = vector.shape_cast %242 : vector<1x256x256xbf16> to vector<256x256xbf16>
    %cst_222 = arith.constant dense<0.000000e+00> : vector<16x256xf32>
    %244 = tpu.matmul %241, %243, %cst_222 {dimension_numbers = #tpu.dot_dimension_numbers<[1], [0], [0], [1], [0, 0, 1, 1], [], []>} : vector<16x256xbf16>, vector<256x256xbf16>, vector<16x256xf32> -> vector<16x256xf32>
    %245 = arith.addf %237, %244 : vector<16x256xf32>
    %c1_223 = arith.constant 1 : index
    %c0_224 = arith.constant 0 : index
    %c0_225 = arith.constant 0 : index
    %246 = vector.load %arg20[%c1_223, %c0_224, %c0_225] : memref<4x16x8xbf16, #tpu.memory_space<vmem>>, vector<1x16x8xbf16>
    %247 = vector.shape_cast %246 : vector<1x16x8xbf16> to vector<16x8xbf16>
    %cst_226 = arith.constant dense<0.000000e+00> : vector<16x256xf32>
    %248 = tpu.matmul %247, %236, %cst_226 {dimension_numbers = #tpu.dot_dimension_numbers<[1], [0], [0], [1], [0, 0, 1, 1], [], []>} : vector<16x8xbf16>, vector<8x256xbf16>, vector<16x256xf32> -> vector<16x256xf32>
    %249 = arith.truncf %248 : vector<16x256xf32> to vector<16x256xbf16>
    %c1_227 = arith.constant 1 : index
    %c0_228 = arith.constant 0 : index
    %c0_229 = arith.constant 0 : index
    %250 = vector.load %arg21[%c1_227, %c0_228, %c0_229] : memref<4x256x256xbf16, #tpu.memory_space<vmem>>, vector<1x256x256xbf16>
    %251 = vector.shape_cast %250 : vector<1x256x256xbf16> to vector<256x256xbf16>
    %cst_230 = arith.constant dense<0.000000e+00> : vector<16x256xf32>
    %252 = tpu.matmul %249, %251, %cst_230 {dimension_numbers = #tpu.dot_dimension_numbers<[1], [0], [0], [1], [0, 0, 1, 1], [], []>} : vector<16x256xbf16>, vector<256x256xbf16>, vector<16x256xf32> -> vector<16x256xf32>
    %253 = arith.addf %245, %252 : vector<16x256xf32>
    %c2_231 = arith.constant 2 : index
    %c0_232 = arith.constant 0 : index
    %c0_233 = arith.constant 0 : index
    %254 = vector.load %arg20[%c2_231, %c0_232, %c0_233] : memref<4x16x8xbf16, #tpu.memory_space<vmem>>, vector<1x16x8xbf16>
    %255 = vector.shape_cast %254 : vector<1x16x8xbf16> to vector<16x8xbf16>
    %cst_234 = arith.constant dense<0.000000e+00> : vector<16x256xf32>
    %256 = tpu.matmul %255, %236, %cst_234 {dimension_numbers = #tpu.dot_dimension_numbers<[1], [0], [0], [1], [0, 0, 1, 1], [], []>} : vector<16x8xbf16>, vector<8x256xbf16>, vector<16x256xf32> -> vector<16x256xf32>
    %257 = arith.truncf %256 : vector<16x256xf32> to vector<16x256xbf16>
    %c2_235 = arith.constant 2 : index
    %c0_236 = arith.constant 0 : index
    %c0_237 = arith.constant 0 : index
    %258 = vector.load %arg21[%c2_235, %c0_236, %c0_237] : memref<4x256x256xbf16, #tpu.memory_space<vmem>>, vector<1x256x256xbf16>
    %259 = vector.shape_cast %258 : vector<1x256x256xbf16> to vector<256x256xbf16>
    %cst_238 = arith.constant dense<0.000000e+00> : vector<16x256xf32>
    %260 = tpu.matmul %257, %259, %cst_238 {dimension_numbers = #tpu.dot_dimension_numbers<[1], [0], [0], [1], [0, 0, 1, 1], [], []>} : vector<16x256xbf16>, vector<256x256xbf16>, vector<16x256xf32> -> vector<16x256xf32>
    %261 = arith.addf %253, %260 : vector<16x256xf32>
    %c3_239 = arith.constant 3 : index
    %c0_240 = arith.constant 0 : index
    %c0_241 = arith.constant 0 : index
    %262 = vector.load %arg20[%c3_239, %c0_240, %c0_241] : memref<4x16x8xbf16, #tpu.memory_space<vmem>>, vector<1x16x8xbf16>
    %263 = vector.shape_cast %262 : vector<1x16x8xbf16> to vector<16x8xbf16>
    %cst_242 = arith.constant dense<0.000000e+00> : vector<16x256xf32>
    %264 = tpu.matmul %263, %236, %cst_242 {dimension_numbers = #tpu.dot_dimension_numbers<[1], [0], [0], [1], [0, 0, 1, 1], [], []>} : vector<16x8xbf16>, vector<8x256xbf16>, vector<16x256xf32> -> vector<16x256xf32>
    %265 = arith.truncf %264 : vector<16x256xf32> to vector<16x256xbf16>
    %c3_243 = arith.constant 3 : index
    %c0_244 = arith.constant 0 : index
    %c0_245 = arith.constant 0 : index
    %266 = vector.load %arg21[%c3_243, %c0_244, %c0_245] : memref<4x256x256xbf16, #tpu.memory_space<vmem>>, vector<1x256x256xbf16>
    %267 = vector.shape_cast %266 : vector<1x256x256xbf16> to vector<256x256xbf16>
    %cst_246 = arith.constant dense<0.000000e+00> : vector<16x256xf32>
    %268 = tpu.matmul %265, %267, %cst_246 {dimension_numbers = #tpu.dot_dimension_numbers<[1], [0], [0], [1], [0, 0, 1, 1], [], []>} : vector<16x256xbf16>, vector<256x256xbf16>, vector<16x256xf32> -> vector<16x256xf32>
    %269 = arith.addf %261, %268 : vector<16x256xf32>
    %c0_247 = arith.constant 0 : index
    %c0_248 = arith.constant 0 : index
    %270 = vector.load %arg22[%c0_247, %c0_248] : memref<1x256xf32, #tpu.memory_space<vmem>>, vector<1x256xf32>
    %271 = vector.broadcast %270 : vector<1x256xf32> to vector<16x256xf32>
    %272 = arith.addf %269, %271 : vector<16x256xf32>
    %cst_249 = arith.constant 0.000000e+00 : f32
    %273 = vector.broadcast %cst_249 : f32 to vector<16x256xf32>
    %274 = arith.maximumf %272, %273 : vector<16x256xf32>
    %275 = arith.truncf %274 : vector<16x256xf32> to vector<16x256xbf16>
    %cst_250 = arith.constant 0.000000e+00 : f32
    %276 = vector.broadcast %cst_250 : f32 to vector<32x96xf32>
    %c0_251 = arith.constant 0 : index
    %c0_252 = arith.constant 0 : index
    %c0_253 = arith.constant 0 : index
    %277 = vector.load %arg23[%c0_251, %c0_252, %c0_253] : memref<4x32x16xbf16, #tpu.memory_space<vmem>>, vector<1x32x16xbf16>
    %278 = vector.shape_cast %277 : vector<1x32x16xbf16> to vector<32x16xbf16>
    %cst_254 = arith.constant dense<0.000000e+00> : vector<32x256xf32>
    %279 = tpu.matmul %278, %275, %cst_254 {dimension_numbers = #tpu.dot_dimension_numbers<[1], [0], [0], [1], [0, 0, 1, 1], [], []>} : vector<32x16xbf16>, vector<16x256xbf16>, vector<32x256xf32> -> vector<32x256xf32>
    %280 = arith.truncf %279 : vector<32x256xf32> to vector<32x256xbf16>
    %c0_255 = arith.constant 0 : index
    %c0_256 = arith.constant 0 : index
    %c0_257 = arith.constant 0 : index
    %281 = vector.load %arg24[%c0_255, %c0_256, %c0_257] : memref<4x256x96xbf16, #tpu.memory_space<vmem>>, vector<1x256x96xbf16>
    %282 = vector.shape_cast %281 : vector<1x256x96xbf16> to vector<256x96xbf16>
    %cst_258 = arith.constant dense<0.000000e+00> : vector<32x96xf32>
    %283 = tpu.matmul %280, %282, %cst_258 {dimension_numbers = #tpu.dot_dimension_numbers<[1], [0], [0], [1], [0, 0, 1, 1], [], []>} : vector<32x256xbf16>, vector<256x96xbf16>, vector<32x96xf32> -> vector<32x96xf32>
    %284 = arith.addf %276, %283 : vector<32x96xf32>
    %c1_259 = arith.constant 1 : index
    %c0_260 = arith.constant 0 : index
    %c0_261 = arith.constant 0 : index
    %285 = vector.load %arg23[%c1_259, %c0_260, %c0_261] : memref<4x32x16xbf16, #tpu.memory_space<vmem>>, vector<1x32x16xbf16>
    %286 = vector.shape_cast %285 : vector<1x32x16xbf16> to vector<32x16xbf16>
    %cst_262 = arith.constant dense<0.000000e+00> : vector<32x256xf32>
    %287 = tpu.matmul %286, %275, %cst_262 {dimension_numbers = #tpu.dot_dimension_numbers<[1], [0], [0], [1], [0, 0, 1, 1], [], []>} : vector<32x16xbf16>, vector<16x256xbf16>, vector<32x256xf32> -> vector<32x256xf32>
    %288 = arith.truncf %287 : vector<32x256xf32> to vector<32x256xbf16>
    %c1_263 = arith.constant 1 : index
    %c0_264 = arith.constant 0 : index
    %c0_265 = arith.constant 0 : index
    %289 = vector.load %arg24[%c1_263, %c0_264, %c0_265] : memref<4x256x96xbf16, #tpu.memory_space<vmem>>, vector<1x256x96xbf16>
    %290 = vector.shape_cast %289 : vector<1x256x96xbf16> to vector<256x96xbf16>
    %cst_266 = arith.constant dense<0.000000e+00> : vector<32x96xf32>
    %291 = tpu.matmul %288, %290, %cst_266 {dimension_numbers = #tpu.dot_dimension_numbers<[1], [0], [0], [1], [0, 0, 1, 1], [], []>} : vector<32x256xbf16>, vector<256x96xbf16>, vector<32x96xf32> -> vector<32x96xf32>
    %292 = arith.addf %284, %291 : vector<32x96xf32>
    %c2_267 = arith.constant 2 : index
    %c0_268 = arith.constant 0 : index
    %c0_269 = arith.constant 0 : index
    %293 = vector.load %arg23[%c2_267, %c0_268, %c0_269] : memref<4x32x16xbf16, #tpu.memory_space<vmem>>, vector<1x32x16xbf16>
    %294 = vector.shape_cast %293 : vector<1x32x16xbf16> to vector<32x16xbf16>
    %cst_270 = arith.constant dense<0.000000e+00> : vector<32x256xf32>
    %295 = tpu.matmul %294, %275, %cst_270 {dimension_numbers = #tpu.dot_dimension_numbers<[1], [0], [0], [1], [0, 0, 1, 1], [], []>} : vector<32x16xbf16>, vector<16x256xbf16>, vector<32x256xf32> -> vector<32x256xf32>
    %296 = arith.truncf %295 : vector<32x256xf32> to vector<32x256xbf16>
    %c2_271 = arith.constant 2 : index
    %c0_272 = arith.constant 0 : index
    %c0_273 = arith.constant 0 : index
    %297 = vector.load %arg24[%c2_271, %c0_272, %c0_273] : memref<4x256x96xbf16, #tpu.memory_space<vmem>>, vector<1x256x96xbf16>
    %298 = vector.shape_cast %297 : vector<1x256x96xbf16> to vector<256x96xbf16>
    %cst_274 = arith.constant dense<0.000000e+00> : vector<32x96xf32>
    %299 = tpu.matmul %296, %298, %cst_274 {dimension_numbers = #tpu.dot_dimension_numbers<[1], [0], [0], [1], [0, 0, 1, 1], [], []>} : vector<32x256xbf16>, vector<256x96xbf16>, vector<32x96xf32> -> vector<32x96xf32>
    %300 = arith.addf %292, %299 : vector<32x96xf32>
    %c3_275 = arith.constant 3 : index
    %c0_276 = arith.constant 0 : index
    %c0_277 = arith.constant 0 : index
    %301 = vector.load %arg23[%c3_275, %c0_276, %c0_277] : memref<4x32x16xbf16, #tpu.memory_space<vmem>>, vector<1x32x16xbf16>
    %302 = vector.shape_cast %301 : vector<1x32x16xbf16> to vector<32x16xbf16>
    %cst_278 = arith.constant dense<0.000000e+00> : vector<32x256xf32>
    %303 = tpu.matmul %302, %275, %cst_278 {dimension_numbers = #tpu.dot_dimension_numbers<[1], [0], [0], [1], [0, 0, 1, 1], [], []>} : vector<32x16xbf16>, vector<16x256xbf16>, vector<32x256xf32> -> vector<32x256xf32>
    %304 = arith.truncf %303 : vector<32x256xf32> to vector<32x256xbf16>
    %c3_279 = arith.constant 3 : index
    %c0_280 = arith.constant 0 : index
    %c0_281 = arith.constant 0 : index
    %305 = vector.load %arg24[%c3_279, %c0_280, %c0_281] : memref<4x256x96xbf16, #tpu.memory_space<vmem>>, vector<1x256x96xbf16>
    %306 = vector.shape_cast %305 : vector<1x256x96xbf16> to vector<256x96xbf16>
    %cst_282 = arith.constant dense<0.000000e+00> : vector<32x96xf32>
    %307 = tpu.matmul %304, %306, %cst_282 {dimension_numbers = #tpu.dot_dimension_numbers<[1], [0], [0], [1], [0, 0, 1, 1], [], []>} : vector<32x256xbf16>, vector<256x96xbf16>, vector<32x96xf32> -> vector<32x96xf32>
    %308 = arith.addf %300, %307 : vector<32x96xf32>
    %c0_283 = arith.constant 0 : index
    %c0_284 = arith.constant 0 : index
    %309 = vector.load %arg25[%c0_283, %c0_284] : memref<1x96xf32, #tpu.memory_space<vmem>>, vector<1x96xf32>
    %310 = vector.broadcast %309 : vector<1x96xf32> to vector<32x96xf32>
    %311 = arith.addf %308, %310 : vector<32x96xf32>
    %312 = math.tanh %311 : vector<32x96xf32>
    %c0_285 = arith.constant 0 : index
    %c0_286 = arith.constant 0 : index
    %c0_287 = arith.constant 0 : index
    %313 = vector.load %arg26[%c0_285, %c0_286, %c0_287] : memref<1x32x96xf32, #tpu.memory_space<vmem>>, vector<1x32x96xf32>
    %314 = vector.shape_cast %313 : vector<1x32x96xf32> to vector<32x96xf32>
    %315 = vector.shape_cast %312 : vector<32x96xf32> to vector<1x32x96xf32>
    tpu.vector_store %arg26[%c0_285, %c0_286, %c0_287], %315 {strides = array<i32>} : memref<1x32x96xf32, #tpu.memory_space<vmem>>, vector<1x32x96xf32>,
    return
  }
  func.func @transform_0(%arg0: i32) -> (i32, i32, i32) {
    %c0_i32 = arith.constant 0 : i32
    %c0_i32_0 = arith.constant 0 : i32
    %c0_i32_1 = arith.constant 0 : i32
    return %arg0, %c0_i32, %c0_i32_0 : i32, i32, i32
  }
  func.func @transform_1(%arg0: i32) -> (i32, i32, i32) {
    %c0_i32 = arith.constant 0 : i32
    %c0_i32_0 = arith.constant 0 : i32
    %c0_i32_1 = arith.constant 0 : i32
    %c0_i32_2 = arith.constant 0 : i32
    return %c0_i32, %c0_i32_0, %c0_i32_1 : i32, i32, i32
  }
  func.func @transform_2(%arg0: i32) -> (i32, i32, i32) {
    %c0_i32 = arith.constant 0 : i32
    %c0_i32_0 = arith.constant 0 : i32
    %c0_i32_1 = arith.constant 0 : i32
    %c0_i32_2 = arith.constant 0 : i32
    return %c0_i32, %c0_i32_0, %c0_i32_1 : i32, i32, i32
  }
  func.func @transform_3(%arg0: i32) -> (i32, i32) {
    %c0_i32 = arith.constant 0 : i32
    %c0_i32_0 = arith.constant 0 : i32
    %c0_i32_1 = arith.constant 0 : i32
    return %c0_i32, %c0_i32_0 : i32, i32
  }
  func.func @transform_4(%arg0: i32) -> (i32, i32, i32) {
    %c0_i32 = arith.constant 0 : i32
    %c0_i32_0 = arith.constant 0 : i32
    %c0_i32_1 = arith.constant 0 : i32
    %c0_i32_2 = arith.constant 0 : i32
    return %c0_i32, %c0_i32_0, %c0_i32_1 : i32, i32, i32
  }
  func.func @transform_5(%arg0: i32) -> (i32, i32, i32) {
    %c0_i32 = arith.constant 0 : i32
    %c0_i32_0 = arith.constant 0 : i32
    %c0_i32_1 = arith.constant 0 : i32
    %c0_i32_2 = arith.constant 0 : i32
    return %c0_i32, %c0_i32_0, %c0_i32_1 : i32, i32, i32
  }
  func.func @transform_6(%arg0: i32) -> (i32, i32) {
    %c0_i32 = arith.constant 0 : i32
    %c0_i32_0 = arith.constant 0 : i32
    %c0_i32_1 = arith.constant 0 : i32
    return %c0_i32, %c0_i32_0 : i32, i32
  }
  func.func @transform_7(%arg0: i32) -> (i32, i32, i32) {
    %c0_i32 = arith.constant 0 : i32
    %c0_i32_0 = arith.constant 0 : i32
    %c0_i32_1 = arith.constant 0 : i32
    %c0_i32_2 = arith.constant 0 : i32
    return %c0_i32, %c0_i32_0, %c0_i32_1 : i32, i32, i32
  }
  func.func @transform_8(%arg0: i32) -> (i32, i32, i32) {
    %c0_i32 = arith.constant 0 : i32
    %c0_i32_0 = arith.constant 0 : i32
    %c0_i32_1 = arith.constant 0 : i32
    %c0_i32_2 = arith.constant 0 : i32
    return %c0_i32, %c0_i32_0, %c0_i32_1 : i32, i32, i32
  }
  func.func @transform_9(%arg0: i32) -> (i32, i32) {
    %c0_i32 = arith.constant 0 : i32
    %c0_i32_0 = arith.constant 0 : i32
    %c0_i32_1 = arith.constant 0 : i32
    return %c0_i32, %c0_i32_0 : i32, i32
  }
  func.func @transform_10(%arg0: i32) -> (i32, i32, i32) {
    %c0_i32 = arith.constant 0 : i32
    %c0_i32_0 = arith.constant 0 : i32
    %c0_i32_1 = arith.constant 0 : i32
    %c0_i32_2 = arith.constant 0 : i32
    return %c0_i32, %c0_i32_0, %c0_i32_1 : i32, i32, i32
  }
  func.func @transform_11(%arg0: i32) -> (i32, i32, i32) {
    %c0_i32 = arith.constant 0 : i32
    %c0_i32_0 = arith.constant 0 : i32
    %c0_i32_1 = arith.constant 0 : i32
    %c0_i32_2 = arith.constant 0 : i32
    return %c0_i32, %c0_i32_0, %c0_i32_1 : i32, i32, i32
  }
  func.func @transform_12(%arg0: i32) -> (i32, i32) {
    %c0_i32 = arith.constant 0 : i32
    %c0_i32_0 = arith.constant 0 : i32
    %c0_i32_1 = arith.constant 0 : i32
    return %c0_i32, %c0_i32_0 : i32, i32
  }
  func.func @transform_13(%arg0: i32) -> (i32, i32, i32) {
    %c0_i32 = arith.constant 0 : i32
    %c0_i32_0 = arith.constant 0 : i32
    %c0_i32_1 = arith.constant 0 : i32
    %c0_i32_2 = arith.constant 0 : i32
    return %c0_i32, %c0_i32_0, %c0_i32_1 : i32, i32, i32
  }
  func.func @transform_14(%arg0: i32) -> (i32, i32, i32) {
    %c0_i32 = arith.constant 0 : i32
    %c0_i32_0 = arith.constant 0 : i32
    %c0_i32_1 = arith.constant 0 : i32
    %c0_i32_2 = arith.constant 0 : i32
    return %c0_i32, %c0_i32_0, %c0_i32_1 : i32, i32, i32
  }
  func.func @transform_15(%arg0: i32) -> (i32, i32) {
    %c0_i32 = arith.constant 0 : i32
    %c0_i32_0 = arith.constant 0 : i32
    %c0_i32_1 = arith.constant 0 : i32
    return %c0_i32, %c0_i32_0 : i32, i32
  }
  func.func @transform_16(%arg0: i32) -> (i32, i32, i32) {
    %c0_i32 = arith.constant 0 : i32
    %c0_i32_0 = arith.constant 0 : i32
    %c0_i32_1 = arith.constant 0 : i32
    %c0_i32_2 = arith.constant 0 : i32
    return %c0_i32, %c0_i32_0, %c0_i32_1 : i32, i32, i32
  }
  func.func @transform_17(%arg0: i32) -> (i32, i32, i32) {
    %c0_i32 = arith.constant 0 : i32
    %c0_i32_0 = arith.constant 0 : i32
    %c0_i32_1 = arith.constant 0 : i32
    %c0_i32_2 = arith.constant 0 : i32
    return %c0_i32, %c0_i32_0, %c0_i32_1 : i32, i32, i32
  }
  func.func @transform_18(%arg0: i32) -> (i32, i32) {
    %c0_i32 = arith.constant 0 : i32
    %c0_i32_0 = arith.constant 0 : i32
    %c0_i32_1 = arith.constant 0 : i32
    return %c0_i32, %c0_i32_0 : i32, i32
  }
  func.func @transform_19(%arg0: i32) -> (i32, i32, i32) {
    %c0_i32 = arith.constant 0 : i32
    %c0_i32_0 = arith.constant 0 : i32
    %c0_i32_1 = arith.constant 0 : i32
    %c0_i32_2 = arith.constant 0 : i32
    return %c0_i32, %c0_i32_0, %c0_i32_1 : i32, i32, i32
  }
  func.func @transform_20(%arg0: i32) -> (i32, i32, i32) {
    %c0_i32 = arith.constant 0 : i32
    %c0_i32_0 = arith.constant 0 : i32
    %c0_i32_1 = arith.constant 0 : i32
    %c0_i32_2 = arith.constant 0 : i32
    return %c0_i32, %c0_i32_0, %c0_i32_1 : i32, i32, i32
  }
  func.func @transform_21(%arg0: i32) -> (i32, i32) {
    %c0_i32 = arith.constant 0 : i32
    %c0_i32_0 = arith.constant 0 : i32
    %c0_i32_1 = arith.constant 0 : i32
    return %c0_i32, %c0_i32_0 : i32, i32
  }
  func.func @transform_22(%arg0: i32) -> (i32, i32, i32) {
    %c0_i32 = arith.constant 0 : i32
    %c0_i32_0 = arith.constant 0 : i32
    %c0_i32_1 = arith.constant 0 : i32
    %c0_i32_2 = arith.constant 0 : i32
    return %c0_i32, %c0_i32_0, %c0_i32_1 : i32, i32, i32
  }
  func.func @transform_23(%arg0: i32) -> (i32, i32, i32) {
    %c0_i32 = arith.constant 0 : i32
    %c0_i32_0 = arith.constant 0 : i32
    %c0_i32_1 = arith.constant 0 : i32
    %c0_i32_2 = arith.constant 0 : i32
    return %c0_i32, %c0_i32_0, %c0_i32_1 : i32, i32, i32
  }
  func.func @transform_24(%arg0: i32) -> (i32, i32) {
    %c0_i32 = arith.constant 0 : i32
    %c0_i32_0 = arith.constant 0 : i32
    %c0_i32_1 = arith.constant 0 : i32
    return %c0_i32, %c0_i32_0 : i32, i32
  }
  func.func @transform_25(%arg0: i32) -> (i32, i32, i32) {
    %c0_i32 = arith.constant 0 : i32
    %c0_i32_0 = arith.constant 0 : i32
    %c0_i32_1 = arith.constant 0 : i32
    return %arg0, %c0_i32, %c0_i32_0 : i32, i32, i32
  }
}

</mosaic_0001>

<bundles_post_ra>
// kernel: _lambda_.1
= control target key start
LH: loop header
LB: loop body
LE: loop exit
PB: predicated region body
PF: predicated region fallthrough
CT: control target
= control target key end

     0   :  { %s12928_s29 = smov 0   ;;  %s16046_s0 = inlined_call_operand.vmem [shape: f32[2,32,96], index: 0, kind: input, shape index: {}]   ;;  %s16047_s1 = inlined_call_operand.vmem [shape: bf16[4,16,32], index: 1, kind: input, shape index: {}]   ;;  %s16048_s2 = inlined_call_operand.vmem [shape: bf16[4,96,256], index: 2, kind: input, shape index: {}]   ;;  %s16049_s3 = inlined_call_operand.vmem [shape: f32[1,256], index: 3, kind: input, shape index: {}]   ;;  %s16050_s4 = inlined_call_operand.vmem [shape: bf16[4,8,16], index: 4, kind: input, shape index: {}]   ;;  %s16051_s5 = inlined_call_operand.vmem [shape: bf16[4,256,256], index: 5, kind: input, shape index: {}]   ;;  %s16052_s6 = inlined_call_operand.vmem [shape: f32[1,256], index: 6, kind: input, shape index: {}]   ;;  %s16053_s7 = inlined_call_operand.vmem [shape: bf16[4,4,8], index: 7, kind: input, shape index: {}]   ;;  %s16054_s8 = inlined_call_operand.vmem [shape: bf16[4,256,256], index: 8, kind: input, shape index: {}]   ;;  %s16055_s9 = inlined_call_operand.vmem [shape: f32[1,256], index: 9, kind: input, shape index: {}]   ;;  %s16056_s10 = inlined_call_operand.vmem [shape: bf16[4,2,4], index: 10, kind: input, shape index: {}]   ;;  %s16057_s11 = inlined_call_operand.vmem [shape: bf16[4,256,256], index: 11, kind: input, shape index: {}]   ;;  %s16058_s12 = inlined_call_operand.vmem [shape: f32[1,256], index: 12, kind: input, shape index: {}]   ;;  %s16059_s13 = inlined_call_operand.vmem [shape: bf16[4,4,2], index: 13, kind: input, shape index: {}]   ;;  %s16060_s14 = inlined_call_operand.vmem [shape: bf16[4,256,256], index: 14, kind: input, shape index: {}]   ;;  %s16061_s15 = inlined_call_operand.vmem [shape: f32[1,256], index: 15, kind: input, shape index: {}]   ;;  %s16062_s16 = inlined_call_operand.vmem [shape: bf16[4,8,4], index: 16, kind: input, shape index: {}]   ;;  %s16063_s17 = inlined_call_operand.vmem [shape: bf16[4,256,256], index: 17, kind: input, shape index: {}]   ;;  %s16064_s18 = inlined_call_operand.vmem [shape: f32[1,256], index: 18, kind: input, shape index: {}]   ;;  %s16065_s19 = inlined_call_operand.vmem [shape: bf16[4,16,8], index: 19, kind: input, shape index: {}]   ;;  %s16066_s20 = inlined_call_operand.vmem [shape: bf16[4,256,256], index: 20, kind: input, shape index: {}]   ;;  %s16067_s21 = inlined_call_operand.vmem [shape: f32[1,256], index: 21, kind: input, shape index: {}]   ;;  %s16068_s22 = inlined_call_operand.vmem [shape: bf16[4,32,16], index: 22, kind: input, shape index: {}]   ;;  %s16069_s23 = inlined_call_operand.vmem [shape: bf16[4,256,96], index: 23, kind: input, shape index: {}]   ;;  %s16070_s24 = inlined_call_operand.vmem [shape: f32[1,96], index: 24, kind: input, shape index: {}]   ;;  %s16071_s25 = inlined_call_operand.vmem [shape: f32[2,32,96], index: 25, kind: output, shape index: {}]  }
   0x1   :  { %16082 = sst [smem:[#allocation2_spill]] %s16046_s0 }
   0x2   :  { %16083 = sst [smem:[#allocation3_spill]] %s16047_s1 }
   0x3   :  { %16084 = sst [smem:[#allocation4_spill]] %s16048_s2 }
   0x4   :  { %16085 = sst [smem:[#allocation5_spill]] %s16049_s3 }
   0x5   :  { %16086 = sst [smem:[#allocation6_spill]] %s16050_s4 }
   0x6   :  { %16087 = sst [smem:[#allocation7_spill]] %s16051_s5 }
   0x7   :  { %16088 = sst [smem:[#allocation8_spill]] %s16052_s6 }
   0x8   :  { %16089 = sst [smem:[#allocation9_spill]] %s16053_s7 }
   0x9   :  { %16090 = sst [smem:[#allocation10_spill]] %s16054_s8 }
   0xa   :  { %16091 = sst [smem:[#allocation11_spill]] %s16055_s9 }
   0xb LB: > { %s9567_s2 = sadd.s32 4294967295, %s12793_s29   ;;  %p9571_p0 = scmp.ge.s32.totalorder %s12793_s29, 1  ;;  %s12793_s29 = sphi %s12928_s29, %s35_s29  }
   0xc   : > { %p687_p1 = scmp.lt.s32.totalorder %s12793_s29, 3 }
   0xe   : > { %p688_p2 = pnand %p9571_p0, %p687_p1 }
   0xf   : > { %p755_p3 = scmp.lt.s32.totalorder (!%p688_p2), %s9567_s2, 1  ;;  %v12795_v0 = vmov (!%p688_p2), 0.0   ;;  %vm12796_vm0 = vmmov (!%p688_p2), 0   ;;  %s16092_s3 = sld [smem:[#allocation2_spill]] (!%p688_p2)  ;;  %vm779_vm1 = vcmask (!%p688_p2), 261120   ;;  %v12797_v21 = vmov (!%p688_p2), 0  }
  0x10   : > { %691 = sbr.rel (%p688_p2) target bundleno = 5726 (0x165e), region = 120  ;;  %11416 = vmatprep.subr.bf16.mxu1 (!%p688_p2), %v12795_v0  ;;  %11420 = vmatprep.mubr.msk.bf16.mxu1 (!%p688_p2), %vm12796_vm0, %v12795_v0  ;;  %s16093_s27 = sld [smem:[#allocation3_spill]] (!%p688_p2)  ;;  %vm963_vm2 = vcmask (!%p688_p2), 785408   ;;  %vm1491_vm3 = vcmask (!%p688_p2), 130048   ;;  %vm2644_vm4 = vcmask (!%p688_p2), 1043456   ;;  %vm2640_vm5 = vcmask (!%p688_p2), 64512  }
  0x11   : > { %11408 = vmatprep.subr.bf16.mxu0 (!%p688_p2), %v12795_v0  ;;  %11412 = vmatprep.mubr.msk.bf16.mxu0 (!%p688_p2), %vm12796_vm0, %v12795_v0  ;;  %s16094_s9 = sld [smem:[#allocation4_spill]] (!%p688_p2)  ;;  %s16095_s30 = sld [smem:[#allocation7_spill]] (!%p688_p2)  ;;  %vm3800_vm6 = vcmask (!%p688_p2), 1041408   ;;  %vm3796_vm7 = vcmask (!%p688_p2), 31744   ;;  %vm4956_vm8 = vcmask (!%p688_p2), 1040384   ;;  %vm4952_vm9 = vcmask (!%p688_p2), 15360  }
  0x12   : > { %s16096_s1 = sld [smem:[#allocation5_spill]] (!%p688_p2)  ;;  %s16097_s28 = sld [smem:[#allocation6_spill]] (!%p688_p2) }
  0x16   : > { %v11475_v7 = vld [vmem:[%s16093_s27 + $0x8] sm:$0xff] (!%p688_p2)   ;;  %v11482_v9 = vld [vmem:[%s16093_s27] sm:$0xff] (!%p688_p2)   ;;  %v11495_v49 = vld [vmem:[%s16093_s27 + $0x10] sm:$0xff] (!%p688_p2)  }
  0x17   : > { %s16104_s2 = smov (!%p755_p3, %s9567_s2), 1  ;;  %v11478_v8 = vld [vmem:[%s16094_s9 + $0x64] ss:$8 sps:$4 sm:$0xff]   ;;  %v11476_v10 = vld [vmem:[%s16094_s9 + $0x60] ss:$8 sps:$4 sm:$0xff]   ;;  %v11496_v51 = vld [vmem:[%s16093_s27 + $0x18] sm:$0xff]  }
  0x18   : > { %s16078_s6 = sshll.u32 %s16104_s2, 5  ;;  %v11481_v11 = vld [vmem:[%s16094_s9 + $0x74] ss:$8 sps:$4 sm:$0xff]   ;;  %v11479_v12 = vld [vmem:[%s16094_s9 + $0x70] ss:$8 sps:$4 sm:$0xff]   ;;  %s16101_s27 = sld [smem:[#allocation11_spill]] }
  0x19   : > { %s759_s26 = scalar_lea.vmem %s16092_s3, %s16078_s6  ;;  %v11485_v13 = vld [vmem:[%s16094_s9 + $0x84] ss:$8 sps:$4 sm:$0xff]   ;;  %v11483_v14 = vld [vmem:[%s16094_s9 + $0x80] ss:$8 sps:$4 sm:$0xff]   ;;  %v11488_v15 = vld [vmem:[%s16094_s9 + $0x94] ss:$8 sps:$4 sm:$0xff]  }
  0x1a   : > { %v766_v1 = vld [vmem:[%s759_s26] sm:$0xff]  ;;  %v767_v2 = vld [vmem:[%s759_s26 + $0x8] sm:$0xff]  ;;  %v768_v3 = vld [vmem:[%s759_s26 + $0x10] sm:$0xff]  ;;  %s16100_s6 = sld [smem:[#allocation9_spill]]  ;;  %s16102_s0 = sshll.u32 %s16104_s2, 5 }
  0x1b   : > { %v12950_v4 = vpack.c.bf16 %v767_v2, %v766_v1  ;;  %v769_v5 = vld [vmem:[%s759_s26 + $0x18] sm:$0xff]  ;;  %v11491_v17 = vld [vmem:[%s16094_s9 + $0xa4] ss:$8 sps:$4 sm:$0xff]   ;;  %v11489_v18 = vld [vmem:[%s16094_s9 + $0xa0] ss:$8 sps:$4 sm:$0xff]  }
  0x1c   : > { %v12953_v6 = vpack.c.bf16 %v769_v5, %v768_v3  ;;  %v11486_v16 = vld [vmem:[%s16094_s9 + $0x90] ss:$8 sps:$4 sm:$0xff]   ;;  %v11494_v19 = vld [vmem:[%s16094_s9 + $0xb4] ss:$8 sps:$4 sm:$0xff]   ;;  %v11497_v22 = vld [vmem:[%s16094_s9] ss:$8 sps:$4 sm:$0xff]  }
  0x1d   : > { %11417 = vmatpush3.bf16.msra.mxu1 %v12950_v4  ;;  %11409 = vmatpush3.bf16.msra.mxu0 %v12950_v4  ;;  %v11492_v20 = vld [vmem:[%s16094_s9 + $0xb0] ss:$8 sps:$4 sm:$0xff]   ;;  %v11499_v23 = vld [vmem:[%s16094_s9 + $0x4] ss:$8 sps:$4 sm:$0xff]   ;;  %v11502_v24 = vld [vmem:[%s16094_s9 + $0x14] ss:$8 sps:$4 sm:$0xff]  }
  0x1e   : > { %11418 = vmatprep.subr.bf16.mxu1 %v12795_v0  ;;  %11410 = vmatprep.subr.bf16.mxu0 %v12795_v0  ;;  %v11500_v25 = vld [vmem:[%s16094_s9 + $0x10] ss:$8 sps:$4 sm:$0xff]   ;;  %v11505_v26 = vld [vmem:[%s16094_s9 + $0x24] ss:$8 sps:$4 sm:$0xff]   ;;  %v11503_v27 = vld [vmem:[%s16094_s9 + $0x20] ss:$8 sps:$4 sm:$0xff]  }
  0x1f   : > { %v11508_v28 = vld [vmem:[%s16094_s9 + $0x34] ss:$8 sps:$4 sm:$0xff]   ;;  %v11506_v29 = vld [vmem:[%s16094_s9 + $0x30] ss:$8 sps:$4 sm:$0xff]   ;;  %v11511_v30 = vld [vmem:[%s16094_s9 + $0x44] ss:$8 sps:$4 sm:$0xff]  }
  0x20   : > { %v11509_v31 = vld [vmem:[%s16094_s9 + $0x40] ss:$8 sps:$4 sm:$0xff]   ;;  %v11514_v32 = vld [vmem:[%s16094_s9 + $0x54] ss:$8 sps:$4 sm:$0xff]   ;;  %v11512_v33 = vld [vmem:[%s16094_s9 + $0x50] ss:$8 sps:$4 sm:$0xff]  }
  0x21   : > { %11419 = vmatpush3.bf16.msra.mxu1 %v12953_v6  ;;  %11411 = vmatpush3.bf16.msra.mxu0 %v12953_v6  ;;  %v11517_v34 = vld [vmem:[%s16094_s9 + $0xc4] ss:$8 sps:$4 sm:$0xff]   ;;  %v11515_v39 = vld [vmem:[%s16094_s9 + $0xc0] ss:$8 sps:$4 sm:$0xff]   ;;  %v11520_v42 = vld [vmem:[%s16094_s9 + $0xd4] ss:$8 sps:$4 sm:$0xff]  }
  0x22   : > { %967 = vmatprep.subr.bf16.mxu1 %v11478_v8  ;;  %1073 = vmatprep.subr.bf16.mxu0 %v11499_v23  ;;  %v11518_v47 = vld [vmem:[%s16094_s9 + $0xd0] ss:$8 sps:$4 sm:$0xff]   ;;  %v11523_v48 = vld [vmem:[%s16094_s9 + $0xe4] ss:$8 sps:$4 sm:$0xff]   ;;  %v11521_v50 = vld [vmem:[%s16094_s9 + $0xe0] ss:$8 sps:$4 sm:$0xff]  }
  0x23   : > { %v11526_v52 = vld [vmem:[%s16094_s9 + $0xf4] ss:$8 sps:$4 sm:$0xff]   ;;  %v11524_v53 = vld [vmem:[%s16094_s9 + $0xf0] ss:$8 sps:$4 sm:$0xff]   ;;  %v11529_v54 = vld [vmem:[%s16094_s9 + $0x104] ss:$8 sps:$4 sm:$0xff]  }
  0x24   : > { %11421 = vmatmul.mubr.msk.bf16.vlgmr.msra.gmra.mrb[0].mxu1 %vm779_vm1, %v11475_v7  ;;  %11413 = vmatmul.mubr.msk.bf16.vlgmr.msra.gmra.mrb[0].mxu0 %vm779_vm1, %v11482_v9  ;;  %v11527_v55 = vld [vmem:[%s16094_s9 + $0x100] ss:$8 sps:$4 sm:$0xff]   ;;  %v11532_v56 = vld [vmem:[%s16094_s9 + $0x114] ss:$8 sps:$4 sm:$0xff]   ;;  %v11530_v57 = vld [vmem:[%s16094_s9 + $0x110] ss:$8 sps:$4 sm:$0xff]  }
  0x25   : > { %968 = vmatpush1.bf16.msra.mxu1 %v11476_v10  ;;  %999 = vmatprep.mubr.bf16.mxu1 %v12797_v21  ;;  %v11535_v58 = vld [vmem:[%s16094_s9 + $0x124] ss:$8 sps:$4 sm:$0xff]   ;;  %v11533_v2 = vld [vmem:[%s16094_s9 + $0x120] ss:$8 sps:$4 sm:$0xff]   ;;  %v11538_v5 = vld [vmem:[%s16094_s9 + $0x134] ss:$8 sps:$4 sm:$0xff]  }
  0x26   : > { %969 = vmatprep.subr.bf16.mxu1 %v11481_v11  ;;  %1105 = vmatprep.mubr.bf16.mxu0 %v12797_v21  ;;  %v11541_v7 = vld [vmem:[%s16094_s9 + $0x144] ss:$8 sps:$4 sm:$0xff]   ;;  %v11539_v10 = vld [vmem:[%s16094_s9 + $0x140] ss:$8 sps:$4 sm:$0xff]   ;;  %v11556_v23 = vld [vmem:[%s16095_s30 + $0x14] ss:$8 sps:$4 sm:$0xff]  }
  0x27   : > { %1074 = vmatpush1.bf16.msra.mxu0 %v11497_v22  ;;  %v11551_v22 = vld [vmem:[%s16095_s30] ss:$8 sps:$4 sm:$0xff]  }
  0x28   : > { %1075 = vmatprep.subr.bf16.mxu0 %v11502_v24  ;;  %v11554_v24 = vld [vmem:[%s16095_s30 + $0x10] ss:$8 sps:$4 sm:$0xff]  }
  0x29   : > { %970 = vmatpush1.bf16.msra.mxu1 %v11479_v12  ;;  %v11544_v12 = vld [vmem:[%s16094_s9 + $0x154] ss:$8 sps:$4 sm:$0xff]  }
  0x2a   : > { %971 = vmatprep.subr.bf16.mxu1 %v11485_v13 }
  0x2b   : > { %1076 = vmatpush1.bf16.msra.mxu0 %v11500_v25  ;;  %v11559_v25 = vld [vmem:[%s16095_s30 + $0x24] ss:$8 sps:$4 sm:$0xff]  }
  0x2c   : > { %1077 = vmatprep.subr.bf16.mxu0 %v11505_v26  ;;  %v11557_v26 = vld [vmem:[%s16095_s30 + $0x20] ss:$8 sps:$4 sm:$0xff]  }
  0x2d   : > { %972 = vmatpush1.bf16.msra.mxu1 %v11483_v14 }
  0x2e   : > { %973 = vmatprep.subr.bf16.mxu1 %v11488_v15  ;;  %v11542_v15 = vld [vmem:[%s16094_s9 + $0x150] ss:$8 sps:$4 sm:$0xff]  }
  0x2f   : > { %1078 = vmatpush1.bf16.msra.mxu0 %v11503_v27  ;;  %v11562_v27 = vld [vmem:[%s16095_s30 + $0x34] ss:$8 sps:$4 sm:$0xff]  }
  0x30   : > { %1079 = vmatprep.subr.bf16.mxu0 %v11508_v28  ;;  %v11560_v28 = vld [vmem:[%s16095_s30 + $0x30] ss:$8 sps:$4 sm:$0xff]  }
  0x31   : > { %974 = vmatpush1.bf16.msra.mxu1 %v11486_v16  ;;  %v11547_v16 = vld [vmem:[%s16094_s9 + $0x164] ss:$8 sps:$4 sm:$0xff]  }
  0x32   : > { %975 = vmatprep.subr.bf16.mxu1 %v11491_v17  ;;  %v11545_v17 = vld [vmem:[%s16094_s9 + $0x160] ss:$8 sps:$4 sm:$0xff]  }
  0x33   : > { %1080 = vmatpush1.bf16.msra.mxu0 %v11506_v29  ;;  %v11565_v29 = vld [vmem:[%s16095_s30 + $0x44] ss:$8 sps:$4 sm:$0xff]  }
  0x34   : > { %1081 = vmatprep.subr.bf16.mxu0 %v11511_v30  ;;  %v11563_v30 = vld [vmem:[%s16095_s30 + $0x40] ss:$8 sps:$4 sm:$0xff]  }
  0x35   : > { %976 = vmatpush1.bf16.msra.mxu1 %v11489_v18  ;;  %v11550_v18 = vld [vmem:[%s16094_s9 + $0x174] ss:$8 sps:$4 sm:$0xff]  }
  0x36   : > { %977 = vmatprep.subr.bf16.mxu1 %v11494_v19  ;;  %v11548_v19 = vld [vmem:[%s16094_s9 + $0x170] ss:$8 sps:$4 sm:$0xff]  }
  0x37   : > { %1082 = vmatpush1.bf16.msra.mxu0 %v11509_v31  ;;  %v11568_v31 = vld [vmem:[%s16095_s30 + $0x54] ss:$8 sps:$4 sm:$0xff]  }
  0x38   : > { %1083 = vmatprep.subr.bf16.mxu0 %v11514_v32  ;;  %v11566_v32 = vld [vmem:[%s16095_s30 + $0x50] ss:$8 sps:$4 sm:$0xff]  }
  0x39   : > { %978 = vmatpush1.bf16.msra.mxu1 %v11492_v20  ;;  %v11553_v20 = vld [vmem:[%s16095_s30 + $0x4] ss:$8 sps:$4 sm:$0xff]  }
  0x3a   : > { %11424 = vmatprep.subr.bf16.mxu1 %v12795_v0 }
  0x3b   : > { %1084 = vmatpush1.bf16.msra.mxu0 %v11512_v33  ;;  %v11571_v33 = vld [vmem:[%s16095_s30 + $0x64] ss:$8 sps:$4 sm:$0xff]  }
  0x3c   : > { %1245 = vmatprep.subr.bf16.mxu0 %v11517_v34  ;;  %v11569_v34 = vld [vmem:[%s16095_s30 + $0x60] ss:$8 sps:$4 sm:$0xff]  }
  0xf7   : > { %v882_v35 = vpop.f32.mrb[0].mxu1  ;;  %v817_v36 = vpop.f32.mrb[0].mxu0 }
  0xf8   : > { %v11422_v37 = vpop.f32.mrb[1].mxu1  ;;  %v11414_v38 = vpop.f32.mrb[1].mxu0 }
  0xf9   : > { %v885_v40 = vpop.f32.mrb[2].mxu1  ;;  %v820_v41 = vpop.f32.mrb[2].mxu0  ;;  %v11577_v37 = vld [vmem:[%s16095_s30 + $0x84] ss:$8 sps:$4 sm:$0xff]   ;;  %v11575_v38 = vld [vmem:[%s16095_s30 + $0x80] ss:$8 sps:$4 sm:$0xff]  }
  0xfa   : > { %v889_v43 = vpack.c.bf16 %v885_v40, %v882_v35  ;;  %v11423_v44 = vpop.f32.mrb[3].mxu1  ;;  %v824_v45 = vpack.c.bf16 %v820_v41, %v817_v36  ;;  %v11415_v46 = vpop.f32.mrb[3].mxu0  ;;  %v11574_v35 = vld [vmem:[%s16095_s30 + $0x74] ss:$8 sps:$4 sm:$0xff]   ;;  %v11572_v36 = vld [vmem:[%s16095_s30 + $0x70] ss:$8 sps:$4 sm:$0xff]  }
  0xfb   : > { %v11578_v40 = vld [vmem:[%s16095_s30 + $0x90] ss:$8 sps:$4 sm:$0xff]   ;;  %v11583_v41 = vld [vmem:[%s16095_s30 + $0xa4] ss:$8 sps:$4 sm:$0xff]   ;;  %v11587_v46 = vld [vmem:[%s16095_s30 + $0xc0] ss:$8 sps:$4 sm:$0xff]  }
  0xfc   : > { %9606 = vmatmul.mubr.msk.bf16.vlgmr.msra.gmra.mrb[4].mxu1 %vm963_vm2, %v889_v43  ;;  %9619 = vmatmul.mubr.msk.bf16.vlgmr.msra.gmra.mrb[4].mxu0 %vm963_vm2, %v824_v45  ;;  %v11586_v43 = vld [vmem:[%s16095_s30 + $0xb4] ss:$8 sps:$4 sm:$0xff]   ;;  %v11584_v44 = vld [vmem:[%s16095_s30 + $0xb0] ss:$8 sps:$4 sm:$0xff]   ;;  %v11589_v45 = vld [vmem:[%s16095_s30 + $0xc4] ss:$8 sps:$4 sm:$0xff]  }
  0xfd   : > { %11425 = vmatpush3.bf16.msra.mxu1 %v12950_v4  ;;  %11428 = vmatprep.mubr.msk.bf16.mxu1 %vm12796_vm0, %v12795_v0 }
  0xfe   : > { %11426 = vmatprep.subr.bf16.mxu1 %v12795_v0  ;;  %1246 = vmatpush1.bf16.msra.mxu0 %v11515_v39  ;;  %v11580_v39 = vld [vmem:[%s16095_s30 + $0x94] ss:$8 sps:$4 sm:$0xff]  }
  0xff   : > { %1247 = vmatprep.subr.bf16.mxu0 %v11520_v42  ;;  %1277 = vmatprep.mubr.bf16.mxu0 %v12797_v21  ;;  %v11581_v42 = vld [vmem:[%s16095_s30 + $0xa0] ss:$8 sps:$4 sm:$0xff]  }
 0x101   : > { %11427 = vmatpush3.bf16.msra.mxu1 %v12953_v6 }
 0x102   : > { %11432 = vmatprep.subr.bf16.mxu1 %v12795_v0  ;;  %1248 = vmatpush1.bf16.msra.mxu0 %v11518_v47  ;;  %v11592_v47 = vld [vmem:[%s16095_s30 + $0xd4] ss:$8 sps:$4 sm:$0xff]  }
 0x103   : > { %1249 = vmatprep.subr.bf16.mxu0 %v11523_v48  ;;  %v11590_v48 = vld [vmem:[%s16095_s30 + $0xd0] ss:$8 sps:$4 sm:$0xff]  }
 0x104   : > { %11429 = vmatmul.mubr.msk.bf16.vlgmr.msra.gmra.mrb[8].mxu1 %vm779_vm1, %v11495_v49  ;;  %v11595_v49 = vld [vmem:[%s16095_s30 + $0xe4] ss:$8 sps:$4 sm:$0xff]  }
 0x105   : > { %11433 = vmatpush3.bf16.msra.mxu1 %v12950_v4  ;;  %11436 = vmatprep.mubr.msk.bf16.mxu1 %vm12796_vm0, %v12795_v0 }
 0x106   : > { %11434 = vmatprep.subr.bf16.mxu1 %v12795_v0  ;;  %1250 = vmatpush1.bf16.msra.mxu0 %v11521_v50  ;;  %v11593_v50 = vld [vmem:[%s16095_s30 + $0xe0] ss:$8 sps:$4 sm:$0xff]  }
 0x107   : > { %1251 = vmatprep.subr.bf16.mxu0 %v11526_v52  ;;  %v11596_v52 = vld [vmem:[%s16095_s30 + $0xf0] ss:$8 sps:$4 sm:$0xff]  }
 0x109   : > { %11435 = vmatpush3.bf16.msra.mxu1 %v12953_v6  ;;  %v11536_v6 = vld [vmem:[%s16094_s9 + $0x130] ss:$8 sps:$4 sm:$0xff]   ;;  %s16098_s9 = sld [smem:[#allocation10_spill]] }
 0x10a   : > { %1252 = vmatpush1.bf16.msra.mxu0 %v11524_v53  ;;  %v1470_v53 = vlaneseq }
 0x10b   : > { %1253 = vmatprep.subr.bf16.mxu0 %v11529_v54 }
 0x10c   : > { %11437 = vmatmul.mubr.msk.bf16.vlgmr.msra.gmra.mrb[12].mxu1 %vm779_vm1, %v11496_v51  ;;  %v11598_v51 = vld [vmem:[%s16095_s30 + $0xf4] ss:$8 sps:$4 sm:$0xff]   ;;  %v1471_v54 = vshrl.u32 %v1470_v53, 7 }
 0x10d   : > { %1527 = vmatprep.mubr.bf16.mxu1 %v12797_v21 }
 0x10e   : > { %1254 = vmatpush1.bf16.msra.mxu0 %v11527_v55  ;;  %v13245_v55 = vsub.s32 0, %v1471_v54 }
 0x10f   : > { %1255 = vmatprep.subr.bf16.mxu0 %v11532_v56  ;;  %v1468_v56 = vld [vmem:[%s16096_s1] sm:$0x3]  ;;  %s16099_s1 = sld [smem:[#allocation8_spill]] }
 0x112   : > { %1256 = vmatpush1.bf16.msra.mxu0 %v11530_v57  ;;  %v13250_v57 = vsub.s32 1, %v1471_v54 }
 0x113   : > { %1421 = vmatprep.subr.bf16.mxu0 %v11535_v58  ;;  %v1473_v58 = vrot.slane %v1468_v56, %v13245_v55 }
 0x1cf   : > { %v13105_v59 = vpop.f32.mrb[4].mxu1 }
 0x1d0   : > { %v13107_v60 = vpop.f32.mrb[5].mxu1 }
 0x1d1   : > { %v13109_v61 = vpop.f32.mrb[6].mxu1 }
 0x1d2   : > { %v13111_v62 = vpop.f32.mrb[7].mxu1 }
 0x1d7   : > { %v1161_v63 = vpop.f32.mrb[8].mxu1 }
 0x1d8   : > { %v11430_v0 = vpop.f32.mrb[9].mxu1 }
 0x1d9   : > { %v1164_v1 = vpop.f32.mrb[10].mxu1  ;;  %v1477_v0 = vrot.slane %v1468_v56, %v13250_v57  ;;  %v11649_v56 = vld [vmem:[%s16095_s30 + $0x304] ss:$8 sps:$4 sm:$0xff]  }
 0x1da   : > { %v1168_v3 = vpack.c.bf16 %v1164_v1, %v1161_v63  ;;  %v11431_v4 = vpop.f32.mrb[11].mxu1 }
 0x1dc   : > { %9648 = vmatmul.mubr.msk.bf16.vlgmr.msra.gmra.mrb[4].mxu0 %vm963_vm2, %v1168_v3 }
 0x1dd   : > { %1422 = vmatpush1.bf16.msra.mxu0 %v11533_v2  ;;  %1453 = vmatprep.mubr.bf16.mxu0 %v12797_v21 }
 0x1de   : > { %1423 = vmatprep.subr.bf16.mxu0 %v11538_v5 }
 0x1df   : > { %v1337_v8 = vpop.f32.mrb[12].mxu1 }
 0x1e0   : > { %v11438_v9 = vpop.f32.mrb[13].mxu1 }
 0x1e1   : > { %1424 = vmatpush1.bf16.msra.mxu0 %v11536_v6  ;;  %v1340_v11 = vpop.f32.mrb[14].mxu1 }
 0x1e2   : > { %1425 = vmatprep.subr.bf16.mxu0 %v11541_v7  ;;  %v1344_v13 = vpack.c.bf16 %v1340_v11, %v1337_v8  ;;  %v11439_v14 = vpop.f32.mrb[15].mxu1 }
 0x1e5   : > { %1426 = vmatpush1.bf16.msra.mxu0 %v11539_v10 }
 0x1e6   : > { %1427 = vmatprep.subr.bf16.mxu0 %v11544_v12 }
 0x1e9   : > { %1428 = vmatpush1.bf16.msra.mxu0 %v11542_v15 }
 0x1ea   : > { %1429 = vmatprep.subr.bf16.mxu0 %v11547_v16 }
 0x1ed   : > { %1430 = vmatpush1.bf16.msra.mxu0 %v11545_v17  ;;  %v9679_v17 = vld [vmem:[%s16097_s28 + $0x4] sm:$0xf] }
 0x1ee   : > { %1431 = vmatprep.subr.bf16.mxu0 %v11550_v18  ;;  %v11604_v18 = vld [vmem:[%s16095_s30 + $0x114] ss:$8 sps:$4 sm:$0xff]  }
 0x1f1   : > { %1432 = vmatpush1.bf16.msra.mxu0 %v11548_v19  ;;  %v11602_v19 = vld [vmem:[%s16095_s30 + $0x110] ss:$8 sps:$4 sm:$0xff]  }
 0x1f2   : > { %2012 = vmatprep.subr.bf16.mxu0 %v11553_v20  ;;  %v11607_v20 = vld [vmem:[%s16095_s30 + $0x124] ss:$8 sps:$4 sm:$0xff]  }
 0x1f4   : > { %9677 = vmatmul.mubr.msk.bf16.vlgmr.msra.gmra.mrb[4].mxu0 %vm963_vm2, %v1344_v13 }
 0x1f5   : > { %2013 = vmatpush1.bf16.msra.mxu0 %v11551_v22  ;;  %v11605_v22 = vld [vmem:[%s16095_s30 + $0x120] ss:$8 sps:$4 sm:$0xff]  }
 0x1f6   : > { %2014 = vmatprep.subr.bf16.mxu0 %v11556_v23  ;;  %v11610_v23 = vld [vmem:[%s16095_s30 + $0x134] ss:$8 sps:$4 sm:$0xff]  }
 0x1f9   : > { %2015 = vmatpush1.bf16.msra.mxu0 %v11554_v24  ;;  %v11608_v24 = vld [vmem:[%s16095_s30 + $0x130] ss:$8 sps:$4 sm:$0xff]  }
 0x1fa   : > { %2016 = vmatprep.subr.bf16.mxu0 %v11559_v25  ;;  %v11613_v25 = vld [vmem:[%s16095_s30 + $0x144] ss:$8 sps:$4 sm:$0xff]  }
 0x1fd   : > { %2017 = vmatpush1.bf16.msra.mxu0 %v11557_v26  ;;  %v11611_v26 = vld [vmem:[%s16095_s30 + $0x140] ss:$8 sps:$4 sm:$0xff]  }
 0x1fe   : > { %2018 = vmatprep.subr.bf16.mxu0 %v11562_v27  ;;  %v11616_v27 = vld [vmem:[%s16095_s30 + $0x154] ss:$8 sps:$4 sm:$0xff]  }
 0x201   : > { %2019 = vmatpush1.bf16.msra.mxu0 %v11560_v28  ;;  %v11614_v28 = vld [vmem:[%s16095_s30 + $0x150] ss:$8 sps:$4 sm:$0xff]  }
 0x202   : > { %2020 = vmatprep.subr.bf16.mxu0 %v11565_v29  ;;  %v11619_v29 = vld [vmem:[%s16095_s30 + $0x164] ss:$8 sps:$4 sm:$0xff]  }
 0x205   : > { %2021 = vmatpush1.bf16.msra.mxu0 %v11563_v30  ;;  %v11617_v30 = vld [vmem:[%s16095_s30 + $0x160] ss:$8 sps:$4 sm:$0xff]  }
 0x206   : > { %2022 = vmatprep.subr.bf16.mxu0 %v11568_v31  ;;  %v11622_v31 = vld [vmem:[%s16095_s30 + $0x174] ss:$8 sps:$4 sm:$0xff]  }
 0x209   : > { %2023 = vmatpush1.bf16.msra.mxu0 %v11566_v32  ;;  %v11620_v32 = vld [vmem:[%s16095_s30 + $0x170] ss:$8 sps:$4 sm:$0xff]  }
 0x20a   : > { %2024 = vmatprep.subr.bf16.mxu0 %v11571_v33  ;;  %v11625_v33 = vld [vmem:[%s16095_s30 + $0x184] ss:$8 sps:$4 sm:$0xff]  }
 0x20d   : > { %2025 = vmatpush1.bf16.msra.mxu0 %v11569_v34  ;;  %v11623_v34 = vld [vmem:[%s16095_s30 + $0x180] ss:$8 sps:$4 sm:$0xff]  }
 0x20e   : > { %2026 = vmatprep.subr.bf16.mxu0 %v11574_v35  ;;  %v11628_v35 = vld [vmem:[%s16095_s30 + $0x194] ss:$8 sps:$4 sm:$0xff]  }
 0x211   : > { %2027 = vmatpush1.bf16.msra.mxu0 %v11572_v36  ;;  %v11626_v36 = vld [vmem:[%s16095_s30 + $0x190] ss:$8 sps:$4 sm:$0xff]  }
 0x212   : > { %2028 = vmatprep.subr.bf16.mxu0 %v11577_v37  ;;  %v11631_v37 = vld [vmem:[%s16095_s30 + $0x1a4] ss:$8 sps:$4 sm:$0xff]  }
 0x215   : > { %2029 = vmatpush1.bf16.msra.mxu0 %v11575_v38  ;;  %v11629_v38 = vld [vmem:[%s16095_s30 + $0x1a0] ss:$8 sps:$4 sm:$0xff]  }
 0x216   : > { %2030 = vmatprep.subr.bf16.mxu0 %v11580_v39  ;;  %v11634_v39 = vld [vmem:[%s16095_s30 + $0x1b4] ss:$8 sps:$4 sm:$0xff]  }
 0x219   : > { %2031 = vmatpush1.bf16.msra.mxu0 %v11578_v40  ;;  %v11632_v40 = vld [vmem:[%s16095_s30 + $0x1b0] ss:$8 sps:$4 sm:$0xff]  }
 0x21a   : > { %2032 = vmatprep.subr.bf16.mxu0 %v11583_v41  ;;  %v11637_v41 = vld [vmem:[%s16095_s30 + $0x1c4] ss:$8 sps:$4 sm:$0xff]  }
 0x21d   : > { %2033 = vmatpush1.bf16.msra.mxu0 %v11581_v42  ;;  %v11635_v42 = vld [vmem:[%s16095_s30 + $0x1c0] ss:$8 sps:$4 sm:$0xff]  }
 0x21e   : > { %2034 = vmatprep.subr.bf16.mxu0 %v11586_v43  ;;  %v11640_v43 = vld [vmem:[%s16095_s30 + $0x1d4] ss:$8 sps:$4 sm:$0xff]  }
 0x221   : > { %2035 = vmatpush1.bf16.msra.mxu0 %v11584_v44  ;;  %v11638_v44 = vld [vmem:[%s16095_s30 + $0x1d0] ss:$8 sps:$4 sm:$0xff]  }
 0x222   : > { %2036 = vmatprep.subr.bf16.mxu0 %v11589_v45  ;;  %v11643_v45 = vld [vmem:[%s16095_s30 + $0x1e4] ss:$8 sps:$4 sm:$0xff]  }
 0x225   : > { %2037 = vmatpush1.bf16.msra.mxu0 %v11587_v46  ;;  %v11641_v46 = vld [vmem:[%s16095_s30 + $0x1e0] ss:$8 sps:$4 sm:$0xff]  }
 0x226   : > { %2038 = vmatprep.subr.bf16.mxu0 %v11592_v47  ;;  %v11646_v47 = vld [vmem:[%s16095_s30 + $0x1f4] ss:$8 sps:$4 sm:$0xff]  }
 0x229   : > { %2039 = vmatpush1.bf16.msra.mxu0 %v11590_v48  ;;  %v11644_v48 = vld [vmem:[%s16095_s30 + $0x1f0] ss:$8 sps:$4 sm:$0xff]  }
 0x22a   : > { %2040 = vmatprep.subr.bf16.mxu0 %v11595_v49 }
 0x22d   : > { %2041 = vmatpush1.bf16.msra.mxu0 %v11593_v50 }
 0x22e   : > { %2042 = vmatprep.subr.bf16.mxu0 %v11598_v51 }
 0x231   : > { %2043 = vmatpush1.bf16.msra.mxu0 %v11596_v52 }
 0x2c7   : > { %v1455_v63 = vpop.f32.mrb[4].mxu0 }
 0x2c8   : > { %v11440_v1 = vadd.f32 %v1455_v63, %v13105_v59  ;;  %v1457_v2 = vpop.f32.mrb[5].mxu0 }
 0x2c9   : > { %v11441_v3 = vadd.f32 %v1457_v2, %v13107_v60  ;;  %v1459_v4 = vpop.f32.mrb[6].mxu0  ;;  %v1490_v60 = vld [vmem:[%s16097_s28] sm:$0xf]  ;;  %v9843_v2 = vld [vmem:[%s16097_s28 + $0xc] sm:$0xf] }
 0x2ca   : > { %v1480_v5 = vadd.f32 %v11440_v1, %v1473_v58  ;;  %v11442_v6 = vadd.f32 %v1459_v4, %v13109_v61  ;;  %v1461_v7 = vpop.f32.mrb[7].mxu0  ;;  %v11601_v61 = vld [vmem:[%s16095_s30 + $0x104] ss:$8 sps:$4 sm:$0xff]  }
 0x2cb   : > { %v1481_v8 = vadd.f32 %v11441_v3, %v1477_v0  ;;  %v11443_v9 = vadd.f32 %v1461_v7, %v13111_v62  ;;  %v11599_v62 = vld [vmem:[%s16095_s30 + $0x100] ss:$8 sps:$4 sm:$0xff]   ;;  %v11655_v7 = vld [vmem:[%s16095_s30 + $0x314] ss:$8 sps:$4 sm:$0xff]  }
 0x2cc   : > { %v1482_v10 = vadd.f32 %v11442_v6, %v1473_v58  ;;  %v1484_v12 = vmax.f32 %v1480_v5, 0.0  ;;  %v11647_v5 = vld [vmem:[%s16095_s30 + $0x300] ss:$8 sps:$4 sm:$0xff]   ;;  %v11652_v6 = vld [vmem:[%s16095_s30 + $0x204] ss:$8 sps:$4 sm:$0xff]  }
 0x2cd   : > { %v1483_v11 = vadd.f32 %v11443_v9, %v1477_v0  ;;  %v1485_v14 = vmax.f32 %v1481_v8, 0.0  ;;  %v11653_v8 = vld [vmem:[%s16095_s30 + $0x310] ss:$8 sps:$4 sm:$0xff]   ;;  %v11661_v9 = vld [vmem:[%s16095_s30 + $0x324] ss:$8 sps:$4 sm:$0xff]  }
 0x2ce   : > { %v1486_v13 = vmax.f32 %v1482_v10, 0.0  ;;  %v9777_v10 = vld [vmem:[%s16097_s28 + $0x8] sm:$0xf] }
 0x2cf   : > { %v1487_v15 = vmax.f32 %v1483_v11, 0.0  ;;  %v11650_v11 = vld [vmem:[%s16095_s30 + $0x200] ss:$8 sps:$4 sm:$0xff]  }
 0x2d0   : > { %v13258_v16 = vpack.c.bf16 %v1486_v13, %v1484_v12  ;;  %v11658_v12 = vld [vmem:[%s16095_s30 + $0x214] ss:$8 sps:$4 sm:$0xff]   ;;  %v11659_v13 = vld [vmem:[%s16095_s30 + $0x320] ss:$8 sps:$4 sm:$0xff]  }
 0x2d1   : > { %v13260_v59 = vpack.c.bf16 %v1487_v15, %v1485_v14  ;;  %v11667_v14 = vld [vmem:[%s16095_s30 + $0x334] ss:$8 sps:$4 sm:$0xff]   ;;  %v11656_v15 = vld [vmem:[%s16095_s30 + $0x210] ss:$8 sps:$4 sm:$0xff]  }
 0x2d3   : > { %1495 = vmatprep.subr.bf16.mxu1 %v13260_v59  ;;  %2342 = vmatprep.subr.bf16.mxu0 %v13260_v59 }
 0x2d4   : > { %1496 = vmatpush1.bf16.msra.mxu1 %v13258_v16 }
 0x2d5   : > { %1575 = vmatprep.subr.bf16.mxu1 %v13260_v59 }
 0x2d7   : > { %9678 = vmatmul.mubr.msk.bf16.vlgmr.msra.gmra.mrb[16].mxu1 %vm1491_vm3, %v1490_v60  ;;  %v11673_v60 = vld [vmem:[%s16095_s30 + $0x344] ss:$8 sps:$4 sm:$0xff]  }
 0x2d8   : > { %1576 = vmatpush1.bf16.msra.mxu1 %v13258_v16  ;;  %1607 = vmatprep.mubr.bf16.mxu1 %v12797_v21 }
 0x2d9   : > { %1811 = vmatprep.subr.bf16.mxu1 %v11601_v61  ;;  %v11662_v61 = vld [vmem:[%s16095_s30 + $0x220] ss:$8 sps:$4 sm:$0xff]  }
 0x2df   : > { %9680 = vmatmul.mubr.msk.bf16.vlgmr.msra.gmra.mrb[20].mxu1 %vm1491_vm3, %v9679_v17  ;;  %v11671_v17 = vld [vmem:[%s16095_s30 + $0x340] ss:$8 sps:$4 sm:$0xff]  }
 0x2e0   : > { %1812 = vmatpush1.bf16.msra.mxu1 %v11599_v62  ;;  %v11670_v62 = vld [vmem:[%s16095_s30 + $0x234] ss:$8 sps:$4 sm:$0xff]  }
 0x2e1   : > { %1813 = vmatprep.subr.bf16.mxu1 %v11604_v18  ;;  %v11679_v18 = vld [vmem:[%s16095_s30 + $0x354] ss:$8 sps:$4 sm:$0xff]  }
 0x2e4   : > { %1814 = vmatpush1.bf16.msra.mxu1 %v11602_v19  ;;  %v11668_v19 = vld [vmem:[%s16095_s30 + $0x230] ss:$8 sps:$4 sm:$0xff]  }
 0x2e5   : > { %1815 = vmatprep.subr.bf16.mxu1 %v11607_v20  ;;  %v11676_v20 = vld [vmem:[%s16095_s30 + $0x244] ss:$8 sps:$4 sm:$0xff]  }
 0x2e8   : > { %1816 = vmatpush1.bf16.msra.mxu1 %v11605_v22  ;;  %v11677_v22 = vld [vmem:[%s16095_s30 + $0x350] ss:$8 sps:$4 sm:$0xff]  }
 0x2e9   : > { %1817 = vmatprep.subr.bf16.mxu1 %v11610_v23  ;;  %v11685_v23 = vld [vmem:[%s16095_s30 + $0x364] ss:$8 sps:$4 sm:$0xff]  }
 0x2ec   : > { %1818 = vmatpush1.bf16.msra.mxu1 %v11608_v24  ;;  %v11674_v24 = vld [vmem:[%s16095_s30 + $0x240] ss:$8 sps:$4 sm:$0xff]  }
 0x2ed   : > { %1819 = vmatprep.subr.bf16.mxu1 %v11613_v25  ;;  %v11682_v25 = vld [vmem:[%s16095_s30 + $0x254] ss:$8 sps:$4 sm:$0xff]  }
 0x2f0   : > { %1820 = vmatpush1.bf16.msra.mxu1 %v11611_v26  ;;  %v11683_v26 = vld [vmem:[%s16095_s30 + $0x360] ss:$8 sps:$4 sm:$0xff]  }
 0x2f1   : > { %1821 = vmatprep.subr.bf16.mxu1 %v11616_v27  ;;  %v11691_v27 = vld [vmem:[%s16095_s30 + $0x374] ss:$8 sps:$4 sm:$0xff]  }
 0x2f4   : > { %1822 = vmatpush1.bf16.msra.mxu1 %v11614_v28  ;;  %v11680_v28 = vld [vmem:[%s16095_s30 + $0x250] ss:$8 sps:$4 sm:$0xff]  }
 0x2f5   : > { %1823 = vmatprep.subr.bf16.mxu1 %v11619_v29  ;;  %v11688_v29 = vld [vmem:[%s16095_s30 + $0x264] ss:$8 sps:$4 sm:$0xff]  }
 0x2f8   : > { %1824 = vmatpush1.bf16.msra.mxu1 %v11617_v30  ;;  %v11689_v30 = vld [vmem:[%s16095_s30 + $0x370] ss:$8 sps:$4 sm:$0xff]  }
 0x2f9   : > { %1825 = vmatprep.subr.bf16.mxu1 %v11622_v31  ;;  %v11697_v31 = vld [vmem:[%s16095_s30 + $0x384] ss:$8 sps:$4 sm:$0xff]  }
 0x2fc   : > { %1826 = vmatpush1.bf16.msra.mxu1 %v11620_v32  ;;  %v11686_v32 = vld [vmem:[%s16095_s30 + $0x260] ss:$8 sps:$4 sm:$0xff]  }
 0x2fd   : > { %1827 = vmatprep.subr.bf16.mxu1 %v11625_v33  ;;  %v11694_v33 = vld [vmem:[%s16095_s30 + $0x274] ss:$8 sps:$4 sm:$0xff]  }
 0x300   : > { %1828 = vmatpush1.bf16.msra.mxu1 %v11623_v34  ;;  %v11695_v34 = vld [vmem:[%s16095_s30 + $0x380] ss:$8 sps:$4 sm:$0xff]  }
 0x301   : > { %1829 = vmatprep.subr.bf16.mxu1 %v11628_v35  ;;  %v11703_v35 = vld [vmem:[%s16095_s30 + $0x394] ss:$8 sps:$4 sm:$0xff]  }
 0x304   : > { %1830 = vmatpush1.bf16.msra.mxu1 %v11626_v36  ;;  %v11692_v36 = vld [vmem:[%s16095_s30 + $0x270] ss:$8 sps:$4 sm:$0xff]  }
 0x305   : > { %1831 = vmatprep.subr.bf16.mxu1 %v11631_v37  ;;  %v11700_v37 = vld [vmem:[%s16095_s30 + $0x284] ss:$8 sps:$4 sm:$0xff]  }
 0x308   : > { %1832 = vmatpush1.bf16.msra.mxu1 %v11629_v38  ;;  %v11701_v38 = vld [vmem:[%s16095_s30 + $0x390] ss:$8 sps:$4 sm:$0xff]  }
 0x309   : > { %1833 = vmatprep.subr.bf16.mxu1 %v11634_v39  ;;  %v11709_v39 = vld [vmem:[%s16095_s30 + $0x3a4] ss:$8 sps:$4 sm:$0xff]  }
 0x30c   : > { %1834 = vmatpush1.bf16.msra.mxu1 %v11632_v40  ;;  %v11698_v40 = vld [vmem:[%s16095_s30 + $0x280] ss:$8 sps:$4 sm:$0xff]  }
 0x30d   : > { %1835 = vmatprep.subr.bf16.mxu1 %v11637_v41  ;;  %v11706_v41 = vld [vmem:[%s16095_s30 + $0x294] ss:$8 sps:$4 sm:$0xff]  }
 0x310   : > { %1836 = vmatpush1.bf16.msra.mxu1 %v11635_v42  ;;  %v11707_v42 = vld [vmem:[%s16095_s30 + $0x3a0] ss:$8 sps:$4 sm:$0xff]  }
 0x311   : > { %1837 = vmatprep.subr.bf16.mxu1 %v11640_v43  ;;  %v11715_v43 = vld [vmem:[%s16095_s30 + $0x3b4] ss:$8 sps:$4 sm:$0xff]  }
 0x314   : > { %1838 = vmatpush1.bf16.msra.mxu1 %v11638_v44  ;;  %v11704_v44 = vld [vmem:[%s16095_s30 + $0x290] ss:$8 sps:$4 sm:$0xff]  }
 0x315   : > { %1839 = vmatprep.subr.bf16.mxu1 %v11643_v45  ;;  %v11712_v45 = vld [vmem:[%s16095_s30 + $0x2a4] ss:$8 sps:$4 sm:$0xff]  }
 0x318   : > { %1840 = vmatpush1.bf16.msra.mxu1 %v11641_v46  ;;  %v11713_v46 = vld [vmem:[%s16095_s30 + $0x3b0] ss:$8 sps:$4 sm:$0xff]  }
 0x319   : > { %1841 = vmatprep.subr.bf16.mxu1 %v11646_v47  ;;  %v11710_v47 = vld [vmem:[%s16095_s30 + $0x2a0] ss:$8 sps:$4 sm:$0xff]  }
 0x31c   : > { %1842 = vmatpush1.bf16.msra.mxu1 %v11644_v48  ;;  %v11718_v48 = vld [vmem:[%s16095_s30 + $0x2b4] ss:$8 sps:$4 sm:$0xff]  }
 0x31d   : > { %2058 = vmatprep.subr.bf16.mxu1 %v13260_v59  ;;  %v11665_v59 = vld [vmem:[%s16095_s30 + $0x330] ss:$8 sps:$4 sm:$0xff]  }
 0x3aa   : > { %v1529_v49 = vpop.f32.mrb[16].mxu1 }
 0x3ab   : > { %v1531_v50 = vpop.f32.mrb[17].mxu1  ;;  %v1536_v53 = vpack.c.bf16 %v1529_v49, %v1529_v49  ;;  %v11716_v49 = vld [vmem:[%s16095_s30 + $0x2b0] ss:$8 sps:$4 sm:$0xff]  }
 0x3ac   : > { %v1537_v51 = vpack.c.bf16 %v1531_v50, %v1531_v50  ;;  %v1533_v52 = vpop.f32.mrb[18].mxu1  ;;  %v11721_v50 = vld [vmem:[%s16095_s30 + $0x3c4] ss:$8 sps:$4 sm:$0xff]  }
 0x3ad   : > { %v1534_v54 = vpop.f32.mrb[19].mxu1  ;;  %v11722_v52 = vld [vmem:[%s16095_s30 + $0x2c0] ss:$8 sps:$4 sm:$0xff]  }
 0x3ae   : > { %2044 = vmatprep.mubr.bf16.mxu0 %v1537_v51  ;;  %v11719_v51 = vld [vmem:[%s16095_s30 + $0x3c0] ss:$8 sps:$4 sm:$0xff]   ;;  %v11725_v54 = vld [vmem:[%s16095_s30 + $0x3d0] ss:$8 sps:$4 sm:$0xff]  }
 0x3af   : > { %2045 = vmatmul.mubr.bf16.vlgmr.msra.gmra.mrb[8].mxu0 %v1536_v53  ;;  %v11724_v53 = vld [vmem:[%s16095_s30 + $0x2c4] ss:$8 sps:$4 sm:$0xff]  }
 0x3b0   : > { %2343 = vmatpush1.bf16.msra.mxu0 %v13258_v16  ;;  %2374 = vmatprep.mubr.bf16.mxu0 %v12797_v21 }
 0x3b1   : > { %2578 = vmatprep.subr.bf16.mxu0 %v11649_v56  ;;  %v11727_v56 = vld [vmem:[%s16095_s30 + $0x3d4] ss:$8 sps:$4 sm:$0xff]  }
 0x3b2   : > { %v1609_v58 = vpop.f32.mrb[20].mxu1 }
 0x3b3   : > { %v1611_v63 = vpop.f32.mrb[21].mxu1  ;;  %v1616_v3 = vpack.c.bf16 %v1609_v58, %v1609_v58  ;;  %v11730_v58 = vld [vmem:[%s16095_s30 + $0x2d4] ss:$8 sps:$4 sm:$0xff]  }
 0x3b4   : > { %v1617_v0 = vpack.c.bf16 %v1611_v63, %v1611_v63  ;;  %v1613_v1 = vpop.f32.mrb[22].mxu1  ;;  %v11728_v63 = vld [vmem:[%s16095_s30 + $0x2d0] ss:$8 sps:$4 sm:$0xff]  }
 0x3b5   : > { %v1614_v4 = vpop.f32.mrb[23].mxu1  ;;  %v11731_v1 = vld [vmem:[%s16095_s30 + $0x3e0] ss:$8 sps:$4 sm:$0xff]  }
 0x3b6   : > { %1843 = vmatprep.mubr.bf16.mxu1 %v1617_v0  ;;  %v11733_v0 = vld [vmem:[%s16095_s30 + $0x3e4] ss:$8 sps:$4 sm:$0xff]   ;;  %v11737_v4 = vld [vmem:[%s16095_s30 + $0x3f0] ss:$8 sps:$4 sm:$0xff]  }
 0x3b7   : > { %1844 = vmatmul.mubr.bf16.vlgmr.msra.gmra.mrb[24].mxu1 %v1616_v3  ;;  %9844 = vmatmul.mubr.msk.bf16.vlgmr.msra.gmra.mrb[12].mxu0 %vm1491_vm3, %v9843_v2  ;;  %v11734_v2 = vld [vmem:[%s16095_s30 + $0x2e0] ss:$8 sps:$4 sm:$0xff]   ;;  %v11736_v3 = vld [vmem:[%s16095_s30 + $0x2e4] ss:$8 sps:$4 sm:$0xff]  }
 0x3b8   : > { %2059 = vmatpush1.bf16.msra.mxu1 %v13258_v16  ;;  %2090 = vmatprep.mubr.bf16.mxu1 %v12797_v21  ;;  %v11664_v16 = vld [vmem:[%s16095_s30 + $0x224] ss:$8 sps:$4 sm:$0xff]  }
 0x3b9   : > { %2579 = vmatpush1.bf16.msra.mxu0 %v11647_v5  ;;  %2294 = vmatprep.subr.bf16.mxu1 %v11652_v6  ;;  %v11739_v5 = vld [vmem:[%s16095_s30 + $0x3f4] ss:$8 sps:$4 sm:$0xff]  }
 0x3ba   : > { %2580 = vmatprep.subr.bf16.mxu0 %v11655_v7  ;;  %v11742_v6 = vld [vmem:[%s16095_s30 + $0x2f4] ss:$8 sps:$4 sm:$0xff]   ;;  %v11740_v7 = vld [vmem:[%s16095_s30 + $0x2f0] ss:$8 sps:$4 sm:$0xff]  }
 0x3bd   : > { %2581 = vmatpush1.bf16.msra.mxu0 %v11653_v8  ;;  %v11745_v8 = vld [vmem:[%s16098_s9 + $0x4] ss:$8 sps:$4 sm:$0xff]  }
 0x3be   : > { %2582 = vmatprep.subr.bf16.mxu0 %v11661_v9 }
 0x3bf   : > { %9778 = vmatmul.mubr.msk.bf16.vlgmr.msra.gmra.mrb[28].mxu1 %vm1491_vm3, %v9777_v10 }
 0x3c0   : > { %2295 = vmatpush1.bf16.msra.mxu1 %v11650_v11 }
 0x3c1   : > { %2296 = vmatprep.subr.bf16.mxu1 %v11658_v12  ;;  %2583 = vmatpush1.bf16.msra.mxu0 %v11659_v13 }
 0x3c2   : > { %2584 = vmatprep.subr.bf16.mxu0 %v11667_v14 }
 0x3c4   : > { %2297 = vmatpush1.bf16.msra.mxu1 %v11656_v15 }
 0x3c5   : > { %2298 = vmatprep.subr.bf16.mxu1 %v11664_v16  ;;  %2585 = vmatpush1.bf16.msra.mxu0 %v11665_v59 }
 0x3c6   : > { %2586 = vmatprep.subr.bf16.mxu0 %v11673_v60 }
 0x3c8   : > { %2299 = vmatpush1.bf16.msra.mxu1 %v11662_v61 }
 0x3c9   : > { %2300 = vmatprep.subr.bf16.mxu1 %v11670_v62  ;;  %2587 = vmatpush1.bf16.msra.mxu0 %v11671_v17 }
 0x3ca   : > { %2588 = vmatprep.subr.bf16.mxu0 %v11679_v18 }
 0x3cc   : > { %2301 = vmatpush1.bf16.msra.mxu1 %v11668_v19  ;;  %v11743_v19 = vld [vmem:[%s16098_s9] ss:$8 sps:$4 sm:$0xff]  }
 0x3cd   : > { %2302 = vmatprep.subr.bf16.mxu1 %v11676_v20  ;;  %2589 = vmatpush1.bf16.msra.mxu0 %v11677_v22 }
 0x3ce   : > { %2590 = vmatprep.subr.bf16.mxu0 %v11685_v23  ;;  %v11748_v23 = vld [vmem:[%s16098_s9 + $0x14] ss:$8 sps:$4 sm:$0xff]  }
 0x3d0   : > { %2303 = vmatpush1.bf16.msra.mxu1 %v11674_v24  ;;  %v11746_v24 = vld [vmem:[%s16098_s9 + $0x10] ss:$8 sps:$4 sm:$0xff]  }
 0x3d1   : > { %2304 = vmatprep.subr.bf16.mxu1 %v11682_v25  ;;  %2591 = vmatpush1.bf16.msra.mxu0 %v11683_v26  ;;  %v11751_v25 = vld [vmem:[%s16098_s9 + $0x24] ss:$8 sps:$4 sm:$0xff]  }
 0x3d2   : > { %2592 = vmatprep.subr.bf16.mxu0 %v11691_v27 }
 0x3d4   : > { %2305 = vmatpush1.bf16.msra.mxu1 %v11680_v28 }
 0x3d5   : > { %2306 = vmatprep.subr.bf16.mxu1 %v11688_v29  ;;  %2593 = vmatpush1.bf16.msra.mxu0 %v11689_v30  ;;  %v11749_v30 = vld [vmem:[%s16098_s9 + $0x20] ss:$8 sps:$4 sm:$0xff]  }
 0x3d6   : > { %2594 = vmatprep.subr.bf16.mxu0 %v11697_v31 }
 0x3d8   : > { %2307 = vmatpush1.bf16.msra.mxu1 %v11686_v32 }
 0x3d9   : > { %2308 = vmatprep.subr.bf16.mxu1 %v11694_v33  ;;  %2595 = vmatpush1.bf16.msra.mxu0 %v11695_v34  ;;  %v11754_v33 = vld [vmem:[%s16098_s9 + $0x34] ss:$8 sps:$4 sm:$0xff]   ;;  %v11752_v34 = vld [vmem:[%s16098_s9 + $0x30] ss:$8 sps:$4 sm:$0xff]  }
 0x3da   : > { %2596 = vmatprep.subr.bf16.mxu0 %v11703_v35  ;;  %v11757_v35 = vld [vmem:[%s16098_s9 + $0x44] ss:$8 sps:$4 sm:$0xff]  }
 0x3dc   : > { %2309 = vmatpush1.bf16.msra.mxu1 %v11692_v36  ;;  %v11755_v36 = vld [vmem:[%s16098_s9 + $0x40] ss:$8 sps:$4 sm:$0xff]  }
 0x3dd   : > { %2310 = vmatprep.subr.bf16.mxu1 %v11700_v37  ;;  %2597 = vmatpush1.bf16.msra.mxu0 %v11701_v38  ;;  %v11760_v37 = vld [vmem:[%s16098_s9 + $0x54] ss:$8 sps:$4 sm:$0xff]   ;;  %v11758_v38 = vld [vmem:[%s16098_s9 + $0x50] ss:$8 sps:$4 sm:$0xff]  }
 0x3de   : > { %2598 = vmatprep.subr.bf16.mxu0 %v11709_v39  ;;  %v11763_v39 = vld [vmem:[%s16098_s9 + $0x64] ss:$8 sps:$4 sm:$0xff]  }
 0x3e0   : > { %2311 = vmatpush1.bf16.msra.mxu1 %v11698_v40  ;;  %v11761_v40 = vld [vmem:[%s16098_s9 + $0x60] ss:$8 sps:$4 sm:$0xff]  }
 0x3e1   : > { %2312 = vmatprep.subr.bf16.mxu1 %v11706_v41  ;;  %2599 = vmatpush1.bf16.msra.mxu0 %v11707_v42  ;;  %v11766_v41 = vld [vmem:[%s16098_s9 + $0x74] ss:$8 sps:$4 sm:$0xff]   ;;  %v11764_v42 = vld [vmem:[%s16098_s9 + $0x70] ss:$8 sps:$4 sm:$0xff]  }
 0x3e2   : > { %2600 = vmatprep.subr.bf16.mxu0 %v11715_v43  ;;  %v11769_v43 = vld [vmem:[%s16098_s9 + $0x84] ss:$8 sps:$4 sm:$0xff]  }
 0x3e4   : > { %2313 = vmatpush1.bf16.msra.mxu1 %v11704_v44  ;;  %v11767_v44 = vld [vmem:[%s16098_s9 + $0x80] ss:$8 sps:$4 sm:$0xff]  }
 0x3e5   : > { %2314 = vmatprep.subr.bf16.mxu1 %v11712_v45  ;;  %2601 = vmatpush1.bf16.msra.mxu0 %v11713_v46  ;;  %v11772_v45 = vld [vmem:[%s16098_s9 + $0x94] ss:$8 sps:$4 sm:$0xff]   ;;  %v11770_v46 = vld [vmem:[%s16098_s9 + $0x90] ss:$8 sps:$4 sm:$0xff]  }
 0x3e6   : > { %2602 = vmatprep.subr.bf16.mxu0 %v11721_v50  ;;  %v11776_v50 = vld [vmem:[%s16098_s9 + $0xb0] ss:$8 sps:$4 sm:$0xff]  }
 0x3e8   : > { %2315 = vmatpush1.bf16.msra.mxu1 %v11710_v47  ;;  %v11775_v47 = vld [vmem:[%s16098_s9 + $0xa4] ss:$8 sps:$4 sm:$0xff]  }
 0x3e9   : > { %2316 = vmatprep.subr.bf16.mxu1 %v11718_v48  ;;  %2603 = vmatpush1.bf16.msra.mxu0 %v11719_v51  ;;  %v11773_v48 = vld [vmem:[%s16098_s9 + $0xa0] ss:$8 sps:$4 sm:$0xff]  }
 0x3ea   : > { %2604 = vmatprep.subr.bf16.mxu0 %v11727_v56  ;;  %v11779_v51 = vld [vmem:[%s16098_s9 + $0xc0] ss:$8 sps:$4 sm:$0xff]   ;;  %v11787_v56 = vld [vmem:[%s16098_s9 + $0xe4] ss:$8 sps:$4 sm:$0xff]  }
 0x3ec   : > { %2317 = vmatpush1.bf16.msra.mxu1 %v11716_v49  ;;  %v11778_v49 = vld [vmem:[%s16098_s9 + $0xb4] ss:$8 sps:$4 sm:$0xff]  }
 0x3ed   : > { %2318 = vmatprep.subr.bf16.mxu1 %v11724_v53  ;;  %2605 = vmatpush1.bf16.msra.mxu0 %v11725_v54  ;;  %v11784_v53 = vld [vmem:[%s16098_s9 + $0xd4] ss:$8 sps:$4 sm:$0xff]   ;;  %v11782_v54 = vld [vmem:[%s16098_s9 + $0xd0] ss:$8 sps:$4 sm:$0xff]  }
 0x3ee   : > { %2606 = vmatprep.subr.bf16.mxu0 %v11733_v0  ;;  %v11788_v0 = vld [vmem:[%s16098_s9 + $0xf0] ss:$8 sps:$4 sm:$0xff]  }
 0x3f0   : > { %2319 = vmatpush1.bf16.msra.mxu1 %v11722_v52  ;;  %v11781_v52 = vld [vmem:[%s16098_s9 + $0xc4] ss:$8 sps:$4 sm:$0xff]  }
 0x3f1   : > { %2320 = vmatprep.subr.bf16.mxu1 %v11730_v58  ;;  %2607 = vmatpush1.bf16.msra.mxu0 %v11731_v1  ;;  %v11785_v58 = vld [vmem:[%s16098_s9 + $0xe0] ss:$8 sps:$4 sm:$0xff]  }
 0x3f2   : > { %2608 = vmatprep.subr.bf16.mxu0 %v11739_v5  ;;  %v2621_v5 = vld [vmem:[%s16099_s1] sm:$0x3] }
 0x3f4   : > { %2321 = vmatpush1.bf16.msra.mxu1 %v11728_v63  ;;  %v11790_v63 = vld [vmem:[%s16098_s9 + $0xf4] ss:$8 sps:$4 sm:$0xff]  }
 0x3f5   : > { %2322 = vmatprep.subr.bf16.mxu1 %v11736_v3  ;;  %2609 = vmatpush1.bf16.msra.mxu0 %v11737_v4 }
 0x3f6   : > { %3168 = vmatprep.subr.bf16.mxu0 %v11745_v8  ;;  %v2626_v8 = vrot.slane %v2621_v5, %v13245_v55 }
 0x3f8   : > { %2323 = vmatpush1.bf16.msra.mxu1 %v11734_v2 }
 0x3f9   : > { %2324 = vmatprep.subr.bf16.mxu1 %v11742_v6 }
 0x3fc   : > { %2325 = vmatpush1.bf16.msra.mxu1 %v11740_v7 }
 0x482   : > { %v2046_v9 = vpop.f32.mrb[8].mxu0 }
 0x483   : > { %v2048_v10 = vpop.f32.mrb[9].mxu0 }
 0x484   : > { %v2050_v11 = vpop.f32.mrb[10].mxu0 }
 0x485   : > { %v2051_v12 = vpop.f32.mrb[11].mxu0  ;;  %v2630_v11 = vrot.slane %v2621_v5, %v13250_v57 }
 0x48a   : > { %v1845_v13 = vpop.f32.mrb[24].mxu1  ;;  %v2376_v14 = vpop.f32.mrb[12].mxu0 }
 0x48b   : > { %v13580_v15 = vadd.f32 %v2046_v9, %v1845_v13  ;;  %v1847_v16 = vpop.f32.mrb[25].mxu1  ;;  %v2383_v59 = vpack.c.bf16 %v2376_v14, %v2376_v14  ;;  %v2378_v60 = vpop.f32.mrb[13].mxu0 }
 0x48c   : > { %v13582_v61 = vadd.f32 %v2048_v10, %v1847_v16  ;;  %v1849_v62 = vpop.f32.mrb[26].mxu1  ;;  %v2384_v17 = vpack.c.bf16 %v2378_v60, %v2378_v60  ;;  %v2380_v18 = vpop.f32.mrb[14].mxu0 }
 0x48d   : > { %v1850_v20 = vpop.f32.mrb[27].mxu1  ;;  %v2381_v22 = vpop.f32.mrb[15].mxu0 }
 0x48e   : > { %2610 = vmatprep.mubr.bf16.mxu0 %v2384_v17  ;;  %v11793_v20 = vld [vmem:[%s16098_s9 + $0x104] ss:$8 sps:$4 sm:$0xff]   ;;  %v11791_v22 = vld [vmem:[%s16098_s9 + $0x100] ss:$8 sps:$4 sm:$0xff]  }
 0x48f   : > { %2611 = vmatmul.mubr.bf16.vlgmr.msra.gmra.mrb[16].mxu0 %v2383_v59 }
 0x490   : > { %3169 = vmatpush1.bf16.msra.mxu0 %v11743_v19 }
 0x491   : > { %3170 = vmatprep.subr.bf16.mxu0 %v11748_v23  ;;  %v9911_v23 = vld [vmem:[%s16100_s6 + $0x2] sm:$0x3] }
 0x492   : > { %v2092_v26 = vpop.f32.mrb[28].mxu1 }
 0x493   : > { %v2094_v27 = vpop.f32.mrb[29].mxu1  ;;  %v2099_v31 = vpack.c.bf16 %v2092_v26, %v2092_v26  ;;  %v11799_v26 = vld [vmem:[%s16098_s9 + $0x124] ss:$8 sps:$4 sm:$0xff]  }
 0x494   : > { %v2100_v28 = vpack.c.bf16 %v2094_v27, %v2094_v27  ;;  %v2096_v29 = vpop.f32.mrb[30].mxu1  ;;  %3171 = vmatpush1.bf16.msra.mxu0 %v11746_v24  ;;  %v11796_v24 = vld [vmem:[%s16098_s9 + $0x114] ss:$8 sps:$4 sm:$0xff]   ;;  %v11797_v27 = vld [vmem:[%s16098_s9 + $0x120] ss:$8 sps:$4 sm:$0xff]  }
 0x495   : > { %v2097_v32 = vpop.f32.mrb[31].mxu1  ;;  %3172 = vmatprep.subr.bf16.mxu0 %v11751_v25  ;;  %v11794_v25 = vld [vmem:[%s16098_s9 + $0x110] ss:$8 sps:$4 sm:$0xff]  }
 0x496   : > { %2326 = vmatprep.mubr.bf16.mxu1 %v2100_v28  ;;  %v11802_v28 = vld [vmem:[%s16098_s9 + $0x134] ss:$8 sps:$4 sm:$0xff]   ;;  %v11800_v29 = vld [vmem:[%s16098_s9 + $0x130] ss:$8 sps:$4 sm:$0xff]  }
 0x497   : > { %2327 = vmatmul.mubr.bf16.vlgmr.msra.gmra.mrb[32].mxu1 %v2099_v31  ;;  %v11803_v31 = vld [vmem:[%s16098_s9 + $0x140] ss:$8 sps:$4 sm:$0xff]   ;;  %v11808_v32 = vld [vmem:[%s16098_s9 + $0x154] ss:$8 sps:$4 sm:$0xff]  }
 0x498   : > { %3173 = vmatpush1.bf16.msra.mxu0 %v11749_v30  ;;  %2683 = vmatprep.mubr.bf16.mxu1 %v12797_v21  ;;  %v11805_v30 = vld [vmem:[%s16098_s9 + $0x144] ss:$8 sps:$4 sm:$0xff]  }
 0x499   : > { %3174 = vmatprep.subr.bf16.mxu0 %v11754_v33  ;;  %v11806_v33 = vld [vmem:[%s16098_s9 + $0x150] ss:$8 sps:$4 sm:$0xff]  }
 0x49c   : > { %3175 = vmatpush1.bf16.msra.mxu0 %v11752_v34  ;;  %v11811_v34 = vld [vmem:[%s16098_s9 + $0x164] ss:$8 sps:$4 sm:$0xff]  }
 0x49d   : > { %3176 = vmatprep.subr.bf16.mxu0 %v11757_v35  ;;  %v11809_v35 = vld [vmem:[%s16098_s9 + $0x160] ss:$8 sps:$4 sm:$0xff]  }
 0x4a0   : > { %3177 = vmatpush1.bf16.msra.mxu0 %v11755_v36  ;;  %v11814_v36 = vld [vmem:[%s16098_s9 + $0x174] ss:$8 sps:$4 sm:$0xff]  }
 0x4a1   : > { %3178 = vmatprep.subr.bf16.mxu0 %v11760_v37  ;;  %v11812_v37 = vld [vmem:[%s16098_s9 + $0x170] ss:$8 sps:$4 sm:$0xff]  }
 0x4a4   : > { %3179 = vmatpush1.bf16.msra.mxu0 %v11758_v38  ;;  %v11817_v38 = vld [vmem:[%s16098_s9 + $0x184] ss:$8 sps:$4 sm:$0xff]  }
 0x4a5   : > { %3180 = vmatprep.subr.bf16.mxu0 %v11763_v39  ;;  %v11815_v39 = vld [vmem:[%s16098_s9 + $0x180] ss:$8 sps:$4 sm:$0xff]  }
 0x4a8   : > { %3181 = vmatpush1.bf16.msra.mxu0 %v11761_v40  ;;  %v11820_v40 = vld [vmem:[%s16098_s9 + $0x194] ss:$8 sps:$4 sm:$0xff]  }
 0x4a9   : > { %3182 = vmatprep.subr.bf16.mxu0 %v11766_v41  ;;  %v11818_v41 = vld [vmem:[%s16098_s9 + $0x190] ss:$8 sps:$4 sm:$0xff]  }
 0x4ac   : > { %3183 = vmatpush1.bf16.msra.mxu0 %v11764_v42  ;;  %v11823_v42 = vld [vmem:[%s16098_s9 + $0x1a4] ss:$8 sps:$4 sm:$0xff]  }
 0x4ad   : > { %3184 = vmatprep.subr.bf16.mxu0 %v11769_v43  ;;  %v11821_v43 = vld [vmem:[%s16098_s9 + $0x1a0] ss:$8 sps:$4 sm:$0xff]  }
 0x4b0   : > { %3185 = vmatpush1.bf16.msra.mxu0 %v11767_v44  ;;  %v11826_v44 = vld [vmem:[%s16098_s9 + $0x1b4] ss:$8 sps:$4 sm:$0xff]  }
 0x4b1   : > { %3186 = vmatprep.subr.bf16.mxu0 %v11772_v45  ;;  %v11824_v45 = vld [vmem:[%s16098_s9 + $0x1b0] ss:$8 sps:$4 sm:$0xff]  }
 0x4b4   : > { %3187 = vmatpush1.bf16.msra.mxu0 %v11770_v46  ;;  %v11829_v46 = vld [vmem:[%s16098_s9 + $0x1c4] ss:$8 sps:$4 sm:$0xff]  }
 0x4b5   : > { %3188 = vmatprep.subr.bf16.mxu0 %v11775_v47  ;;  %v11827_v47 = vld [vmem:[%s16098_s9 + $0x1c0] ss:$8 sps:$4 sm:$0xff]  }
 0x4b8   : > { %3189 = vmatpush1.bf16.msra.mxu0 %v11773_v48  ;;  %v11832_v48 = vld [vmem:[%s16098_s9 + $0x1d4] ss:$8 sps:$4 sm:$0xff]  }
 0x4b9   : > { %3190 = vmatprep.subr.bf16.mxu0 %v11778_v49  ;;  %v11830_v49 = vld [vmem:[%s16098_s9 + $0x1d0] ss:$8 sps:$4 sm:$0xff]  }
 0x4bc   : > { %3191 = vmatpush1.bf16.msra.mxu0 %v11776_v50  ;;  %v11835_v50 = vld [vmem:[%s16098_s9 + $0x1e4] ss:$8 sps:$4 sm:$0xff]  }
 0x4bd   : > { %3192 = vmatprep.subr.bf16.mxu0 %v11781_v52  ;;  %v11838_v52 = vld [vmem:[%s16098_s9 + $0x1f4] ss:$8 sps:$4 sm:$0xff]  }
 0x4c0   : > { %3193 = vmatpush1.bf16.msra.mxu0 %v11779_v51  ;;  %v11833_v51 = vld [vmem:[%s16098_s9 + $0x1e0] ss:$8 sps:$4 sm:$0xff]  }
 0x4c1   : > { %3194 = vmatprep.subr.bf16.mxu0 %v11784_v53  ;;  %v11836_v53 = vld [vmem:[%s16098_s9 + $0x1f0] ss:$8 sps:$4 sm:$0xff]  }
 0x4c4   : > { %3195 = vmatpush1.bf16.msra.mxu0 %v11782_v54 }
 0x4c5   : > { %3196 = vmatprep.subr.bf16.mxu0 %v11787_v56 }
 0x4c8   : > { %3197 = vmatpush1.bf16.msra.mxu0 %v11785_v58 }
 0x4c9   : > { %3198 = vmatprep.subr.bf16.mxu0 %v11790_v63 }
 0x4cc   : > { %3199 = vmatpush1.bf16.msra.mxu0 %v11788_v0 }
 0x562   : > { %v2612_v1 = vpop.f32.mrb[16].mxu0 }
 0x563   : > { %v2614_v2 = vpop.f32.mrb[17].mxu0 }
 0x564   : > { %v2616_v3 = vpop.f32.mrb[18].mxu0 }
 0x565   : > { %v2617_v4 = vpop.f32.mrb[19].mxu0 }
 0x56a   : > { %v2328_v6 = vpop.f32.mrb[32].mxu1 }
 0x56b   : > { %v2335_v7 = vadd.f32 %v2328_v6, %v13580_v15  ;;  %v2330_v9 = vpop.f32.mrb[33].mxu1 }
 0x56c   : > { %v2336_v10 = vadd.f32 %v2330_v9, %v13582_v61  ;;  %v2332_v12 = vpop.f32.mrb[34].mxu1  ;;  %v2639_v61 = vld [vmem:[%s16100_s6] sm:$0x3] }
 0x56d   : > { %v2619_v13 = vadd.f32 %v2612_v1, %v2335_v7  ;;  %v2333_v14 = vpop.f32.mrb[35].mxu1  ;;  %v10077_v7 = vld [vmem:[%s16100_s6 + $0x6] sm:$0x3]  ;;  %v11847_v12 = vld [vmem:[%s16098_s9 + $0x314] ss:$8 sps:$4 sm:$0xff]  }
 0x56e   : > { %v2620_v16 = vadd.f32 %v2614_v2, %v2336_v10  ;;  %v11841_v2 = vld [vmem:[%s16098_s9 + $0x304] ss:$8 sps:$4 sm:$0xff]   ;;  %v11839_v10 = vld [vmem:[%s16098_s9 + $0x300] ss:$8 sps:$4 sm:$0xff]  }
 0x56f   : > { %v2633_v59 = vadd.f32 %v2626_v8, %v2619_v13  ;;  %v11845_v13 = vld [vmem:[%s16098_s9 + $0x310] ss:$8 sps:$4 sm:$0xff]   ;;  %v11853_v14 = vld [vmem:[%s16098_s9 + $0x324] ss:$8 sps:$4 sm:$0xff]  }
 0x570   : > { %v2634_v60 = vadd.f32 %v2630_v11, %v2620_v16  ;;  %v11844_v11 = vld [vmem:[%s16098_s9 + $0x204] ss:$8 sps:$4 sm:$0xff]  }
 0x571   : > { %v2635_v62 = vmax.f32 %v2633_v59, 0.0  ;;  %v10010_v16 = vld [vmem:[%s16100_s6 + $0x4] sm:$0x3]  ;;  %v11842_v59 = vld [vmem:[%s16098_s9 + $0x200] ss:$8 sps:$4 sm:$0xff]  }
 0x572   : > { %v2636_v17 = vmax.f32 %v2634_v60, 0.0  ;;  %v11850_v60 = vld [vmem:[%s16098_s9 + $0x214] ss:$8 sps:$4 sm:$0xff]  }
 0x573   : > { %v2637_v18 = vpack.c.bf16 %v2635_v62, %v2635_v62  ;;  %v11851_v62 = vld [vmem:[%s16098_s9 + $0x320] ss:$8 sps:$4 sm:$0xff]  }
 0x574   : > { %v13685_v19 = vpack.c.bf16 %v2636_v17, %v2636_v17  ;;  %v11859_v17 = vld [vmem:[%s16098_s9 + $0x334] ss:$8 sps:$4 sm:$0xff]  }
 0x575   : > { %v13688_v15 = vsel %vm2644_vm4, %v2637_v18, 0  ;;  %v11848_v18 = vld [vmem:[%s16098_s9 + $0x210] ss:$8 sps:$4 sm:$0xff]  }
 0x576   : > { %9909 = vmatprep.subr.msk.bf16.mxu1 %vm2644_vm4, %v13685_v19  ;;  %10078 = vmatprep.subr.msk.bf16.mxu0 %vm2644_vm4, %v13685_v19 }
 0x577   : > { %2652 = vmatpush1.bf16.msra.mxu1 %v13688_v15 }
 0x578   : > { %9912 = vmatprep.subr.msk.bf16.mxu1 %vm2644_vm4, %v13685_v19 }
 0x57a   : > { %9910 = vmatmul.mubr.msk.bf16.vlgmr.msra.gmra.mrb[36].mxu1 %vm2640_vm5, %v2639_v61  ;;  %v11865_v61 = vld [vmem:[%s16098_s9 + $0x344] ss:$8 sps:$4 sm:$0xff]  }
 0x57b   : > { %2732 = vmatpush1.bf16.msra.mxu1 %v13688_v15  ;;  %2763 = vmatprep.mubr.bf16.mxu1 %v12797_v21 }
 0x57c   : > { %2967 = vmatprep.subr.bf16.mxu1 %v11793_v20  ;;  %v11854_v20 = vld [vmem:[%s16098_s9 + $0x220] ss:$8 sps:$4 sm:$0xff]  }
 0x582   : > { %9913 = vmatmul.mubr.msk.bf16.vlgmr.msra.gmra.mrb[40].mxu1 %vm2640_vm5, %v9911_v23  ;;  %v11863_v23 = vld [vmem:[%s16098_s9 + $0x340] ss:$8 sps:$4 sm:$0xff]  }
 0x583   : > { %2968 = vmatpush1.bf16.msra.mxu1 %v11791_v22  ;;  %v11862_v22 = vld [vmem:[%s16098_s9 + $0x234] ss:$8 sps:$4 sm:$0xff]  }
 0x584   : > { %2969 = vmatprep.subr.bf16.mxu1 %v11796_v24  ;;  %v11871_v24 = vld [vmem:[%s16098_s9 + $0x354] ss:$8 sps:$4 sm:$0xff]  }
 0x587   : > { %2970 = vmatpush1.bf16.msra.mxu1 %v11794_v25  ;;  %v11860_v25 = vld [vmem:[%s16098_s9 + $0x230] ss:$8 sps:$4 sm:$0xff]  }
 0x588   : > { %2971 = vmatprep.subr.bf16.mxu1 %v11799_v26  ;;  %v11868_v26 = vld [vmem:[%s16098_s9 + $0x244] ss:$8 sps:$4 sm:$0xff]  }
 0x58b   : > { %2972 = vmatpush1.bf16.msra.mxu1 %v11797_v27  ;;  %v11869_v27 = vld [vmem:[%s16098_s9 + $0x350] ss:$8 sps:$4 sm:$0xff]  }
 0x58c   : > { %2973 = vmatprep.subr.bf16.mxu1 %v11802_v28  ;;  %v11877_v28 = vld [vmem:[%s16098_s9 + $0x364] ss:$8 sps:$4 sm:$0xff]  }
 0x58f   : > { %2974 = vmatpush1.bf16.msra.mxu1 %v11800_v29  ;;  %v11866_v29 = vld [vmem:[%s16098_s9 + $0x240] ss:$8 sps:$4 sm:$0xff]  }
 0x590   : > { %2975 = vmatprep.subr.bf16.mxu1 %v11805_v30  ;;  %v11874_v30 = vld [vmem:[%s16098_s9 + $0x254] ss:$8 sps:$4 sm:$0xff]  }
 0x593   : > { %2976 = vmatpush1.bf16.msra.mxu1 %v11803_v31  ;;  %v11875_v31 = vld [vmem:[%s16098_s9 + $0x360] ss:$8 sps:$4 sm:$0xff]  }
 0x594   : > { %2977 = vmatprep.subr.bf16.mxu1 %v11808_v32  ;;  %v11883_v32 = vld [vmem:[%s16098_s9 + $0x374] ss:$8 sps:$4 sm:$0xff]  }
 0x597   : > { %2978 = vmatpush1.bf16.msra.mxu1 %v11806_v33  ;;  %v11872_v33 = vld [vmem:[%s16098_s9 + $0x250] ss:$8 sps:$4 sm:$0xff]  }
 0x598   : > { %2979 = vmatprep.subr.bf16.mxu1 %v11811_v34  ;;  %v11880_v34 = vld [vmem:[%s16098_s9 + $0x264] ss:$8 sps:$4 sm:$0xff]  }
 0x59b   : > { %2980 = vmatpush1.bf16.msra.mxu1 %v11809_v35  ;;  %v11881_v35 = vld [vmem:[%s16098_s9 + $0x370] ss:$8 sps:$4 sm:$0xff]  }
 0x59c   : > { %2981 = vmatprep.subr.bf16.mxu1 %v11814_v36  ;;  %v11889_v36 = vld [vmem:[%s16098_s9 + $0x384] ss:$8 sps:$4 sm:$0xff]  }
 0x59f   : > { %2982 = vmatpush1.bf16.msra.mxu1 %v11812_v37  ;;  %v11878_v37 = vld [vmem:[%s16098_s9 + $0x260] ss:$8 sps:$4 sm:$0xff]  }
 0x5a0   : > { %2983 = vmatprep.subr.bf16.mxu1 %v11817_v38  ;;  %v11886_v38 = vld [vmem:[%s16098_s9 + $0x274] ss:$8 sps:$4 sm:$0xff]  }
 0x5a3   : > { %2984 = vmatpush1.bf16.msra.mxu1 %v11815_v39  ;;  %v11887_v39 = vld [vmem:[%s16098_s9 + $0x380] ss:$8 sps:$4 sm:$0xff]  }
 0x5a4   : > { %2985 = vmatprep.subr.bf16.mxu1 %v11820_v40  ;;  %v11895_v40 = vld [vmem:[%s16098_s9 + $0x394] ss:$8 sps:$4 sm:$0xff]  }
 0x5a7   : > { %2986 = vmatpush1.bf16.msra.mxu1 %v11818_v41  ;;  %v11884_v41 = vld [vmem:[%s16098_s9 + $0x270] ss:$8 sps:$4 sm:$0xff]  }
 0x5a8   : > { %2987 = vmatprep.subr.bf16.mxu1 %v11823_v42  ;;  %v11892_v42 = vld [vmem:[%s16098_s9 + $0x284] ss:$8 sps:$4 sm:$0xff]  }
 0x5ab   : > { %2988 = vmatpush1.bf16.msra.mxu1 %v11821_v43  ;;  %v11893_v43 = vld [vmem:[%s16098_s9 + $0x390] ss:$8 sps:$4 sm:$0xff]  }
 0x5ac   : > { %2989 = vmatprep.subr.bf16.mxu1 %v11826_v44  ;;  %v11901_v44 = vld [vmem:[%s16098_s9 + $0x3a4] ss:$8 sps:$4 sm:$0xff]  }
 0x5af   : > { %2990 = vmatpush1.bf16.msra.mxu1 %v11824_v45  ;;  %v11890_v45 = vld [vmem:[%s16098_s9 + $0x280] ss:$8 sps:$4 sm:$0xff]  }
 0x5b0   : > { %2991 = vmatprep.subr.bf16.mxu1 %v11829_v46  ;;  %v11898_v46 = vld [vmem:[%s16098_s9 + $0x294] ss:$8 sps:$4 sm:$0xff]  }
 0x5b3   : > { %2992 = vmatpush1.bf16.msra.mxu1 %v11827_v47  ;;  %v11899_v47 = vld [vmem:[%s16098_s9 + $0x3a0] ss:$8 sps:$4 sm:$0xff]  }
 0x5b4   : > { %2993 = vmatprep.subr.bf16.mxu1 %v11832_v48  ;;  %v11907_v48 = vld [vmem:[%s16098_s9 + $0x3b4] ss:$8 sps:$4 sm:$0xff]  }
 0x5b7   : > { %2994 = vmatpush1.bf16.msra.mxu1 %v11830_v49  ;;  %v11896_v49 = vld [vmem:[%s16098_s9 + $0x290] ss:$8 sps:$4 sm:$0xff]  }
 0x5b8   : > { %2995 = vmatprep.subr.bf16.mxu1 %v11835_v50  ;;  %v11904_v50 = vld [vmem:[%s16098_s9 + $0x2a4] ss:$8 sps:$4 sm:$0xff]  }
 0x5bb   : > { %2996 = vmatpush1.bf16.msra.mxu1 %v11833_v51  ;;  %v11905_v51 = vld [vmem:[%s16098_s9 + $0x3b0] ss:$8 sps:$4 sm:$0xff]  }
 0x5bc   : > { %2997 = vmatprep.subr.bf16.mxu1 %v11838_v52  ;;  %v11902_v52 = vld [vmem:[%s16098_s9 + $0x2a0] ss:$8 sps:$4 sm:$0xff]  }
 0x5bf   : > { %2998 = vmatpush1.bf16.msra.mxu1 %v11836_v53  ;;  %v11910_v53 = vld [vmem:[%s16098_s9 + $0x2b4] ss:$8 sps:$4 sm:$0xff]  }
 0x5c0   : > { %10011 = vmatprep.subr.msk.bf16.mxu1 %vm2644_vm4, %v13685_v19  ;;  %v11856_v19 = vld [vmem:[%s16098_s9 + $0x224] ss:$8 sps:$4 sm:$0xff]  }
 0x64d   : > { %v2685_v54 = vpop.f32.mrb[36].mxu1 }
 0x64e   : > { %v2687_v56 = vpop.f32.mrb[37].mxu1  ;;  %v2692_v0 = vpack.c.bf16 %v2685_v54, %v2685_v54  ;;  %v11908_v54 = vld [vmem:[%s16098_s9 + $0x2b0] ss:$8 sps:$4 sm:$0xff]  }
 0x64f   : > { %v2693_v58 = vpack.c.bf16 %v2687_v56, %v2687_v56  ;;  %v2689_v63 = vpop.f32.mrb[38].mxu1  ;;  %v11913_v56 = vld [vmem:[%s16098_s9 + $0x3c4] ss:$8 sps:$4 sm:$0xff]  }
 0x650   : > { %v2690_v1 = vpop.f32.mrb[39].mxu1  ;;  %v11914_v63 = vld [vmem:[%s16098_s9 + $0x2c0] ss:$8 sps:$4 sm:$0xff]  }
 0x651   : > { %3200 = vmatprep.mubr.bf16.mxu0 %v2693_v58  ;;  %v11911_v58 = vld [vmem:[%s16098_s9 + $0x3c0] ss:$8 sps:$4 sm:$0xff]   ;;  %v11917_v1 = vld [vmem:[%s16098_s9 + $0x3d0] ss:$8 sps:$4 sm:$0xff]  }
 0x652   : > { %3201 = vmatmul.mubr.bf16.vlgmr.msra.gmra.mrb[20].mxu0 %v2692_v0  ;;  %v11916_v0 = vld [vmem:[%s16098_s9 + $0x2c4] ss:$8 sps:$4 sm:$0xff]  }
 0x653   : > { %3499 = vmatpush1.bf16.msra.mxu0 %v13688_v15  ;;  %3530 = vmatprep.mubr.bf16.mxu0 %v12797_v21 }
 0x654   : > { %3734 = vmatprep.subr.bf16.mxu0 %v11841_v2  ;;  %v11919_v2 = vld [vmem:[%s16098_s9 + $0x3d4] ss:$8 sps:$4 sm:$0xff]  }
 0x655   : > { %v2765_v3 = vpop.f32.mrb[40].mxu1 }
 0x656   : > { %v2767_v4 = vpop.f32.mrb[41].mxu1  ;;  %v2772_v8 = vpack.c.bf16 %v2765_v3, %v2765_v3  ;;  %v11922_v3 = vld [vmem:[%s16098_s9 + $0x2d4] ss:$8 sps:$4 sm:$0xff]  }
 0x657   : > { %v2773_v5 = vpack.c.bf16 %v2767_v4, %v2767_v4  ;;  %v2769_v6 = vpop.f32.mrb[42].mxu1  ;;  %v11920_v4 = vld [vmem:[%s16098_s9 + $0x2d0] ss:$8 sps:$4 sm:$0xff]  }
 0x658   : > { %v2770_v9 = vpop.f32.mrb[43].mxu1  ;;  %v11923_v6 = vld [vmem:[%s16098_s9 + $0x3e0] ss:$8 sps:$4 sm:$0xff]  }
 0x659   : > { %2999 = vmatprep.mubr.bf16.mxu1 %v2773_v5  ;;  %v11925_v5 = vld [vmem:[%s16098_s9 + $0x3e4] ss:$8 sps:$4 sm:$0xff]   ;;  %v11929_v9 = vld [vmem:[%s16098_s9 + $0x3f0] ss:$8 sps:$4 sm:$0xff]  }
 0x65a   : > { %3000 = vmatmul.mubr.bf16.vlgmr.msra.gmra.mrb[44].mxu1 %v2772_v8  ;;  %10079 = vmatmul.mubr.msk.bf16.vlgmr.msra.gmra.mrb[24].mxu0 %vm2640_vm5, %v10077_v7  ;;  %v11926_v7 = vld [vmem:[%s16098_s9 + $0x2e0] ss:$8 sps:$4 sm:$0xff]   ;;  %v11928_v8 = vld [vmem:[%s16098_s9 + $0x2e4] ss:$8 sps:$4 sm:$0xff]  }
 0x65b   : > { %3215 = vmatpush1.bf16.msra.mxu1 %v13688_v15  ;;  %3246 = vmatprep.mubr.bf16.mxu1 %v12797_v21  ;;  %v11857_v15 = vld [vmem:[%s16098_s9 + $0x330] ss:$8 sps:$4 sm:$0xff]  }
 0x65c   : > { %3735 = vmatpush1.bf16.msra.mxu0 %v11839_v10  ;;  %3450 = vmatprep.subr.bf16.mxu1 %v11844_v11  ;;  %v11931_v10 = vld [vmem:[%s16098_s9 + $0x3f4] ss:$8 sps:$4 sm:$0xff]  }
 0x65d   : > { %3736 = vmatprep.subr.bf16.mxu0 %v11847_v12  ;;  %v11934_v11 = vld [vmem:[%s16098_s9 + $0x2f4] ss:$8 sps:$4 sm:$0xff]   ;;  %v11932_v12 = vld [vmem:[%s16098_s9 + $0x2f0] ss:$8 sps:$4 sm:$0xff]  }
 0x660   : > { %3737 = vmatpush1.bf16.msra.mxu0 %v11845_v13  ;;  %v11937_v13 = vld [vmem:[%s16057_s11 + $0x4] ss:$8 sps:$4 sm:$0xff]  }
 0x661   : > { %3738 = vmatprep.subr.bf16.mxu0 %v11853_v14 }
 0x662   : > { %10012 = vmatmul.mubr.msk.bf16.vlgmr.msra.gmra.mrb[48].mxu1 %vm2640_vm5, %v10010_v16 }
 0x663   : > { %3451 = vmatpush1.bf16.msra.mxu1 %v11842_v59 }
 0x664   : > { %3452 = vmatprep.subr.bf16.mxu1 %v11850_v60  ;;  %3739 = vmatpush1.bf16.msra.mxu0 %v11851_v62 }
 0x665   : > { %3740 = vmatprep.subr.bf16.mxu0 %v11859_v17 }
 0x667   : > { %3453 = vmatpush1.bf16.msra.mxu1 %v11848_v18 }
 0x668   : > { %3454 = vmatprep.subr.bf16.mxu1 %v11856_v19  ;;  %3741 = vmatpush1.bf16.msra.mxu0 %v11857_v15 }
 0x669   : > { %3742 = vmatprep.subr.bf16.mxu0 %v11865_v61 }
 0x66b   : > { %3455 = vmatpush1.bf16.msra.mxu1 %v11854_v20 }
 0x66c   : > { %3456 = vmatprep.subr.bf16.mxu1 %v11862_v22  ;;  %3743 = vmatpush1.bf16.msra.mxu0 %v11863_v23 }
 0x66d   : > { %3744 = vmatprep.subr.bf16.mxu0 %v11871_v24 }
 0x66f   : > { %3457 = vmatpush1.bf16.msra.mxu1 %v11860_v25  ;;  %v11935_v25 = vld [vmem:[%s16057_s11] ss:$8 sps:$4 sm:$0xff]  }
 0x670   : > { %3458 = vmatprep.subr.bf16.mxu1 %v11868_v26  ;;  %3745 = vmatpush1.bf16.msra.mxu0 %v11869_v27 }
 0x671   : > { %3746 = vmatprep.subr.bf16.mxu0 %v11877_v28  ;;  %v11940_v28 = vld [vmem:[%s16057_s11 + $0x14] ss:$8 sps:$4 sm:$0xff]  }
 0x673   : > { %3459 = vmatpush1.bf16.msra.mxu1 %v11866_v29  ;;  %v11938_v29 = vld [vmem:[%s16057_s11 + $0x10] ss:$8 sps:$4 sm:$0xff]  }
 0x674   : > { %3460 = vmatprep.subr.bf16.mxu1 %v11874_v30  ;;  %3747 = vmatpush1.bf16.msra.mxu0 %v11875_v31  ;;  %v11943_v30 = vld [vmem:[%s16057_s11 + $0x24] ss:$8 sps:$4 sm:$0xff]  }
 0x675   : > { %3748 = vmatprep.subr.bf16.mxu0 %v11883_v32 }
 0x677   : > { %3461 = vmatpush1.bf16.msra.mxu1 %v11872_v33 }
 0x678   : > { %3462 = vmatprep.subr.bf16.mxu1 %v11880_v34  ;;  %3749 = vmatpush1.bf16.msra.mxu0 %v11881_v35  ;;  %v11941_v35 = vld [vmem:[%s16057_s11 + $0x20] ss:$8 sps:$4 sm:$0xff]  }
 0x679   : > { %3750 = vmatprep.subr.bf16.mxu0 %v11889_v36 }
 0x67b   : > { %3463 = vmatpush1.bf16.msra.mxu1 %v11878_v37 }
 0x67c   : > { %3464 = vmatprep.subr.bf16.mxu1 %v11886_v38  ;;  %3751 = vmatpush1.bf16.msra.mxu0 %v11887_v39  ;;  %v11946_v38 = vld [vmem:[%s16057_s11 + $0x34] ss:$8 sps:$4 sm:$0xff]   ;;  %v11944_v39 = vld [vmem:[%s16057_s11 + $0x30] ss:$8 sps:$4 sm:$0xff]  }
 0x67d   : > { %3752 = vmatprep.subr.bf16.mxu0 %v11895_v40  ;;  %v11949_v40 = vld [vmem:[%s16057_s11 + $0x44] ss:$8 sps:$4 sm:$0xff]  }
 0x67f   : > { %3465 = vmatpush1.bf16.msra.mxu1 %v11884_v41  ;;  %v11947_v41 = vld [vmem:[%s16057_s11 + $0x40] ss:$8 sps:$4 sm:$0xff]  }
 0x680   : > { %3466 = vmatprep.subr.bf16.mxu1 %v11892_v42  ;;  %3753 = vmatpush1.bf16.msra.mxu0 %v11893_v43  ;;  %v11952_v42 = vld [vmem:[%s16057_s11 + $0x54] ss:$8 sps:$4 sm:$0xff]   ;;  %v11950_v43 = vld [vmem:[%s16057_s11 + $0x50] ss:$8 sps:$4 sm:$0xff]  }
 0x681   : > { %3754 = vmatprep.subr.bf16.mxu0 %v11901_v44  ;;  %v11955_v44 = vld [vmem:[%s16057_s11 + $0x64] ss:$8 sps:$4 sm:$0xff]  }
 0x683   : > { %3467 = vmatpush1.bf16.msra.mxu1 %v11890_v45  ;;  %v11953_v45 = vld [vmem:[%s16057_s11 + $0x60] ss:$8 sps:$4 sm:$0xff]  }
 0x684   : > { %3468 = vmatprep.subr.bf16.mxu1 %v11898_v46  ;;  %3755 = vmatpush1.bf16.msra.mxu0 %v11899_v47  ;;  %v11958_v46 = vld [vmem:[%s16057_s11 + $0x74] ss:$8 sps:$4 sm:$0xff]   ;;  %v11956_v47 = vld [vmem:[%s16057_s11 + $0x70] ss:$8 sps:$4 sm:$0xff]  }
 0x685   : > { %3756 = vmatprep.subr.bf16.mxu0 %v11907_v48  ;;  %v11961_v48 = vld [vmem:[%s16057_s11 + $0x84] ss:$8 sps:$4 sm:$0xff]  }
 0x687   : > { %3469 = vmatpush1.bf16.msra.mxu1 %v11896_v49  ;;  %v11959_v49 = vld [vmem:[%s16057_s11 + $0x80] ss:$8 sps:$4 sm:$0xff]  }
 0x688   : > { %3470 = vmatprep.subr.bf16.mxu1 %v11904_v50  ;;  %3757 = vmatpush1.bf16.msra.mxu0 %v11905_v51  ;;  %v11964_v50 = vld [vmem:[%s16057_s11 + $0x94] ss:$8 sps:$4 sm:$0xff]   ;;  %v11962_v51 = vld [vmem:[%s16057_s11 + $0x90] ss:$8 sps:$4 sm:$0xff]  }
 0x689   : > { %3758 = vmatprep.subr.bf16.mxu0 %v11913_v56  ;;  %v11968_v56 = vld [vmem:[%s16057_s11 + $0xb0] ss:$8 sps:$4 sm:$0xff]  }
 0x68b   : > { %3471 = vmatpush1.bf16.msra.mxu1 %v11902_v52  ;;  %v11967_v52 = vld [vmem:[%s16057_s11 + $0xa4] ss:$8 sps:$4 sm:$0xff]  }
 0x68c   : > { %3472 = vmatprep.subr.bf16.mxu1 %v11910_v53  ;;  %3759 = vmatpush1.bf16.msra.mxu0 %v11911_v58  ;;  %v11965_v53 = vld [vmem:[%s16057_s11 + $0xa0] ss:$8 sps:$4 sm:$0xff]  }
 0x68d   : > { %3760 = vmatprep.subr.bf16.mxu0 %v11919_v2  ;;  %v11971_v58 = vld [vmem:[%s16057_s11 + $0xc0] ss:$8 sps:$4 sm:$0xff]   ;;  %v11979_v2 = vld [vmem:[%s16057_s11 + $0xe4] ss:$8 sps:$4 sm:$0xff]  }
 0x68f   : > { %3473 = vmatpush1.bf16.msra.mxu1 %v11908_v54  ;;  %v11970_v54 = vld [vmem:[%s16057_s11 + $0xb4] ss:$8 sps:$4 sm:$0xff]  }
 0x690   : > { %3474 = vmatprep.subr.bf16.mxu1 %v11916_v0  ;;  %3761 = vmatpush1.bf16.msra.mxu0 %v11917_v1  ;;  %v11976_v0 = vld [vmem:[%s16057_s11 + $0xd4] ss:$8 sps:$4 sm:$0xff]   ;;  %v11974_v1 = vld [vmem:[%s16057_s11 + $0xd0] ss:$8 sps:$4 sm:$0xff]  }
 0x691   : > { %3762 = vmatprep.subr.bf16.mxu0 %v11925_v5  ;;  %v11980_v5 = vld [vmem:[%s16057_s11 + $0xf0] ss:$8 sps:$4 sm:$0xff]  }
 0x693   : > { %3475 = vmatpush1.bf16.msra.mxu1 %v11914_v63  ;;  %v11973_v63 = vld [vmem:[%s16057_s11 + $0xc4] ss:$8 sps:$4 sm:$0xff]  }
 0x694   : > { %3476 = vmatprep.subr.bf16.mxu1 %v11922_v3  ;;  %3763 = vmatpush1.bf16.msra.mxu0 %v11923_v6  ;;  %v11977_v3 = vld [vmem:[%s16057_s11 + $0xe0] ss:$8 sps:$4 sm:$0xff]  }
 0x695   : > { %3764 = vmatprep.subr.bf16.mxu0 %v11931_v10  ;;  %v3777_v10 = vld [vmem:[%s16101_s27] sm:$0x3]  ;;  %s764_s27 = scalar_lea.vmem %s16071_s25, %s16102_s0 }
 0x697   : > { %3477 = vmatpush1.bf16.msra.mxu1 %v11920_v4  ;;  %v11982_v4 = vld [vmem:[%s16057_s11 + $0xf4] ss:$8 sps:$4 sm:$0xff]  }
 0x698   : > { %3478 = vmatprep.subr.bf16.mxu1 %v11928_v8  ;;  %3765 = vmatpush1.bf16.msra.mxu0 %v11929_v9 }
 0x699   : > { %4324 = vmatprep.subr.bf16.mxu0 %v11937_v13  ;;  %v3782_v13 = vrot.slane %v3777_v10, %v13245_v55 }
 0x69b   : > { %3479 = vmatpush1.bf16.msra.mxu1 %v11926_v7 }
 0x69c   : > { %3480 = vmatprep.subr.bf16.mxu1 %v11934_v11 }
 0x69f   : > { %3481 = vmatpush1.bf16.msra.mxu1 %v11932_v12 }
 0x725   : > { %v3202_v14 = vpop.f32.mrb[20].mxu0 }
 0x726   : > { %v3204_v16 = vpop.f32.mrb[21].mxu0 }
 0x727   : > { %v3206_v59 = vpop.f32.mrb[22].mxu0 }
 0x728   : > { %v3207_v60 = vpop.f32.mrb[23].mxu0  ;;  %v3786_v59 = vrot.slane %v3777_v10, %v13250_v57 }
 0x72d   : > { %v3001_v62 = vpop.f32.mrb[44].mxu1  ;;  %v3532_v17 = vpop.f32.mrb[24].mxu0 }
 0x72e   : > { %v14012_v18 = vadd.f32 %v3202_v14, %v3001_v62  ;;  %v3003_v19 = vpop.f32.mrb[45].mxu1  ;;  %v3539_v15 = vpack.c.bf16 %v3532_v17, %v3532_v17  ;;  %v3534_v61 = vpop.f32.mrb[25].mxu0 }
 0x72f   : > { %v14014_v20 = vadd.f32 %v3204_v16, %v3003_v19  ;;  %v3005_v22 = vpop.f32.mrb[46].mxu1  ;;  %v3540_v23 = vpack.c.bf16 %v3534_v61, %v3534_v61  ;;  %v3536_v24 = vpop.f32.mrb[26].mxu0 }
 0x730   : > { %v3006_v26 = vpop.f32.mrb[47].mxu1  ;;  %v3537_v27 = vpop.f32.mrb[27].mxu0 }
 0x731   : > { %3766 = vmatprep.mubr.bf16.mxu0 %v3540_v23  ;;  %v11985_v26 = vld [vmem:[%s16057_s11 + $0x104] ss:$8 sps:$4 sm:$0xff]   ;;  %v11983_v27 = vld [vmem:[%s16057_s11 + $0x100] ss:$8 sps:$4 sm:$0xff]  }
 0x732   : > { %3767 = vmatmul.mubr.bf16.vlgmr.msra.gmra.mrb[28].mxu0 %v3539_v15 }
 0x733   : > { %4325 = vmatpush1.bf16.msra.mxu0 %v11935_v25 }
 0x734   : > { %4326 = vmatprep.subr.bf16.mxu0 %v11940_v28  ;;  %v10146_v28 = vld [vmem:[%s16056_s10 + $0x1] sm:$0x1] }
 0x735   : > { %v3248_v31 = vpop.f32.mrb[48].mxu1 }
 0x736   : > { %v3250_v32 = vpop.f32.mrb[49].mxu1  ;;  %v3255_v36 = vpack.c.bf16 %v3248_v31, %v3248_v31  ;;  %v11991_v31 = vld [vmem:[%s16057_s11 + $0x124] ss:$8 sps:$4 sm:$0xff]  }
 0x737   : > { %v3256_v33 = vpack.c.bf16 %v3250_v32, %v3250_v32  ;;  %v3252_v34 = vpop.f32.mrb[50].mxu1  ;;  %4327 = vmatpush1.bf16.msra.mxu0 %v11938_v29  ;;  %v11988_v29 = vld [vmem:[%s16057_s11 + $0x114] ss:$8 sps:$4 sm:$0xff]   ;;  %v11989_v32 = vld [vmem:[%s16057_s11 + $0x120] ss:$8 sps:$4 sm:$0xff]  }
 0x738   : > { %v3253_v37 = vpop.f32.mrb[51].mxu1  ;;  %4328 = vmatprep.subr.bf16.mxu0 %v11943_v30  ;;  %v11986_v30 = vld [vmem:[%s16057_s11 + $0x110] ss:$8 sps:$4 sm:$0xff]  }
 0x739   : > { %3482 = vmatprep.mubr.bf16.mxu1 %v3256_v33  ;;  %v11994_v33 = vld [vmem:[%s16057_s11 + $0x134] ss:$8 sps:$4 sm:$0xff]   ;;  %v11992_v34 = vld [vmem:[%s16057_s11 + $0x130] ss:$8 sps:$4 sm:$0xff]  }
 0x73a   : > { %3483 = vmatmul.mubr.bf16.vlgmr.msra.gmra.mrb[52].mxu1 %v3255_v36  ;;  %v11995_v36 = vld [vmem:[%s16057_s11 + $0x140] ss:$8 sps:$4 sm:$0xff]   ;;  %v12000_v37 = vld [vmem:[%s16057_s11 + $0x154] ss:$8 sps:$4 sm:$0xff]  }
 0x73b   : > { %4329 = vmatpush1.bf16.msra.mxu0 %v11941_v35  ;;  %3839 = vmatprep.mubr.bf16.mxu1 %v12797_v21  ;;  %v11997_v35 = vld [vmem:[%s16057_s11 + $0x144] ss:$8 sps:$4 sm:$0xff]  }
 0x73c   : > { %4330 = vmatprep.subr.bf16.mxu0 %v11946_v38  ;;  %v11998_v38 = vld [vmem:[%s16057_s11 + $0x150] ss:$8 sps:$4 sm:$0xff]  }
 0x73f   : > { %4331 = vmatpush1.bf16.msra.mxu0 %v11944_v39  ;;  %v12003_v39 = vld [vmem:[%s16057_s11 + $0x164] ss:$8 sps:$4 sm:$0xff]  }
 0x740   : > { %4332 = vmatprep.subr.bf16.mxu0 %v11949_v40  ;;  %v12001_v40 = vld [vmem:[%s16057_s11 + $0x160] ss:$8 sps:$4 sm:$0xff]  }
 0x743   : > { %4333 = vmatpush1.bf16.msra.mxu0 %v11947_v41  ;;  %v12006_v41 = vld [vmem:[%s16057_s11 + $0x174] ss:$8 sps:$4 sm:$0xff]  }
 0x744   : > { %4334 = vmatprep.subr.bf16.mxu0 %v11952_v42  ;;  %v12004_v42 = vld [vmem:[%s16057_s11 + $0x170] ss:$8 sps:$4 sm:$0xff]  }
 0x747   : > { %4335 = vmatpush1.bf16.msra.mxu0 %v11950_v43  ;;  %v12009_v43 = vld [vmem:[%s16057_s11 + $0x184] ss:$8 sps:$4 sm:$0xff]  }
 0x748   : > { %4336 = vmatprep.subr.bf16.mxu0 %v11955_v44  ;;  %v12007_v44 = vld [vmem:[%s16057_s11 + $0x180] ss:$8 sps:$4 sm:$0xff]  }
 0x74b   : > { %4337 = vmatpush1.bf16.msra.mxu0 %v11953_v45  ;;  %v12012_v45 = vld [vmem:[%s16057_s11 + $0x194] ss:$8 sps:$4 sm:$0xff]  }
 0x74c   : > { %4338 = vmatprep.subr.bf16.mxu0 %v11958_v46  ;;  %v12010_v46 = vld [vmem:[%s16057_s11 + $0x190] ss:$8 sps:$4 sm:$0xff]  }
 0x74f   : > { %4339 = vmatpush1.bf16.msra.mxu0 %v11956_v47  ;;  %v12015_v47 = vld [vmem:[%s16057_s11 + $0x1a4] ss:$8 sps:$4 sm:$0xff]  }
 0x750   : > { %4340 = vmatprep.subr.bf16.mxu0 %v11961_v48  ;;  %v12013_v48 = vld [vmem:[%s16057_s11 + $0x1a0] ss:$8 sps:$4 sm:$0xff]  }
 0x753   : > { %4341 = vmatpush1.bf16.msra.mxu0 %v11959_v49  ;;  %v12018_v49 = vld [vmem:[%s16057_s11 + $0x1b4] ss:$8 sps:$4 sm:$0xff]  }
 0x754   : > { %4342 = vmatprep.subr.bf16.mxu0 %v11964_v50  ;;  %v12016_v50 = vld [vmem:[%s16057_s11 + $0x1b0] ss:$8 sps:$4 sm:$0xff]  }
 0x757   : > { %4343 = vmatpush1.bf16.msra.mxu0 %v11962_v51  ;;  %v12021_v51 = vld [vmem:[%s16057_s11 + $0x1c4] ss:$8 sps:$4 sm:$0xff]  }
 0x758   : > { %4344 = vmatprep.subr.bf16.mxu0 %v11967_v52  ;;  %v12019_v52 = vld [vmem:[%s16057_s11 + $0x1c0] ss:$8 sps:$4 sm:$0xff]  }
 0x75b   : > { %4345 = vmatpush1.bf16.msra.mxu0 %v11965_v53  ;;  %v12024_v53 = vld [vmem:[%s16057_s11 + $0x1d4] ss:$8 sps:$4 sm:$0xff]  }
 0x75c   : > { %4346 = vmatprep.subr.bf16.mxu0 %v11970_v54  ;;  %v12022_v54 = vld [vmem:[%s16057_s11 + $0x1d0] ss:$8 sps:$4 sm:$0xff]  }
 0x75f   : > { %4347 = vmatpush1.bf16.msra.mxu0 %v11968_v56  ;;  %v12027_v56 = vld [vmem:[%s16057_s11 + $0x1e4] ss:$8 sps:$4 sm:$0xff]  }
 0x760   : > { %4348 = vmatprep.subr.bf16.mxu0 %v11973_v63  ;;  %v12030_v63 = vld [vmem:[%s16057_s11 + $0x1f4] ss:$8 sps:$4 sm:$0xff]  }
 0x763   : > { %4349 = vmatpush1.bf16.msra.mxu0 %v11971_v58  ;;  %v12025_v58 = vld [vmem:[%s16057_s11 + $0x1e0] ss:$8 sps:$4 sm:$0xff]  }
 0x764   : > { %4350 = vmatprep.subr.bf16.mxu0 %v11976_v0  ;;  %v12028_v0 = vld [vmem:[%s16057_s11 + $0x1f0] ss:$8 sps:$4 sm:$0xff]  }
 0x767   : > { %4351 = vmatpush1.bf16.msra.mxu0 %v11974_v1 }
 0x768   : > { %4352 = vmatprep.subr.bf16.mxu0 %v11979_v2 }
 0x76b   : > { %4353 = vmatpush1.bf16.msra.mxu0 %v11977_v3 }
 0x76c   : > { %4354 = vmatprep.subr.bf16.mxu0 %v11982_v4 }
 0x76f   : > { %4355 = vmatpush1.bf16.msra.mxu0 %v11980_v5 }
 0x805   : > { %v3768_v6 = vpop.f32.mrb[28].mxu0 }
 0x806   : > { %v3770_v7 = vpop.f32.mrb[29].mxu0 }
 0x807   : > { %v3772_v8 = vpop.f32.mrb[30].mxu0 }
 0x808   : > { %v3773_v9 = vpop.f32.mrb[31].mxu0 }
 0x80d   : > { %v3484_v11 = vpop.f32.mrb[52].mxu1 }
 0x80e   : > { %v3491_v12 = vadd.f32 %v3484_v11, %v14012_v18  ;;  %v3486_v14 = vpop.f32.mrb[53].mxu1 }
 0x80f   : > { %v3492_v16 = vadd.f32 %v3486_v14, %v14014_v20  ;;  %v3488_v60 = vpop.f32.mrb[54].mxu1  ;;  %v3795_v20 = vld [vmem:[%s16056_s10] sm:$0x1] }
 0x810   : > { %v3775_v62 = vadd.f32 %v3768_v6, %v3491_v12  ;;  %v3489_v17 = vpop.f32.mrb[55].mxu1  ;;  %v10312_v12 = vld [vmem:[%s16056_s10 + $0x3] sm:$0x1]  ;;  %v12039_v60 = vld [vmem:[%s16057_s11 + $0x314] ss:$8 sps:$4 sm:$0xff]  }
 0x811   : > { %v3776_v19 = vadd.f32 %v3770_v7, %v3492_v16  ;;  %v12033_v7 = vld [vmem:[%s16057_s11 + $0x304] ss:$8 sps:$4 sm:$0xff]   ;;  %v12031_v16 = vld [vmem:[%s16057_s11 + $0x300] ss:$8 sps:$4 sm:$0xff]  }
 0x812   : > { %v3789_v15 = vadd.f32 %v3782_v13, %v3775_v62  ;;  %v12037_v62 = vld [vmem:[%s16057_s11 + $0x310] ss:$8 sps:$4 sm:$0xff]   ;;  %v12045_v17 = vld [vmem:[%s16057_s11 + $0x324] ss:$8 sps:$4 sm:$0xff]  }
 0x813   : > { %v3790_v61 = vadd.f32 %v3786_v59, %v3776_v19  ;;  %v12036_v59 = vld [vmem:[%s16057_s11 + $0x204] ss:$8 sps:$4 sm:$0xff]   ;;  %v10245_v19 = vld [vmem:[%s16056_s10 + $0x2] sm:$0x1] }
 0x814   : > { %v3791_v22 = vmax.f32 %v3789_v15, 0.0  ;;  %v12034_v15 = vld [vmem:[%s16057_s11 + $0x200] ss:$8 sps:$4 sm:$0xff]  }
 0x815   : > { %v3792_v23 = vmax.f32 %v3790_v61, 0.0  ;;  %v12042_v61 = vld [vmem:[%s16057_s11 + $0x214] ss:$8 sps:$4 sm:$0xff]  }
 0x816   : > { %v3793_v24 = vpack.c.bf16 %v3791_v22, %v3791_v22  ;;  %v12043_v22 = vld [vmem:[%s16057_s11 + $0x320] ss:$8 sps:$4 sm:$0xff]  }
 0x817   : > { %v14117_v25 = vpack.c.bf16 %v3792_v23, %v3792_v23  ;;  %v12051_v23 = vld [vmem:[%s16057_s11 + $0x334] ss:$8 sps:$4 sm:$0xff]  }
 0x818   : > { %v14120_v18 = vsel %vm3800_vm6, %v3793_v24, 0  ;;  %v12040_v24 = vld [vmem:[%s16057_s11 + $0x210] ss:$8 sps:$4 sm:$0xff]  }
 0x819   : > { %10144 = vmatprep.subr.msk.bf16.mxu1 %vm3800_vm6, %v14117_v25  ;;  %10313 = vmatprep.subr.msk.bf16.mxu0 %vm3800_vm6, %v14117_v25 }
 0x81a   : > { %3808 = vmatpush1.bf16.msra.mxu1 %v14120_v18 }
 0x81b   : > { %10147 = vmatprep.subr.msk.bf16.mxu1 %vm3800_vm6, %v14117_v25 }
 0x81d   : > { %10145 = vmatmul.mubr.msk.bf16.vlgmr.msra.gmra.mrb[56].mxu1 %vm3796_vm7, %v3795_v20  ;;  %v12057_v20 = vld [vmem:[%s16057_s11 + $0x344] ss:$8 sps:$4 sm:$0xff]  }
 0x81e   : > { %3888 = vmatpush1.bf16.msra.mxu1 %v14120_v18  ;;  %3919 = vmatprep.mubr.bf16.mxu1 %v12797_v21 }
 0x81f   : > { %4123 = vmatprep.subr.bf16.mxu1 %v11985_v26  ;;  %v12046_v26 = vld [vmem:[%s16057_s11 + $0x220] ss:$8 sps:$4 sm:$0xff]  }
 0x825   : > { %10148 = vmatmul.mubr.msk.bf16.vlgmr.msra.gmra.mrb[60].mxu1 %vm3796_vm7, %v10146_v28  ;;  %v12055_v28 = vld [vmem:[%s16057_s11 + $0x340] ss:$8 sps:$4 sm:$0xff]  }
 0x826   : > { %4124 = vmatpush1.bf16.msra.mxu1 %v11983_v27  ;;  %v12054_v27 = vld [vmem:[%s16057_s11 + $0x234] ss:$8 sps:$4 sm:$0xff]  }
 0x827   : > { %4125 = vmatprep.subr.bf16.mxu1 %v11988_v29  ;;  %v12063_v29 = vld [vmem:[%s16057_s11 + $0x354] ss:$8 sps:$4 sm:$0xff]  }
 0x82a   : > { %4126 = vmatpush1.bf16.msra.mxu1 %v11986_v30  ;;  %v12052_v30 = vld [vmem:[%s16057_s11 + $0x230] ss:$8 sps:$4 sm:$0xff]  }
 0x82b   : > { %4127 = vmatprep.subr.bf16.mxu1 %v11991_v31  ;;  %v12060_v31 = vld [vmem:[%s16057_s11 + $0x244] ss:$8 sps:$4 sm:$0xff]  }
 0x82e   : > { %4128 = vmatpush1.bf16.msra.mxu1 %v11989_v32  ;;  %v12061_v32 = vld [vmem:[%s16057_s11 + $0x350] ss:$8 sps:$4 sm:$0xff]  }
 0x82f   : > { %4129 = vmatprep.subr.bf16.mxu1 %v11994_v33  ;;  %v12069_v33 = vld [vmem:[%s16057_s11 + $0x364] ss:$8 sps:$4 sm:$0xff]  }
 0x832   : > { %4130 = vmatpush1.bf16.msra.mxu1 %v11992_v34  ;;  %v12058_v34 = vld [vmem:[%s16057_s11 + $0x240] ss:$8 sps:$4 sm:$0xff]  }
 0x833   : > { %4131 = vmatprep.subr.bf16.mxu1 %v11997_v35  ;;  %v12066_v35 = vld [vmem:[%s16057_s11 + $0x254] ss:$8 sps:$4 sm:$0xff]  }
 0x836   : > { %4132 = vmatpush1.bf16.msra.mxu1 %v11995_v36  ;;  %v12067_v36 = vld [vmem:[%s16057_s11 + $0x360] ss:$8 sps:$4 sm:$0xff]  }
 0x837   : > { %4133 = vmatprep.subr.bf16.mxu1 %v12000_v37  ;;  %v12075_v37 = vld [vmem:[%s16057_s11 + $0x374] ss:$8 sps:$4 sm:$0xff]  }
 0x83a   : > { %4134 = vmatpush1.bf16.msra.mxu1 %v11998_v38  ;;  %v12064_v38 = vld [vmem:[%s16057_s11 + $0x250] ss:$8 sps:$4 sm:$0xff]  }
 0x83b   : > { %4135 = vmatprep.subr.bf16.mxu1 %v12003_v39  ;;  %v12072_v39 = vld [vmem:[%s16057_s11 + $0x264] ss:$8 sps:$4 sm:$0xff]  }
 0x83e   : > { %4136 = vmatpush1.bf16.msra.mxu1 %v12001_v40  ;;  %v12073_v40 = vld [vmem:[%s16057_s11 + $0x370] ss:$8 sps:$4 sm:$0xff]  }
 0x83f   : > { %4137 = vmatprep.subr.bf16.mxu1 %v12006_v41  ;;  %v12081_v41 = vld [vmem:[%s16057_s11 + $0x384] ss:$8 sps:$4 sm:$0xff]  }
 0x842   : > { %4138 = vmatpush1.bf16.msra.mxu1 %v12004_v42  ;;  %v12070_v42 = vld [vmem:[%s16057_s11 + $0x260] ss:$8 sps:$4 sm:$0xff]  }
 0x843   : > { %4139 = vmatprep.subr.bf16.mxu1 %v12009_v43  ;;  %v12078_v43 = vld [vmem:[%s16057_s11 + $0x274] ss:$8 sps:$4 sm:$0xff]  }
 0x846   : > { %4140 = vmatpush1.bf16.msra.mxu1 %v12007_v44  ;;  %v12079_v44 = vld [vmem:[%s16057_s11 + $0x380] ss:$8 sps:$4 sm:$0xff]  }
 0x847   : > { %4141 = vmatprep.subr.bf16.mxu1 %v12012_v45  ;;  %v12087_v45 = vld [vmem:[%s16057_s11 + $0x394] ss:$8 sps:$4 sm:$0xff]  }
 0x84a   : > { %4142 = vmatpush1.bf16.msra.mxu1 %v12010_v46  ;;  %v12076_v46 = vld [vmem:[%s16057_s11 + $0x270] ss:$8 sps:$4 sm:$0xff]  }
 0x84b   : > { %4143 = vmatprep.subr.bf16.mxu1 %v12015_v47  ;;  %v12084_v47 = vld [vmem:[%s16057_s11 + $0x284] ss:$8 sps:$4 sm:$0xff]  }
 0x84e   : > { %4144 = vmatpush1.bf16.msra.mxu1 %v12013_v48  ;;  %v12085_v48 = vld [vmem:[%s16057_s11 + $0x390] ss:$8 sps:$4 sm:$0xff]  }
 0x84f   : > { %4145 = vmatprep.subr.bf16.mxu1 %v12018_v49  ;;  %v12093_v49 = vld [vmem:[%s16057_s11 + $0x3a4] ss:$8 sps:$4 sm:$0xff]  }
 0x852   : > { %4146 = vmatpush1.bf16.msra.mxu1 %v12016_v50  ;;  %v12082_v50 = vld [vmem:[%s16057_s11 + $0x280] ss:$8 sps:$4 sm:$0xff]  }
 0x853   : > { %4147 = vmatprep.subr.bf16.mxu1 %v12021_v51  ;;  %v12090_v51 = vld [vmem:[%s16057_s11 + $0x294] ss:$8 sps:$4 sm:$0xff]  }
 0x856   : > { %4148 = vmatpush1.bf16.msra.mxu1 %v12019_v52  ;;  %v12091_v52 = vld [vmem:[%s16057_s11 + $0x3a0] ss:$8 sps:$4 sm:$0xff]  }
 0x857   : > { %4149 = vmatprep.subr.bf16.mxu1 %v12024_v53  ;;  %v12099_v53 = vld [vmem:[%s16057_s11 + $0x3b4] ss:$8 sps:$4 sm:$0xff]  }
 0x85a   : > { %4150 = vmatpush1.bf16.msra.mxu1 %v12022_v54  ;;  %v12088_v54 = vld [vmem:[%s16057_s11 + $0x290] ss:$8 sps:$4 sm:$0xff]  }
 0x85b   : > { %4151 = vmatprep.subr.bf16.mxu1 %v12027_v56  ;;  %v12096_v56 = vld [vmem:[%s16057_s11 + $0x2a4] ss:$8 sps:$4 sm:$0xff]  }
 0x85e   : > { %4152 = vmatpush1.bf16.msra.mxu1 %v12025_v58  ;;  %v12097_v58 = vld [vmem:[%s16057_s11 + $0x3b0] ss:$8 sps:$4 sm:$0xff]  }
 0x85f   : > { %4153 = vmatprep.subr.bf16.mxu1 %v12030_v63  ;;  %v12094_v63 = vld [vmem:[%s16057_s11 + $0x2a0] ss:$8 sps:$4 sm:$0xff]  }
 0x862   : > { %4154 = vmatpush1.bf16.msra.mxu1 %v12028_v0  ;;  %v12102_v0 = vld [vmem:[%s16057_s11 + $0x2b4] ss:$8 sps:$4 sm:$0xff]  }
 0x863   : > { %10246 = vmatprep.subr.msk.bf16.mxu1 %vm3800_vm6, %v14117_v25  ;;  %v12048_v25 = vld [vmem:[%s16057_s11 + $0x224] ss:$8 sps:$4 sm:$0xff]  }
 0x8f0   : > { %v3841_v1 = vpop.f32.mrb[56].mxu1 }
 0x8f1   : > { %v3843_v2 = vpop.f32.mrb[57].mxu1  ;;  %v3848_v5 = vpack.c.bf16 %v3841_v1, %v3841_v1  ;;  %v12100_v1 = vld [vmem:[%s16057_s11 + $0x2b0] ss:$8 sps:$4 sm:$0xff]  }
 0x8f2   : > { %v3849_v3 = vpack.c.bf16 %v3843_v2, %v3843_v2  ;;  %v3845_v4 = vpop.f32.mrb[58].mxu1  ;;  %v12105_v2 = vld [vmem:[%s16057_s11 + $0x3c4] ss:$8 sps:$4 sm:$0xff]  }
 0x8f3   : > { %v3846_v6 = vpop.f32.mrb[59].mxu1  ;;  %v12106_v4 = vld [vmem:[%s16057_s11 + $0x2c0] ss:$8 sps:$4 sm:$0xff]  }
 0x8f4   : > { %4356 = vmatprep.mubr.bf16.mxu0 %v3849_v3  ;;  %v12103_v3 = vld [vmem:[%s16057_s11 + $0x3c0] ss:$8 sps:$4 sm:$0xff]   ;;  %v12109_v6 = vld [vmem:[%s16057_s11 + $0x3d0] ss:$8 sps:$4 sm:$0xff]  }
 0x8f5   : > { %4357 = vmatmul.mubr.bf16.vlgmr.msra.gmra.mrb[32].mxu0 %v3848_v5  ;;  %v12108_v5 = vld [vmem:[%s16057_s11 + $0x2c4] ss:$8 sps:$4 sm:$0xff]  }
 0x8f6   : > { %4655 = vmatpush1.bf16.msra.mxu0 %v14120_v18  ;;  %4686 = vmatprep.mubr.bf16.mxu0 %v12797_v21 }
 0x8f7   : > { %4890 = vmatprep.subr.bf16.mxu0 %v12033_v7  ;;  %v12111_v7 = vld [vmem:[%s16057_s11 + $0x3d4] ss:$8 sps:$4 sm:$0xff]  }
 0x8f8   : > { %v3921_v8 = vpop.f32.mrb[60].mxu1 }
 0x8f9   : > { %v3923_v9 = vpop.f32.mrb[61].mxu1  ;;  %v3928_v13 = vpack.c.bf16 %v3921_v8, %v3921_v8  ;;  %v12114_v8 = vld [vmem:[%s16057_s11 + $0x2d4] ss:$8 sps:$4 sm:$0xff]  }
 0x8fa   : > { %v3929_v10 = vpack.c.bf16 %v3923_v9, %v3923_v9  ;;  %v3925_v11 = vpop.f32.mrb[62].mxu1  ;;  %v12112_v9 = vld [vmem:[%s16057_s11 + $0x2d0] ss:$8 sps:$4 sm:$0xff]  }
 0x8fb   : > { %v3926_v14 = vpop.f32.mrb[63].mxu1  ;;  %v12115_v11 = vld [vmem:[%s16057_s11 + $0x3e0] ss:$8 sps:$4 sm:$0xff]  }
 0x8fc   : > { %4155 = vmatprep.mubr.bf16.mxu1 %v3929_v10  ;;  %v12117_v10 = vld [vmem:[%s16057_s11 + $0x3e4] ss:$8 sps:$4 sm:$0xff]   ;;  %v12121_v14 = vld [vmem:[%s16057_s11 + $0x3f0] ss:$8 sps:$4 sm:$0xff]  }
 0x8fd   : > { %4156 = vmatmul.mubr.bf16.vlgmr.msra.gmra.mrb[64].mxu1 %v3928_v13  ;;  %10314 = vmatmul.mubr.msk.bf16.vlgmr.msra.gmra.mrb[36].mxu0 %vm3796_vm7, %v10312_v12  ;;  %v12118_v12 = vld [vmem:[%s16057_s11 + $0x2e0] ss:$8 sps:$4 sm:$0xff]   ;;  %v12120_v13 = vld [vmem:[%s16057_s11 + $0x2e4] ss:$8 sps:$4 sm:$0xff]  }
 0x8fe   : > { %4371 = vmatpush1.bf16.msra.mxu1 %v14120_v18  ;;  %4402 = vmatprep.mubr.bf16.mxu1 %v12797_v21  ;;  %v12049_v18 = vld [vmem:[%s16057_s11 + $0x330] ss:$8 sps:$4 sm:$0xff]  }
 0x8ff   : > { %4891 = vmatpush1.bf16.msra.mxu0 %v12031_v16  ;;  %4606 = vmatprep.subr.bf16.mxu1 %v12036_v59  ;;  %v12123_v16 = vld [vmem:[%s16057_s11 + $0x3f4] ss:$8 sps:$4 sm:$0xff]  }
 0x900   : > { %4892 = vmatprep.subr.bf16.mxu0 %v12039_v60  ;;  %v12126_v59 = vld [vmem:[%s16057_s11 + $0x2f4] ss:$8 sps:$4 sm:$0xff]   ;;  %v12124_v60 = vld [vmem:[%s16057_s11 + $0x2f0] ss:$8 sps:$4 sm:$0xff]  }
 0x903   : > { %4893 = vmatpush1.bf16.msra.mxu0 %v12037_v62  ;;  %v12129_v62 = vld [vmem:[%s16060_s14 + $0x4] ss:$8 sps:$4 sm:$0xff]  }
 0x904   : > { %4894 = vmatprep.subr.bf16.mxu0 %v12045_v17 }
 0x905   : > { %10247 = vmatmul.mubr.msk.bf16.vlgmr.msra.gmra.mrb[68].mxu1 %vm3796_vm7, %v10245_v19 }
 0x906   : > { %4607 = vmatpush1.bf16.msra.mxu1 %v12034_v15 }
 0x907   : > { %4608 = vmatprep.subr.bf16.mxu1 %v12042_v61  ;;  %4895 = vmatpush1.bf16.msra.mxu0 %v12043_v22 }
 0x908   : > { %4896 = vmatprep.subr.bf16.mxu0 %v12051_v23 }
 0x90a   : > { %4609 = vmatpush1.bf16.msra.mxu1 %v12040_v24 }
 0x90b   : > { %4610 = vmatprep.subr.bf16.mxu1 %v12048_v25  ;;  %4897 = vmatpush1.bf16.msra.mxu0 %v12049_v18 }
 0x90c   : > { %4898 = vmatprep.subr.bf16.mxu0 %v12057_v20 }
 0x90e   : > { %4611 = vmatpush1.bf16.msra.mxu1 %v12046_v26 }
 0x90f   : > { %4612 = vmatprep.subr.bf16.mxu1 %v12054_v27  ;;  %4899 = vmatpush1.bf16.msra.mxu0 %v12055_v28 }
 0x910   : > { %4900 = vmatprep.subr.bf16.mxu0 %v12063_v29 }
 0x912   : > { %4613 = vmatpush1.bf16.msra.mxu1 %v12052_v30  ;;  %v12127_v30 = vld [vmem:[%s16060_s14] ss:$8 sps:$4 sm:$0xff]  }
 0x913   : > { %4614 = vmatprep.subr.bf16.mxu1 %v12060_v31  ;;  %4901 = vmatpush1.bf16.msra.mxu0 %v12061_v32 }
 0x914   : > { %4902 = vmatprep.subr.bf16.mxu0 %v12069_v33  ;;  %v12132_v33 = vld [vmem:[%s16060_s14 + $0x14] ss:$8 sps:$4 sm:$0xff]  }
 0x916   : > { %4615 = vmatpush1.bf16.msra.mxu1 %v12058_v34  ;;  %v12130_v34 = vld [vmem:[%s16060_s14 + $0x10] ss:$8 sps:$4 sm:$0xff]  }
 0x917   : > { %4616 = vmatprep.subr.bf16.mxu1 %v12066_v35  ;;  %4903 = vmatpush1.bf16.msra.mxu0 %v12067_v36  ;;  %v12135_v35 = vld [vmem:[%s16060_s14 + $0x24] ss:$8 sps:$4 sm:$0xff]  }
 0x918   : > { %4904 = vmatprep.subr.bf16.mxu0 %v12075_v37 }
 0x91a   : > { %4617 = vmatpush1.bf16.msra.mxu1 %v12064_v38 }
 0x91b   : > { %4618 = vmatprep.subr.bf16.mxu1 %v12072_v39  ;;  %4905 = vmatpush1.bf16.msra.mxu0 %v12073_v40  ;;  %v12133_v40 = vld [vmem:[%s16060_s14 + $0x20] ss:$8 sps:$4 sm:$0xff]  }
 0x91c   : > { %4906 = vmatprep.subr.bf16.mxu0 %v12081_v41 }
 0x91e   : > { %4619 = vmatpush1.bf16.msra.mxu1 %v12070_v42 }
 0x91f   : > { %4620 = vmatprep.subr.bf16.mxu1 %v12078_v43  ;;  %4907 = vmatpush1.bf16.msra.mxu0 %v12079_v44  ;;  %v12138_v43 = vld [vmem:[%s16060_s14 + $0x34] ss:$8 sps:$4 sm:$0xff]   ;;  %v12136_v44 = vld [vmem:[%s16060_s14 + $0x30] ss:$8 sps:$4 sm:$0xff]  }
 0x920   : > { %4908 = vmatprep.subr.bf16.mxu0 %v12087_v45  ;;  %v12141_v45 = vld [vmem:[%s16060_s14 + $0x44] ss:$8 sps:$4 sm:$0xff]  }
 0x922   : > { %4621 = vmatpush1.bf16.msra.mxu1 %v12076_v46  ;;  %v12139_v46 = vld [vmem:[%s16060_s14 + $0x40] ss:$8 sps:$4 sm:$0xff]  }
 0x923   : > { %4622 = vmatprep.subr.bf16.mxu1 %v12084_v47  ;;  %4909 = vmatpush1.bf16.msra.mxu0 %v12085_v48  ;;  %v12144_v47 = vld [vmem:[%s16060_s14 + $0x54] ss:$8 sps:$4 sm:$0xff]   ;;  %v12142_v48 = vld [vmem:[%s16060_s14 + $0x50] ss:$8 sps:$4 sm:$0xff]  }
 0x924   : > { %4910 = vmatprep.subr.bf16.mxu0 %v12093_v49  ;;  %v12147_v49 = vld [vmem:[%s16060_s14 + $0x64] ss:$8 sps:$4 sm:$0xff]  }
 0x926   : > { %4623 = vmatpush1.bf16.msra.mxu1 %v12082_v50  ;;  %v12145_v50 = vld [vmem:[%s16060_s14 + $0x60] ss:$8 sps:$4 sm:$0xff]  }
 0x927   : > { %4624 = vmatprep.subr.bf16.mxu1 %v12090_v51  ;;  %4911 = vmatpush1.bf16.msra.mxu0 %v12091_v52  ;;  %v12150_v51 = vld [vmem:[%s16060_s14 + $0x74] ss:$8 sps:$4 sm:$0xff]   ;;  %v12148_v52 = vld [vmem:[%s16060_s14 + $0x70] ss:$8 sps:$4 sm:$0xff]  }
 0x928   : > { %4912 = vmatprep.subr.bf16.mxu0 %v12099_v53  ;;  %v12153_v53 = vld [vmem:[%s16060_s14 + $0x84] ss:$8 sps:$4 sm:$0xff]  }
 0x92a   : > { %4625 = vmatpush1.bf16.msra.mxu1 %v12088_v54  ;;  %v12151_v54 = vld [vmem:[%s16060_s14 + $0x80] ss:$8 sps:$4 sm:$0xff]  }
 0x92b   : > { %4626 = vmatprep.subr.bf16.mxu1 %v12096_v56  ;;  %4913 = vmatpush1.bf16.msra.mxu0 %v12097_v58  ;;  %v12156_v56 = vld [vmem:[%s16060_s14 + $0x94] ss:$8 sps:$4 sm:$0xff]   ;;  %v12154_v58 = vld [vmem:[%s16060_s14 + $0x90] ss:$8 sps:$4 sm:$0xff]  }
 0x92c   : > { %4914 = vmatprep.subr.bf16.mxu0 %v12105_v2  ;;  %v12160_v2 = vld [vmem:[%s16060_s14 + $0xb0] ss:$8 sps:$4 sm:$0xff]  }
 0x92e   : > { %4627 = vmatpush1.bf16.msra.mxu1 %v12094_v63  ;;  %v12159_v63 = vld [vmem:[%s16060_s14 + $0xa4] ss:$8 sps:$4 sm:$0xff]  }
 0x92f   : > { %4628 = vmatprep.subr.bf16.mxu1 %v12102_v0  ;;  %4915 = vmatpush1.bf16.msra.mxu0 %v12103_v3  ;;  %v12157_v0 = vld [vmem:[%s16060_s14 + $0xa0] ss:$8 sps:$4 sm:$0xff]  }
 0x930   : > { %4916 = vmatprep.subr.bf16.mxu0 %v12111_v7  ;;  %v12163_v3 = vld [vmem:[%s16060_s14 + $0xc0] ss:$8 sps:$4 sm:$0xff]   ;;  %v12171_v7 = vld [vmem:[%s16060_s14 + $0xe4] ss:$8 sps:$4 sm:$0xff]  }
 0x932   : > { %4629 = vmatpush1.bf16.msra.mxu1 %v12100_v1  ;;  %v12162_v1 = vld [vmem:[%s16060_s14 + $0xb4] ss:$8 sps:$4 sm:$0xff]  }
 0x933   : > { %4630 = vmatprep.subr.bf16.mxu1 %v12108_v5  ;;  %4917 = vmatpush1.bf16.msra.mxu0 %v12109_v6  ;;  %v12168_v5 = vld [vmem:[%s16060_s14 + $0xd4] ss:$8 sps:$4 sm:$0xff]   ;;  %v12166_v6 = vld [vmem:[%s16060_s14 + $0xd0] ss:$8 sps:$4 sm:$0xff]  }
 0x934   : > { %4918 = vmatprep.subr.bf16.mxu0 %v12117_v10  ;;  %v12172_v10 = vld [vmem:[%s16060_s14 + $0xf0] ss:$8 sps:$4 sm:$0xff]  }
 0x936   : > { %4631 = vmatpush1.bf16.msra.mxu1 %v12106_v4  ;;  %v12165_v4 = vld [vmem:[%s16060_s14 + $0xc4] ss:$8 sps:$4 sm:$0xff]  }
 0x937   : > { %4632 = vmatprep.subr.bf16.mxu1 %v12114_v8  ;;  %4919 = vmatpush1.bf16.msra.mxu0 %v12115_v11  ;;  %v12169_v8 = vld [vmem:[%s16060_s14 + $0xe0] ss:$8 sps:$4 sm:$0xff]  }
 0x938   : > { %4920 = vmatprep.subr.bf16.mxu0 %v12123_v16  ;;  %v4933_v16 = vld [vmem:[%s16058_s12] sm:$0x3] }
 0x93a   : > { %4633 = vmatpush1.bf16.msra.mxu1 %v12112_v9  ;;  %v12174_v9 = vld [vmem:[%s16060_s14 + $0xf4] ss:$8 sps:$4 sm:$0xff]  }
 0x93b   : > { %4634 = vmatprep.subr.bf16.mxu1 %v12120_v13  ;;  %4921 = vmatpush1.bf16.msra.mxu0 %v12121_v14 }
 0x93c   : > { %5480 = vmatprep.subr.bf16.mxu0 %v12129_v62  ;;  %v4938_v62 = vrot.slane %v4933_v16, %v13245_v55 }
 0x93e   : > { %4635 = vmatpush1.bf16.msra.mxu1 %v12118_v12 }
 0x93f   : > { %4636 = vmatprep.subr.bf16.mxu1 %v12126_v59 }
 0x942   : > { %4637 = vmatpush1.bf16.msra.mxu1 %v12124_v60 }
 0x9c8   : > { %v4358_v17 = vpop.f32.mrb[32].mxu0 }
 0x9c9   : > { %v4360_v19 = vpop.f32.mrb[33].mxu0 }
 0x9ca   : > { %v4362_v15 = vpop.f32.mrb[34].mxu0 }
 0x9cb   : > { %v4363_v61 = vpop.f32.mrb[35].mxu0  ;;  %v4942_v15 = vrot.slane %v4933_v16, %v13250_v57 }
 0x9d0   : > { %v4157_v22 = vpop.f32.mrb[64].mxu1  ;;  %v4688_v23 = vpop.f32.mrb[36].mxu0 }
 0x9d1   : > { %v14444_v24 = vadd.f32 %v4358_v17, %v4157_v22  ;;  %v4159_v25 = vpop.f32.mrb[65].mxu1  ;;  %v4695_v18 = vpack.c.bf16 %v4688_v23, %v4688_v23  ;;  %v4690_v20 = vpop.f32.mrb[37].mxu0 }
 0x9d2   : > { %v14446_v26 = vadd.f32 %v4360_v19, %v4159_v25  ;;  %v4161_v27 = vpop.f32.mrb[66].mxu1  ;;  %v4696_v28 = vpack.c.bf16 %v4690_v20, %v4690_v20  ;;  %v4692_v29 = vpop.f32.mrb[38].mxu0 }
 0x9d3   : > { %v4162_v31 = vpop.f32.mrb[67].mxu1  ;;  %v4693_v32 = vpop.f32.mrb[39].mxu0 }
 0x9d4   : > { %4922 = vmatprep.mubr.bf16.mxu0 %v4696_v28  ;;  %v12177_v31 = vld [vmem:[%s16060_s14 + $0x104] ss:$8 sps:$4 sm:$0xff]   ;;  %v12175_v32 = vld [vmem:[%s16060_s14 + $0x100] ss:$8 sps:$4 sm:$0xff]  }
 0x9d5   : > { %4923 = vmatmul.mubr.bf16.vlgmr.msra.gmra.mrb[40].mxu0 %v4695_v18 }
 0x9d6   : > { %5481 = vmatpush1.bf16.msra.mxu0 %v12127_v30 }
 0x9d7   : > { %5482 = vmatprep.subr.bf16.mxu0 %v12132_v33  ;;  %v10381_v33 = vld [vmem:[%s16059_s13 + $0x2] sm:$0x3] }
 0x9d8   : > { %v4404_v36 = vpop.f32.mrb[68].mxu1 }
 0x9d9   : > { %v4406_v37 = vpop.f32.mrb[69].mxu1  ;;  %v4411_v41 = vpack.c.bf16 %v4404_v36, %v4404_v36  ;;  %v12183_v36 = vld [vmem:[%s16060_s14 + $0x124] ss:$8 sps:$4 sm:$0xff]  }
 0x9da   : > { %v4412_v38 = vpack.c.bf16 %v4406_v37, %v4406_v37  ;;  %v4408_v39 = vpop.f32.mrb[70].mxu1  ;;  %5483 = vmatpush1.bf16.msra.mxu0 %v12130_v34  ;;  %v12180_v34 = vld [vmem:[%s16060_s14 + $0x114] ss:$8 sps:$4 sm:$0xff]   ;;  %v12181_v37 = vld [vmem:[%s16060_s14 + $0x120] ss:$8 sps:$4 sm:$0xff]  }
 0x9db   : > { %v4409_v42 = vpop.f32.mrb[71].mxu1  ;;  %5484 = vmatprep.subr.bf16.mxu0 %v12135_v35  ;;  %v12178_v35 = vld [vmem:[%s16060_s14 + $0x110] ss:$8 sps:$4 sm:$0xff]  }
 0x9dc   : > { %4638 = vmatprep.mubr.bf16.mxu1 %v4412_v38  ;;  %v12186_v38 = vld [vmem:[%s16060_s14 + $0x134] ss:$8 sps:$4 sm:$0xff]   ;;  %v12184_v39 = vld [vmem:[%s16060_s14 + $0x130] ss:$8 sps:$4 sm:$0xff]  }
 0x9dd   : > { %4639 = vmatmul.mubr.bf16.vlgmr.msra.gmra.mrb[72].mxu1 %v4411_v41  ;;  %v12187_v41 = vld [vmem:[%s16060_s14 + $0x140] ss:$8 sps:$4 sm:$0xff]   ;;  %v12192_v42 = vld [vmem:[%s16060_s14 + $0x154] ss:$8 sps:$4 sm:$0xff]  }
 0x9de   : > { %5485 = vmatpush1.bf16.msra.mxu0 %v12133_v40  ;;  %4995 = vmatprep.mubr.bf16.mxu1 %v12797_v21  ;;  %v12189_v40 = vld [vmem:[%s16060_s14 + $0x144] ss:$8 sps:$4 sm:$0xff]  }
 0x9df   : > { %5486 = vmatprep.subr.bf16.mxu0 %v12138_v43  ;;  %v12190_v43 = vld [vmem:[%s16060_s14 + $0x150] ss:$8 sps:$4 sm:$0xff]  }
 0x9e2   : > { %5487 = vmatpush1.bf16.msra.mxu0 %v12136_v44  ;;  %v12195_v44 = vld [vmem:[%s16060_s14 + $0x164] ss:$8 sps:$4 sm:$0xff]  }
 0x9e3   : > { %5488 = vmatprep.subr.bf16.mxu0 %v12141_v45  ;;  %v12193_v45 = vld [vmem:[%s16060_s14 + $0x160] ss:$8 sps:$4 sm:$0xff]  }
 0x9e6   : > { %5489 = vmatpush1.bf16.msra.mxu0 %v12139_v46  ;;  %v12198_v46 = vld [vmem:[%s16060_s14 + $0x174] ss:$8 sps:$4 sm:$0xff]  }
 0x9e7   : > { %5490 = vmatprep.subr.bf16.mxu0 %v12144_v47  ;;  %v12196_v47 = vld [vmem:[%s16060_s14 + $0x170] ss:$8 sps:$4 sm:$0xff]  }
 0x9ea   : > { %5491 = vmatpush1.bf16.msra.mxu0 %v12142_v48  ;;  %v12201_v48 = vld [vmem:[%s16060_s14 + $0x184] ss:$8 sps:$4 sm:$0xff]  }
 0x9eb   : > { %5492 = vmatprep.subr.bf16.mxu0 %v12147_v49  ;;  %v12199_v49 = vld [vmem:[%s16060_s14 + $0x180] ss:$8 sps:$4 sm:$0xff]  }
 0x9ee   : > { %5493 = vmatpush1.bf16.msra.mxu0 %v12145_v50  ;;  %v12204_v50 = vld [vmem:[%s16060_s14 + $0x194] ss:$8 sps:$4 sm:$0xff]  }
 0x9ef   : > { %5494 = vmatprep.subr.bf16.mxu0 %v12150_v51  ;;  %v12202_v51 = vld [vmem:[%s16060_s14 + $0x190] ss:$8 sps:$4 sm:$0xff]  }
 0x9f2   : > { %5495 = vmatpush1.bf16.msra.mxu0 %v12148_v52  ;;  %v12207_v52 = vld [vmem:[%s16060_s14 + $0x1a4] ss:$8 sps:$4 sm:$0xff]  }
 0x9f3   : > { %5496 = vmatprep.subr.bf16.mxu0 %v12153_v53  ;;  %v12205_v53 = vld [vmem:[%s16060_s14 + $0x1a0] ss:$8 sps:$4 sm:$0xff]  }
 0x9f6   : > { %5497 = vmatpush1.bf16.msra.mxu0 %v12151_v54  ;;  %v12210_v54 = vld [vmem:[%s16060_s14 + $0x1b4] ss:$8 sps:$4 sm:$0xff]  }
 0x9f7   : > { %5498 = vmatprep.subr.bf16.mxu0 %v12156_v56  ;;  %v12208_v56 = vld [vmem:[%s16060_s14 + $0x1b0] ss:$8 sps:$4 sm:$0xff]  }
 0x9fa   : > { %5499 = vmatpush1.bf16.msra.mxu0 %v12154_v58  ;;  %v12213_v58 = vld [vmem:[%s16060_s14 + $0x1c4] ss:$8 sps:$4 sm:$0xff]  }
 0x9fb   : > { %5500 = vmatprep.subr.bf16.mxu0 %v12159_v63  ;;  %v12211_v63 = vld [vmem:[%s16060_s14 + $0x1c0] ss:$8 sps:$4 sm:$0xff]  }
 0x9fe   : > { %5501 = vmatpush1.bf16.msra.mxu0 %v12157_v0  ;;  %v12216_v0 = vld [vmem:[%s16060_s14 + $0x1d4] ss:$8 sps:$4 sm:$0xff]  }
 0x9ff   : > { %5502 = vmatprep.subr.bf16.mxu0 %v12162_v1  ;;  %v12214_v1 = vld [vmem:[%s16060_s14 + $0x1d0] ss:$8 sps:$4 sm:$0xff]  }
 0xa02   : > { %5503 = vmatpush1.bf16.msra.mxu0 %v12160_v2  ;;  %v12219_v2 = vld [vmem:[%s16060_s14 + $0x1e4] ss:$8 sps:$4 sm:$0xff]  }
 0xa03   : > { %5504 = vmatprep.subr.bf16.mxu0 %v12165_v4  ;;  %v12222_v4 = vld [vmem:[%s16060_s14 + $0x1f4] ss:$8 sps:$4 sm:$0xff]  }
 0xa06   : > { %5505 = vmatpush1.bf16.msra.mxu0 %v12163_v3  ;;  %v12217_v3 = vld [vmem:[%s16060_s14 + $0x1e0] ss:$8 sps:$4 sm:$0xff]  }
 0xa07   : > { %5506 = vmatprep.subr.bf16.mxu0 %v12168_v5  ;;  %v12220_v5 = vld [vmem:[%s16060_s14 + $0x1f0] ss:$8 sps:$4 sm:$0xff]  }
 0xa0a   : > { %5507 = vmatpush1.bf16.msra.mxu0 %v12166_v6 }
 0xa0b   : > { %5508 = vmatprep.subr.bf16.mxu0 %v12171_v7 }
 0xa0e   : > { %5509 = vmatpush1.bf16.msra.mxu0 %v12169_v8 }
 0xa0f   : > { %5510 = vmatprep.subr.bf16.mxu0 %v12174_v9 }
 0xa12   : > { %5511 = vmatpush1.bf16.msra.mxu0 %v12172_v10 }
 0xaa8   : > { %v4924_v11 = vpop.f32.mrb[40].mxu0 }
 0xaa9   : > { %v4926_v12 = vpop.f32.mrb[41].mxu0 }
 0xaaa   : > { %v4928_v13 = vpop.f32.mrb[42].mxu0 }
 0xaab   : > { %v4929_v14 = vpop.f32.mrb[43].mxu0 }
 0xab0   : > { %v4640_v59 = vpop.f32.mrb[72].mxu1 }
 0xab1   : > { %v4647_v60 = vadd.f32 %v4640_v59, %v14444_v24  ;;  %v4642_v17 = vpop.f32.mrb[73].mxu1 }
 0xab2   : > { %v4648_v19 = vadd.f32 %v4642_v17, %v14446_v26  ;;  %v4644_v61 = vpop.f32.mrb[74].mxu1  ;;  %v4951_v26 = vld [vmem:[%s16059_s13] sm:$0x3] }
 0xab3   : > { %v4931_v22 = vadd.f32 %v4924_v11, %v4647_v60  ;;  %v4645_v23 = vpop.f32.mrb[75].mxu1  ;;  %v10547_v60 = vld [vmem:[%s16059_s13 + $0x6] sm:$0x3]  ;;  %v12231_v61 = vld [vmem:[%s16060_s14 + $0x314] ss:$8 sps:$4 sm:$0xff]  }
 0xab4   : > { %v4932_v25 = vadd.f32 %v4926_v12, %v4648_v19  ;;  %v12225_v12 = vld [vmem:[%s16060_s14 + $0x304] ss:$8 sps:$4 sm:$0xff]   ;;  %v12223_v19 = vld [vmem:[%s16060_s14 + $0x300] ss:$8 sps:$4 sm:$0xff]  }
 0xab5   : > { %v4945_v18 = vadd.f32 %v4938_v62, %v4931_v22  ;;  %v12229_v22 = vld [vmem:[%s16060_s14 + $0x310] ss:$8 sps:$4 sm:$0xff]   ;;  %v12237_v23 = vld [vmem:[%s16060_s14 + $0x324] ss:$8 sps:$4 sm:$0xff]  }
 0xab6   : > { %v4946_v20 = vadd.f32 %v4942_v15, %v4932_v25  ;;  %v12228_v15 = vld [vmem:[%s16060_s14 + $0x204] ss:$8 sps:$4 sm:$0xff]  }
 0xab7   : > { %v4947_v27 = vmax.f32 %v4945_v18, 0.0  ;;  %v10480_v25 = vld [vmem:[%s16059_s13 + $0x4] sm:$0x3]  ;;  %v12226_v18 = vld [vmem:[%s16060_s14 + $0x200] ss:$8 sps:$4 sm:$0xff]  }
 0xab8   : > { %v4948_v28 = vmax.f32 %v4946_v20, 0.0  ;;  %v12234_v20 = vld [vmem:[%s16060_s14 + $0x214] ss:$8 sps:$4 sm:$0xff]  }
 0xab9   : > { %v4949_v29 = vpack.c.bf16 %v4947_v27, %v4947_v27  ;;  %v12235_v27 = vld [vmem:[%s16060_s14 + $0x320] ss:$8 sps:$4 sm:$0xff]  }
 0xaba   : > { %v14549_v30 = vpack.c.bf16 %v4948_v28, %v4948_v28  ;;  %v12243_v28 = vld [vmem:[%s16060_s14 + $0x334] ss:$8 sps:$4 sm:$0xff]  }
 0xabb   : > { %v14552_v24 = vsel %vm4956_vm8, %v4949_v29, 0  ;;  %v12232_v29 = vld [vmem:[%s16060_s14 + $0x210] ss:$8 sps:$4 sm:$0xff]  }
 0xabc   : > { %10379 = vmatprep.subr.msk.bf16.mxu1 %vm4956_vm8, %v14549_v30  ;;  %10548 = vmatprep.subr.msk.bf16.mxu0 %vm4956_vm8, %v14549_v30 }
 0xabd   : > { %4964 = vmatpush1.bf16.msra.mxu1 %v14552_v24 }
 0xabe   : > { %10382 = vmatprep.subr.msk.bf16.mxu1 %vm4956_vm8, %v14549_v30 }
 0xac0   : > { %10380 = vmatmul.mubr.msk.bf16.vlgmr.msra.gmra.mrb[76].mxu1 %vm4952_vm9, %v4951_v26  ;;  %v12249_v26 = vld [vmem:[%s16060_s14 + $0x344] ss:$8 sps:$4 sm:$0xff]  }
 0xac1   : > { %5044 = vmatpush1.bf16.msra.mxu1 %v14552_v24  ;;  %5075 = vmatprep.mubr.bf16.mxu1 %v12797_v21 }
 0xac2   : > { %5279 = vmatprep.subr.bf16.mxu1 %v12177_v31  ;;  %v12238_v31 = vld [vmem:[%s16060_s14 + $0x220] ss:$8 sps:$4 sm:$0xff]  }
 0xac8   : > { %10383 = vmatmul.mubr.msk.bf16.vlgmr.msra.gmra.mrb[80].mxu1 %vm4952_vm9, %v10381_v33  ;;  %v12247_v33 = vld [vmem:[%s16060_s14 + $0x340] ss:$8 sps:$4 sm:$0xff]  }
 0xac9   : > { %5280 = vmatpush1.bf16.msra.mxu1 %v12175_v32  ;;  %v12246_v32 = vld [vmem:[%s16060_s14 + $0x234] ss:$8 sps:$4 sm:$0xff]  }
 0xaca   : > { %5281 = vmatprep.subr.bf16.mxu1 %v12180_v34  ;;  %v12255_v34 = vld [vmem:[%s16060_s14 + $0x354] ss:$8 sps:$4 sm:$0xff]  }
 0xacd   : > { %5282 = vmatpush1.bf16.msra.mxu1 %v12178_v35  ;;  %v12244_v35 = vld [vmem:[%s16060_s14 + $0x230] ss:$8 sps:$4 sm:$0xff]  }
 0xace   : > { %5283 = vmatprep.subr.bf16.mxu1 %v12183_v36  ;;  %v12252_v36 = vld [vmem:[%s16060_s14 + $0x244] ss:$8 sps:$4 sm:$0xff]  }
 0xad1   : > { %5284 = vmatpush1.bf16.msra.mxu1 %v12181_v37  ;;  %v12253_v37 = vld [vmem:[%s16060_s14 + $0x350] ss:$8 sps:$4 sm:$0xff]  }
 0xad2   : > { %5285 = vmatprep.subr.bf16.mxu1 %v12186_v38  ;;  %v12261_v38 = vld [vmem:[%s16060_s14 + $0x364] ss:$8 sps:$4 sm:$0xff]  }
 0xad5   : > { %5286 = vmatpush1.bf16.msra.mxu1 %v12184_v39  ;;  %v12250_v39 = vld [vmem:[%s16060_s14 + $0x240] ss:$8 sps:$4 sm:$0xff]  }
 0xad6   : > { %5287 = vmatprep.subr.bf16.mxu1 %v12189_v40  ;;  %v12258_v40 = vld [vmem:[%s16060_s14 + $0x254] ss:$8 sps:$4 sm:$0xff]  }
 0xad9   : > { %5288 = vmatpush1.bf16.msra.mxu1 %v12187_v41  ;;  %v12259_v41 = vld [vmem:[%s16060_s14 + $0x360] ss:$8 sps:$4 sm:$0xff]  }
 0xada   : > { %5289 = vmatprep.subr.bf16.mxu1 %v12192_v42  ;;  %v12267_v42 = vld [vmem:[%s16060_s14 + $0x374] ss:$8 sps:$4 sm:$0xff]  }
 0xadd   : > { %5290 = vmatpush1.bf16.msra.mxu1 %v12190_v43  ;;  %v12256_v43 = vld [vmem:[%s16060_s14 + $0x250] ss:$8 sps:$4 sm:$0xff]  }
 0xade   : > { %5291 = vmatprep.subr.bf16.mxu1 %v12195_v44  ;;  %v12264_v44 = vld [vmem:[%s16060_s14 + $0x264] ss:$8 sps:$4 sm:$0xff]  }
 0xae1   : > { %5292 = vmatpush1.bf16.msra.mxu1 %v12193_v45  ;;  %v12265_v45 = vld [vmem:[%s16060_s14 + $0x370] ss:$8 sps:$4 sm:$0xff]  }
 0xae2   : > { %5293 = vmatprep.subr.bf16.mxu1 %v12198_v46  ;;  %v12273_v46 = vld [vmem:[%s16060_s14 + $0x384] ss:$8 sps:$4 sm:$0xff]  }
 0xae5   : > { %5294 = vmatpush1.bf16.msra.mxu1 %v12196_v47  ;;  %v12262_v47 = vld [vmem:[%s16060_s14 + $0x260] ss:$8 sps:$4 sm:$0xff]  }
 0xae6   : > { %5295 = vmatprep.subr.bf16.mxu1 %v12201_v48  ;;  %v12270_v48 = vld [vmem:[%s16060_s14 + $0x274] ss:$8 sps:$4 sm:$0xff]  }
 0xae9   : > { %5296 = vmatpush1.bf16.msra.mxu1 %v12199_v49  ;;  %v12271_v49 = vld [vmem:[%s16060_s14 + $0x380] ss:$8 sps:$4 sm:$0xff]  }
 0xaea   : > { %5297 = vmatprep.subr.bf16.mxu1 %v12204_v50  ;;  %v12279_v50 = vld [vmem:[%s16060_s14 + $0x394] ss:$8 sps:$4 sm:$0xff]  }
 0xaed   : > { %5298 = vmatpush1.bf16.msra.mxu1 %v12202_v51  ;;  %v12268_v51 = vld [vmem:[%s16060_s14 + $0x270] ss:$8 sps:$4 sm:$0xff]  }
 0xaee   : > { %5299 = vmatprep.subr.bf16.mxu1 %v12207_v52  ;;  %v12276_v52 = vld [vmem:[%s16060_s14 + $0x284] ss:$8 sps:$4 sm:$0xff]  }
 0xaf1   : > { %5300 = vmatpush1.bf16.msra.mxu1 %v12205_v53  ;;  %v12277_v53 = vld [vmem:[%s16060_s14 + $0x390] ss:$8 sps:$4 sm:$0xff]  }
 0xaf2   : > { %5301 = vmatprep.subr.bf16.mxu1 %v12210_v54  ;;  %v12285_v54 = vld [vmem:[%s16060_s14 + $0x3a4] ss:$8 sps:$4 sm:$0xff]  }
 0xaf5   : > { %5302 = vmatpush1.bf16.msra.mxu1 %v12208_v56  ;;  %v12274_v56 = vld [vmem:[%s16060_s14 + $0x280] ss:$8 sps:$4 sm:$0xff]  }
 0xaf6   : > { %5303 = vmatprep.subr.bf16.mxu1 %v12213_v58  ;;  %v12282_v58 = vld [vmem:[%s16060_s14 + $0x294] ss:$8 sps:$4 sm:$0xff]  }
 0xaf9   : > { %5304 = vmatpush1.bf16.msra.mxu1 %v12211_v63  ;;  %v12283_v63 = vld [vmem:[%s16060_s14 + $0x3a0] ss:$8 sps:$4 sm:$0xff]  }
 0xafa   : > { %5305 = vmatprep.subr.bf16.mxu1 %v12216_v0  ;;  %v12291_v0 = vld [vmem:[%s16060_s14 + $0x3b4] ss:$8 sps:$4 sm:$0xff]  }
 0xafd   : > { %5306 = vmatpush1.bf16.msra.mxu1 %v12214_v1  ;;  %v12280_v1 = vld [vmem:[%s16060_s14 + $0x290] ss:$8 sps:$4 sm:$0xff]  }
 0xafe   : > { %5307 = vmatprep.subr.bf16.mxu1 %v12219_v2  ;;  %v12288_v2 = vld [vmem:[%s16060_s14 + $0x2a4] ss:$8 sps:$4 sm:$0xff]  }
 0xb01   : > { %5308 = vmatpush1.bf16.msra.mxu1 %v12217_v3  ;;  %v12289_v3 = vld [vmem:[%s16060_s14 + $0x3b0] ss:$8 sps:$4 sm:$0xff]  }
 0xb02   : > { %5309 = vmatprep.subr.bf16.mxu1 %v12222_v4  ;;  %v12286_v4 = vld [vmem:[%s16060_s14 + $0x2a0] ss:$8 sps:$4 sm:$0xff]  }
 0xb05   : > { %5310 = vmatpush1.bf16.msra.mxu1 %v12220_v5  ;;  %v12294_v5 = vld [vmem:[%s16060_s14 + $0x2b4] ss:$8 sps:$4 sm:$0xff]  }
 0xb06   : > { %10481 = vmatprep.subr.msk.bf16.mxu1 %vm4956_vm8, %v14549_v30  ;;  %v12240_v30 = vld [vmem:[%s16060_s14 + $0x224] ss:$8 sps:$4 sm:$0xff]  }
 0xb93   : > { %v4997_v6 = vpop.f32.mrb[76].mxu1 }
 0xb94   : > { %v4999_v7 = vpop.f32.mrb[77].mxu1  ;;  %v5004_v10 = vpack.c.bf16 %v4997_v6, %v4997_v6  ;;  %v12292_v6 = vld [vmem:[%s16060_s14 + $0x2b0] ss:$8 sps:$4 sm:$0xff]  }
 0xb95   : > { %v5005_v8 = vpack.c.bf16 %v4999_v7, %v4999_v7  ;;  %v5001_v9 = vpop.f32.mrb[78].mxu1  ;;  %v12297_v7 = vld [vmem:[%s16060_s14 + $0x3c4] ss:$8 sps:$4 sm:$0xff]  }
 0xb96   : > { %v5002_v11 = vpop.f32.mrb[79].mxu1  ;;  %v12298_v9 = vld [vmem:[%s16060_s14 + $0x2c0] ss:$8 sps:$4 sm:$0xff]  }
 0xb97   : > { %5512 = vmatprep.mubr.bf16.mxu0 %v5005_v8  ;;  %v12295_v8 = vld [vmem:[%s16060_s14 + $0x3c0] ss:$8 sps:$4 sm:$0xff]   ;;  %v12301_v11 = vld [vmem:[%s16060_s14 + $0x3d0] ss:$8 sps:$4 sm:$0xff]  }
 0xb98   : > { %5513 = vmatmul.mubr.bf16.vlgmr.msra.gmra.mrb[44].mxu0 %v5004_v10  ;;  %v12300_v10 = vld [vmem:[%s16060_s14 + $0x2c4] ss:$8 sps:$4 sm:$0xff]  }
 0xb99   : > { %5811 = vmatpush1.bf16.msra.mxu0 %v14552_v24  ;;  %5842 = vmatprep.mubr.bf16.mxu0 %v12797_v21 }
 0xb9a   : > { %6046 = vmatprep.subr.bf16.mxu0 %v12225_v12  ;;  %v12303_v12 = vld [vmem:[%s16060_s14 + $0x3d4] ss:$8 sps:$4 sm:$0xff]  }
 0xb9b   : > { %v5077_v13 = vpop.f32.mrb[80].mxu1 }
 0xb9c   : > { %v5079_v14 = vpop.f32.mrb[81].mxu1  ;;  %v5084_v62 = vpack.c.bf16 %v5077_v13, %v5077_v13  ;;  %v12306_v13 = vld [vmem:[%s16060_s14 + $0x2d4] ss:$8 sps:$4 sm:$0xff]  }
 0xb9d   : > { %v5085_v16 = vpack.c.bf16 %v5079_v14, %v5079_v14  ;;  %v5081_v59 = vpop.f32.mrb[82].mxu1  ;;  %v12304_v14 = vld [vmem:[%s16060_s14 + $0x2d0] ss:$8 sps:$4 sm:$0xff]  }
 0xb9e   : > { %v5082_v17 = vpop.f32.mrb[83].mxu1  ;;  %v12307_v59 = vld [vmem:[%s16060_s14 + $0x3e0] ss:$8 sps:$4 sm:$0xff]  }
 0xb9f   : > { %5311 = vmatprep.mubr.bf16.mxu1 %v5085_v16  ;;  %v12309_v16 = vld [vmem:[%s16060_s14 + $0x3e4] ss:$8 sps:$4 sm:$0xff]   ;;  %v12313_v17 = vld [vmem:[%s16060_s14 + $0x3f0] ss:$8 sps:$4 sm:$0xff]  }
 0xba0   : > { %5312 = vmatmul.mubr.bf16.vlgmr.msra.gmra.mrb[84].mxu1 %v5084_v62  ;;  %10549 = vmatmul.mubr.msk.bf16.vlgmr.msra.gmra.mrb[48].mxu0 %vm4952_vm9, %v10547_v60  ;;  %v12310_v60 = vld [vmem:[%s16060_s14 + $0x2e0] ss:$8 sps:$4 sm:$0xff]   ;;  %v12312_v62 = vld [vmem:[%s16060_s14 + $0x2e4] ss:$8 sps:$4 sm:$0xff]  }
 0xba1   : > { %5527 = vmatpush1.bf16.msra.mxu1 %v14552_v24  ;;  %5558 = vmatprep.mubr.bf16.mxu1 %v12797_v21  ;;  %v12241_v24 = vld [vmem:[%s16060_s14 + $0x330] ss:$8 sps:$4 sm:$0xff]  }
 0xba2   : > { %6047 = vmatpush1.bf16.msra.mxu0 %v12223_v19  ;;  %5762 = vmatprep.subr.bf16.mxu1 %v12228_v15  ;;  %v12315_v19 = vld [vmem:[%s16060_s14 + $0x3f4] ss:$8 sps:$4 sm:$0xff]  }
 0xba3   : > { %6048 = vmatprep.subr.bf16.mxu0 %v12231_v61  ;;  %v12318_v15 = vld [vmem:[%s16060_s14 + $0x2f4] ss:$8 sps:$4 sm:$0xff]   ;;  %v12316_v61 = vld [vmem:[%s16060_s14 + $0x2f0] ss:$8 sps:$4 sm:$0xff]  }
 0xba6   : > { %6049 = vmatpush1.bf16.msra.mxu0 %v12229_v22  ;;  %v12321_v22 = vld [vmem:[%s16063_s17 + $0x104] ss:$8 sps:$4 sm:$0xff]  }
 0xba7   : > { %6050 = vmatprep.subr.bf16.mxu0 %v12237_v23 }
 0xba8   : > { %10482 = vmatmul.mubr.msk.bf16.vlgmr.msra.gmra.mrb[88].mxu1 %vm4952_vm9, %v10480_v25 }
 0xba9   : > { %5763 = vmatpush1.bf16.msra.mxu1 %v12226_v18 }
 0xbaa   : > { %5764 = vmatprep.subr.bf16.mxu1 %v12234_v20  ;;  %6051 = vmatpush1.bf16.msra.mxu0 %v12235_v27 }
 0xbab   : > { %6052 = vmatprep.subr.bf16.mxu0 %v12243_v28 }
 0xbad   : > { %5765 = vmatpush1.bf16.msra.mxu1 %v12232_v29 }
 0xbae   : > { %5766 = vmatprep.subr.bf16.mxu1 %v12240_v30  ;;  %6053 = vmatpush1.bf16.msra.mxu0 %v12241_v24 }
 0xbaf   : > { %6054 = vmatprep.subr.bf16.mxu0 %v12249_v26 }
 0xbb1   : > { %5767 = vmatpush1.bf16.msra.mxu1 %v12238_v31 }
 0xbb2   : > { %5768 = vmatprep.subr.bf16.mxu1 %v12246_v32  ;;  %6055 = vmatpush1.bf16.msra.mxu0 %v12247_v33 }
 0xbb3   : > { %6056 = vmatprep.subr.bf16.mxu0 %v12255_v34 }
 0xbb5   : > { %5769 = vmatpush1.bf16.msra.mxu1 %v12244_v35  ;;  %v12319_v35 = vld [vmem:[%s16063_s17 + $0x100] ss:$8 sps:$4 sm:$0xff]  }
 0xbb6   : > { %5770 = vmatprep.subr.bf16.mxu1 %v12252_v36  ;;  %6057 = vmatpush1.bf16.msra.mxu0 %v12253_v37 }
 0xbb7   : > { %6058 = vmatprep.subr.bf16.mxu0 %v12261_v38  ;;  %v12324_v38 = vld [vmem:[%s16063_s17 + $0x114] ss:$8 sps:$4 sm:$0xff]  }
 0xbb9   : > { %5771 = vmatpush1.bf16.msra.mxu1 %v12250_v39  ;;  %v12322_v39 = vld [vmem:[%s16063_s17 + $0x110] ss:$8 sps:$4 sm:$0xff]  }
 0xbba   : > { %5772 = vmatprep.subr.bf16.mxu1 %v12258_v40  ;;  %6059 = vmatpush1.bf16.msra.mxu0 %v12259_v41  ;;  %v12327_v40 = vld [vmem:[%s16063_s17 + $0x124] ss:$8 sps:$4 sm:$0xff]  }
 0xbbb   : > { %6060 = vmatprep.subr.bf16.mxu0 %v12267_v42 }
 0xbbd   : > { %5773 = vmatpush1.bf16.msra.mxu1 %v12256_v43 }
 0xbbe   : > { %5774 = vmatprep.subr.bf16.mxu1 %v12264_v44  ;;  %6061 = vmatpush1.bf16.msra.mxu0 %v12265_v45  ;;  %v12325_v45 = vld [vmem:[%s16063_s17 + $0x120] ss:$8 sps:$4 sm:$0xff]  }
 0xbbf   : > { %6062 = vmatprep.subr.bf16.mxu0 %v12273_v46 }
 0xbc1   : > { %5775 = vmatpush1.bf16.msra.mxu1 %v12262_v47 }
 0xbc2   : > { %5776 = vmatprep.subr.bf16.mxu1 %v12270_v48  ;;  %6063 = vmatpush1.bf16.msra.mxu0 %v12271_v49  ;;  %v12330_v48 = vld [vmem:[%s16063_s17 + $0x134] ss:$8 sps:$4 sm:$0xff]   ;;  %v12328_v49 = vld [vmem:[%s16063_s17 + $0x130] ss:$8 sps:$4 sm:$0xff]  }
 0xbc3   : > { %6064 = vmatprep.subr.bf16.mxu0 %v12279_v50  ;;  %v12333_v50 = vld [vmem:[%s16063_s17 + $0x144] ss:$8 sps:$4 sm:$0xff]  }
 0xbc5   : > { %5777 = vmatpush1.bf16.msra.mxu1 %v12268_v51  ;;  %v12331_v51 = vld [vmem:[%s16063_s17 + $0x140] ss:$8 sps:$4 sm:$0xff]  }
 0xbc6   : > { %5778 = vmatprep.subr.bf16.mxu1 %v12276_v52  ;;  %6065 = vmatpush1.bf16.msra.mxu0 %v12277_v53  ;;  %v12336_v52 = vld [vmem:[%s16063_s17 + $0x154] ss:$8 sps:$4 sm:$0xff]   ;;  %v12334_v53 = vld [vmem:[%s16063_s17 + $0x150] ss:$8 sps:$4 sm:$0xff]  }
 0xbc7   : > { %6066 = vmatprep.subr.bf16.mxu0 %v12285_v54  ;;  %v12339_v54 = vld [vmem:[%s16063_s17 + $0x164] ss:$8 sps:$4 sm:$0xff]  }
 0xbc9   : > { %5779 = vmatpush1.bf16.msra.mxu1 %v12274_v56  ;;  %v12337_v56 = vld [vmem:[%s16063_s17 + $0x160] ss:$8 sps:$4 sm:$0xff]  }
 0xbca   : > { %5780 = vmatprep.subr.bf16.mxu1 %v12282_v58  ;;  %6067 = vmatpush1.bf16.msra.mxu0 %v12283_v63  ;;  %v12342_v58 = vld [vmem:[%s16063_s17 + $0x174] ss:$8 sps:$4 sm:$0xff]   ;;  %v12340_v63 = vld [vmem:[%s16063_s17 + $0x170] ss:$8 sps:$4 sm:$0xff]  }
 0xbcb   : > { %6068 = vmatprep.subr.bf16.mxu0 %v12291_v0  ;;  %v12345_v0 = vld [vmem:[%s16063_s17 + $0x184] ss:$8 sps:$4 sm:$0xff]  }
 0xbcd   : > { %5781 = vmatpush1.bf16.msra.mxu1 %v12280_v1  ;;  %v12343_v1 = vld [vmem:[%s16063_s17 + $0x180] ss:$8 sps:$4 sm:$0xff]  }
 0xbce   : > { %5782 = vmatprep.subr.bf16.mxu1 %v12288_v2  ;;  %6069 = vmatpush1.bf16.msra.mxu0 %v12289_v3  ;;  %v12348_v2 = vld [vmem:[%s16063_s17 + $0x194] ss:$8 sps:$4 sm:$0xff]   ;;  %v12346_v3 = vld [vmem:[%s16063_s17 + $0x190] ss:$8 sps:$4 sm:$0xff]  }
 0xbcf   : > { %6070 = vmatprep.subr.bf16.mxu0 %v12297_v7  ;;  %v12352_v7 = vld [vmem:[%s16063_s17 + $0x1b0] ss:$8 sps:$4 sm:$0xff]  }
 0xbd1   : > { %5783 = vmatpush1.bf16.msra.mxu1 %v12286_v4  ;;  %v12351_v4 = vld [vmem:[%s16063_s17 + $0x1a4] ss:$8 sps:$4 sm:$0xff]  }
 0xbd2   : > { %5784 = vmatprep.subr.bf16.mxu1 %v12294_v5  ;;  %6071 = vmatpush1.bf16.msra.mxu0 %v12295_v8  ;;  %v12349_v5 = vld [vmem:[%s16063_s17 + $0x1a0] ss:$8 sps:$4 sm:$0xff]  }
 0xbd3   : > { %6072 = vmatprep.subr.bf16.mxu0 %v12303_v12  ;;  %v12355_v8 = vld [vmem:[%s16063_s17 + $0x1c0] ss:$8 sps:$4 sm:$0xff]   ;;  %v12363_v12 = vld [vmem:[%s16063_s17 + $0x1e4] ss:$8 sps:$4 sm:$0xff]  }
 0xbd5   : > { %5785 = vmatpush1.bf16.msra.mxu1 %v12292_v6  ;;  %v12354_v6 = vld [vmem:[%s16063_s17 + $0x1b4] ss:$8 sps:$4 sm:$0xff]  }
 0xbd6   : > { %5786 = vmatprep.subr.bf16.mxu1 %v12300_v10  ;;  %6073 = vmatpush1.bf16.msra.mxu0 %v12301_v11  ;;  %v12360_v10 = vld [vmem:[%s16063_s17 + $0x1d4] ss:$8 sps:$4 sm:$0xff]   ;;  %v12358_v11 = vld [vmem:[%s16063_s17 + $0x1d0] ss:$8 sps:$4 sm:$0xff]  }
 0xbd7   : > { %6074 = vmatprep.subr.bf16.mxu0 %v12309_v16  ;;  %v12364_v16 = vld [vmem:[%s16063_s17 + $0x1f0] ss:$8 sps:$4 sm:$0xff]  }
 0xbd9   : > { %5787 = vmatpush1.bf16.msra.mxu1 %v12298_v9  ;;  %v12357_v9 = vld [vmem:[%s16063_s17 + $0x1c4] ss:$8 sps:$4 sm:$0xff]  }
 0xbda   : > { %5788 = vmatprep.subr.bf16.mxu1 %v12306_v13  ;;  %6075 = vmatpush1.bf16.msra.mxu0 %v12307_v59  ;;  %v12361_v13 = vld [vmem:[%s16063_s17 + $0x1e0] ss:$8 sps:$4 sm:$0xff]  }
 0xbdb   : > { %6076 = vmatprep.subr.bf16.mxu0 %v12315_v19  ;;  %v6089_v19 = vld [vmem:[%s16061_s15] sm:$0x3] }
 0xbdd   : > { %5789 = vmatpush1.bf16.msra.mxu1 %v12304_v14  ;;  %v12366_v14 = vld [vmem:[%s16063_s17 + $0x1f4] ss:$8 sps:$4 sm:$0xff]  }
 0xbde   : > { %5790 = vmatprep.subr.bf16.mxu1 %v12312_v62  ;;  %6077 = vmatpush1.bf16.msra.mxu0 %v12313_v17 }
 0xbdf   : > { %6433 = vmatprep.subr.bf16.mxu0 %v12321_v22  ;;  %v6094_v22 = vrot.slane %v6089_v19, %v13245_v55 }
 0xbe1   : > { %5791 = vmatpush1.bf16.msra.mxu1 %v12310_v60 }
 0xbe2   : > { %5792 = vmatprep.subr.bf16.mxu1 %v12318_v15 }
 0xbe5   : > { %5793 = vmatpush1.bf16.msra.mxu1 %v12316_v61 }
 0xc6b   : > { %v5514_v23 = vpop.f32.mrb[44].mxu0 }
 0xc6c   : > { %v5516_v25 = vpop.f32.mrb[45].mxu0 }
 0xc6d   : > { %v5518_v18 = vpop.f32.mrb[46].mxu0 }
 0xc6e   : > { %v5519_v20 = vpop.f32.mrb[47].mxu0  ;;  %v6098_v18 = vrot.slane %v6089_v19, %v13250_v57  ;;  %v12418_v19 = vld [vmem:[%s16063_s17 + $0x210] ss:$8 sps:$4 sm:$0xff]  }
 0xc73   : > { %v5313_v27 = vpop.f32.mrb[84].mxu1  ;;  %v5844_v28 = vpop.f32.mrb[48].mxu0 }
 0xc74   : > { %v14876_v29 = vadd.f32 %v5514_v23, %v5313_v27  ;;  %v5315_v30 = vpop.f32.mrb[85].mxu1  ;;  %v5851_v24 = vpack.c.bf16 %v5844_v28, %v5844_v28  ;;  %v5846_v26 = vpop.f32.mrb[49].mxu0 }
 0xc75   : > { %v14878_v31 = vadd.f32 %v5516_v25, %v5315_v30  ;;  %v5317_v32 = vpop.f32.mrb[86].mxu1  ;;  %v5852_v33 = vpack.c.bf16 %v5846_v26, %v5846_v26  ;;  %v5848_v34 = vpop.f32.mrb[50].mxu0 }
 0xc76   : > { %v5318_v36 = vpop.f32.mrb[87].mxu1  ;;  %v5849_v37 = vpop.f32.mrb[51].mxu0 }
 0xc77   : > { %6078 = vmatprep.mubr.bf16.mxu0 %v5852_v33  ;;  %v12369_v36 = vld [vmem:[%s16063_s17 + $0x4] ss:$8 sps:$4 sm:$0xff]  }
 0xc78   : > { %6079 = vmatmul.mubr.bf16.vlgmr.msra.gmra.mrb[52].mxu0 %v5851_v24  ;;  %v10616_v37 = vld [vmem:[%s16062_s16 + $0x4] sm:$0xf] }
 0xc79   : > { %6434 = vmatpush1.bf16.msra.mxu0 %v12319_v35 }
 0xc7a   : > { %6435 = vmatprep.subr.bf16.mxu0 %v12324_v38  ;;  %v12367_v38 = vld [vmem:[%s16063_s17] ss:$8 sps:$4 sm:$0xff]  }
 0xc7b   : > { %v5560_v41 = vpop.f32.mrb[88].mxu1 }
 0xc7c   : > { %v5562_v42 = vpop.f32.mrb[89].mxu1  ;;  %v5567_v46 = vpack.c.bf16 %v5560_v41, %v5560_v41  ;;  %v12375_v41 = vld [vmem:[%s16063_s17 + $0x24] ss:$8 sps:$4 sm:$0xff]  }
 0xc7d   : > { %v5568_v43 = vpack.c.bf16 %v5562_v42, %v5562_v42  ;;  %v5564_v44 = vpop.f32.mrb[90].mxu1  ;;  %6436 = vmatpush1.bf16.msra.mxu0 %v12322_v39  ;;  %v12372_v39 = vld [vmem:[%s16063_s17 + $0x14] ss:$8 sps:$4 sm:$0xff]   ;;  %v12373_v42 = vld [vmem:[%s16063_s17 + $0x20] ss:$8 sps:$4 sm:$0xff]  }
 0xc7e   : > { %v5565_v47 = vpop.f32.mrb[91].mxu1  ;;  %6437 = vmatprep.subr.bf16.mxu0 %v12327_v40  ;;  %v12370_v40 = vld [vmem:[%s16063_s17 + $0x10] ss:$8 sps:$4 sm:$0xff]  }
 0xc7f   : > { %5794 = vmatprep.mubr.bf16.mxu1 %v5568_v43  ;;  %v12378_v43 = vld [vmem:[%s16063_s17 + $0x34] ss:$8 sps:$4 sm:$0xff]   ;;  %v12376_v44 = vld [vmem:[%s16063_s17 + $0x30] ss:$8 sps:$4 sm:$0xff]  }
 0xc80   : > { %5795 = vmatmul.mubr.bf16.vlgmr.msra.gmra.mrb[92].mxu1 %v5567_v46  ;;  %v12379_v46 = vld [vmem:[%s16063_s17 + $0x40] ss:$8 sps:$4 sm:$0xff]   ;;  %v12384_v47 = vld [vmem:[%s16063_s17 + $0x54] ss:$8 sps:$4 sm:$0xff]  }
 0xc81   : > { %6438 = vmatpush1.bf16.msra.mxu0 %v12325_v45  ;;  %6149 = vmatprep.mubr.bf16.mxu1 %v12797_v21  ;;  %v12381_v45 = vld [vmem:[%s16063_s17 + $0x44] ss:$8 sps:$4 sm:$0xff]  }
 0xc82   : > { %6439 = vmatprep.subr.bf16.mxu0 %v12330_v48  ;;  %v12382_v48 = vld [vmem:[%s16063_s17 + $0x50] ss:$8 sps:$4 sm:$0xff]  }
 0xc85   : > { %6440 = vmatpush1.bf16.msra.mxu0 %v12328_v49  ;;  %v12387_v49 = vld [vmem:[%s16063_s17 + $0x64] ss:$8 sps:$4 sm:$0xff]  }
 0xc86   : > { %6441 = vmatprep.subr.bf16.mxu0 %v12333_v50  ;;  %v12385_v50 = vld [vmem:[%s16063_s17 + $0x60] ss:$8 sps:$4 sm:$0xff]  }
 0xc89   : > { %6442 = vmatpush1.bf16.msra.mxu0 %v12331_v51  ;;  %v12390_v51 = vld [vmem:[%s16063_s17 + $0x74] ss:$8 sps:$4 sm:$0xff]  }
 0xc8a   : > { %6443 = vmatprep.subr.bf16.mxu0 %v12336_v52  ;;  %v12388_v52 = vld [vmem:[%s16063_s17 + $0x70] ss:$8 sps:$4 sm:$0xff]  }
 0xc8d   : > { %6444 = vmatpush1.bf16.msra.mxu0 %v12334_v53  ;;  %v12393_v53 = vld [vmem:[%s16063_s17 + $0x84] ss:$8 sps:$4 sm:$0xff]  }
 0xc8e   : > { %6445 = vmatprep.subr.bf16.mxu0 %v12339_v54  ;;  %v12391_v54 = vld [vmem:[%s16063_s17 + $0x80] ss:$8 sps:$4 sm:$0xff]  }
 0xc91   : > { %6446 = vmatpush1.bf16.msra.mxu0 %v12337_v56  ;;  %v12396_v56 = vld [vmem:[%s16063_s17 + $0x94] ss:$8 sps:$4 sm:$0xff]  }
 0xc92   : > { %6447 = vmatprep.subr.bf16.mxu0 %v12342_v58  ;;  %v12394_v58 = vld [vmem:[%s16063_s17 + $0x90] ss:$8 sps:$4 sm:$0xff]  }
 0xc95   : > { %6448 = vmatpush1.bf16.msra.mxu0 %v12340_v63  ;;  %v12399_v63 = vld [vmem:[%s16063_s17 + $0xa4] ss:$8 sps:$4 sm:$0xff]  }
 0xc96   : > { %6449 = vmatprep.subr.bf16.mxu0 %v12345_v0  ;;  %v12397_v0 = vld [vmem:[%s16063_s17 + $0xa0] ss:$8 sps:$4 sm:$0xff]  }
 0xc99   : > { %6450 = vmatpush1.bf16.msra.mxu0 %v12343_v1  ;;  %v12402_v1 = vld [vmem:[%s16063_s17 + $0xb4] ss:$8 sps:$4 sm:$0xff]  }
 0xc9a   : > { %6451 = vmatprep.subr.bf16.mxu0 %v12348_v2  ;;  %v12400_v2 = vld [vmem:[%s16063_s17 + $0xb0] ss:$8 sps:$4 sm:$0xff]  }
 0xc9d   : > { %6452 = vmatpush1.bf16.msra.mxu0 %v12346_v3  ;;  %v12405_v3 = vld [vmem:[%s16063_s17 + $0xc4] ss:$8 sps:$4 sm:$0xff]  }
 0xc9e   : > { %6453 = vmatprep.subr.bf16.mxu0 %v12351_v4  ;;  %v12403_v4 = vld [vmem:[%s16063_s17 + $0xc0] ss:$8 sps:$4 sm:$0xff]  }
 0xca1   : > { %6454 = vmatpush1.bf16.msra.mxu0 %v12349_v5  ;;  %v12408_v5 = vld [vmem:[%s16063_s17 + $0xd4] ss:$8 sps:$4 sm:$0xff]  }
 0xca2   : > { %6455 = vmatprep.subr.bf16.mxu0 %v12354_v6  ;;  %v12406_v6 = vld [vmem:[%s16063_s17 + $0xd0] ss:$8 sps:$4 sm:$0xff]  }
 0xca5   : > { %6456 = vmatpush1.bf16.msra.mxu0 %v12352_v7  ;;  %v12411_v7 = vld [vmem:[%s16063_s17 + $0xe4] ss:$8 sps:$4 sm:$0xff]  }
 0xca6   : > { %6457 = vmatprep.subr.bf16.mxu0 %v12357_v9  ;;  %v12414_v9 = vld [vmem:[%s16063_s17 + $0xf4] ss:$8 sps:$4 sm:$0xff]  }
 0xca9   : > { %6458 = vmatpush1.bf16.msra.mxu0 %v12355_v8  ;;  %v12409_v8 = vld [vmem:[%s16063_s17 + $0xe0] ss:$8 sps:$4 sm:$0xff]  }
 0xcaa   : > { %6459 = vmatprep.subr.bf16.mxu0 %v12360_v10  ;;  %v12412_v10 = vld [vmem:[%s16063_s17 + $0xf0] ss:$8 sps:$4 sm:$0xff]  }
 0xcad   : > { %6460 = vmatpush1.bf16.msra.mxu0 %v12358_v11  ;;  %v12417_v11 = vld [vmem:[%s16063_s17 + $0x204] ss:$8 sps:$4 sm:$0xff]  }
 0xcae   : > { %6461 = vmatprep.subr.bf16.mxu0 %v12363_v12 }
 0xcb1   : > { %6462 = vmatpush1.bf16.msra.mxu0 %v12361_v13 }
 0xcb2   : > { %6463 = vmatprep.subr.bf16.mxu0 %v12366_v14 }
 0xcb5   : > { %6464 = vmatpush1.bf16.msra.mxu0 %v12364_v16 }
 0xd4b   : > { %v6080_v59 = vpop.f32.mrb[52].mxu0 }
 0xd4c   : > { %v6082_v60 = vpop.f32.mrb[53].mxu0 }
 0xd4d   : > { %v6084_v62 = vpop.f32.mrb[54].mxu0 }
 0xd4e   : > { %v6085_v17 = vpop.f32.mrb[55].mxu0 }
 0xd4f   : > { %v12420_v17 = vld [vmem:[%s16063_s17 + $0x214] ss:$8 sps:$4 sm:$0xff]  }
 0xd53   : > { %v5796_v15 = vpop.f32.mrb[92].mxu1 }
 0xd54   : > { %v5803_v61 = vadd.f32 %v5796_v15, %v14876_v29  ;;  %v5798_v23 = vpop.f32.mrb[93].mxu1  ;;  %v12423_v15 = vld [vmem:[%s16063_s17 + $0x224] ss:$8 sps:$4 sm:$0xff]  }
 0xd55   : > { %v5804_v25 = vadd.f32 %v5798_v23, %v14878_v31  ;;  %v5800_v20 = vpop.f32.mrb[94].mxu1  ;;  %v6107_v31 = vld [vmem:[%s16062_s16] sm:$0xf] }
 0xd56   : > { %v6087_v27 = vadd.f32 %v6080_v59, %v5803_v61  ;;  %v5801_v28 = vpop.f32.mrb[95].mxu1  ;;  %v12415_v59 = vld [vmem:[%s16063_s17 + $0x200] ss:$8 sps:$4 sm:$0xff]  }
 0xd57   : > { %v6088_v30 = vadd.f32 %v6082_v60, %v5804_v25  ;;  %v12429_v28 = vld [vmem:[%s16063_s17 + $0x234] ss:$8 sps:$4 sm:$0xff]  }
 0xd58   : > { %v6101_v24 = vadd.f32 %v6094_v22, %v6087_v27  ;;  %v12421_v27 = vld [vmem:[%s16063_s17 + $0x220] ss:$8 sps:$4 sm:$0xff]  }
 0xd59   : > { %v6102_v26 = vadd.f32 %v6098_v18, %v6088_v30  ;;  %v12427_v30 = vld [vmem:[%s16063_s17 + $0x230] ss:$8 sps:$4 sm:$0xff]  }
 0xd5a   : > { %v6103_v32 = vmax.f32 %v6101_v24, 0.0  ;;  %v12435_v24 = vld [vmem:[%s16063_s17 + $0x244] ss:$8 sps:$4 sm:$0xff]  }
 0xd5b   : > { %v6104_v33 = vmax.f32 %v6102_v26, 0.0  ;;  %v10715_v26 = vld [vmem:[%s16062_s16 + $0x8] sm:$0xf] }
 0xd5c   : > { %v6105_v34 = vpack.c.bf16 %v6103_v32, %v6103_v32  ;;  %v12426_v32 = vld [vmem:[%s16063_s17 + $0x304] ss:$8 sps:$4 sm:$0xff]  }
 0xd5d   : > { %v14981_v35 = vpack.c.bf16 %v6104_v33, %v6104_v33  ;;  %v12433_v33 = vld [vmem:[%s16063_s17 + $0x240] ss:$8 sps:$4 sm:$0xff]  }
 0xd5e   : > { %v14984_v29 = vsel %vm3800_vm6, %v6105_v34, 0  ;;  %v12441_v34 = vld [vmem:[%s16063_s17 + $0x254] ss:$8 sps:$4 sm:$0xff]  }
 0xd5f   : > { %10614 = vmatprep.subr.msk.bf16.mxu1 %vm3800_vm6, %v14981_v35  ;;  %10716 = vmatprep.subr.msk.bf16.mxu0 %vm3800_vm6, %v14981_v35 }
 0xd60   : > { %6118 = vmatpush1.bf16.msra.mxu1 %v14984_v29 }
 0xd61   : > { %10617 = vmatprep.subr.msk.bf16.mxu1 %vm3800_vm6, %v14981_v35 }
 0xd63   : > { %10615 = vmatmul.mubr.msk.bf16.vlgmr.msra.gmra.mrb[96].mxu1 %vm3796_vm7, %v6107_v31  ;;  %v12447_v31 = vld [vmem:[%s16063_s17 + $0x264] ss:$8 sps:$4 sm:$0xff]  }
 0xd64   : > { %6198 = vmatpush1.bf16.msra.mxu1 %v14984_v29  ;;  %6229 = vmatprep.mubr.bf16.mxu1 %v12797_v21 }
 0xd65   : > { %6634 = vmatprep.subr.bf16.mxu1 %v12369_v36  ;;  %v10782_v36 = vld [vmem:[%s16062_s16 + $0xc] sm:$0xf] }
 0xd6b   : > { %10618 = vmatmul.mubr.msk.bf16.vlgmr.msra.gmra.mrb[100].mxu1 %vm3796_vm7, %v10616_v37  ;;  %v12432_v37 = vld [vmem:[%s16063_s17 + $0x314] ss:$8 sps:$4 sm:$0xff]  }
 0xd6c   : > { %6635 = vmatpush1.bf16.msra.mxu1 %v12367_v38  ;;  %v12445_v38 = vld [vmem:[%s16063_s17 + $0x260] ss:$8 sps:$4 sm:$0xff]  }
 0xd6d   : > { %6636 = vmatprep.subr.bf16.mxu1 %v12372_v39  ;;  %v12453_v39 = vld [vmem:[%s16063_s17 + $0x274] ss:$8 sps:$4 sm:$0xff]  }
 0xd70   : > { %6637 = vmatpush1.bf16.msra.mxu1 %v12370_v40  ;;  %v12430_v40 = vld [vmem:[%s16063_s17 + $0x310] ss:$8 sps:$4 sm:$0xff]  }
 0xd71   : > { %6638 = vmatprep.subr.bf16.mxu1 %v12375_v41  ;;  %v12438_v41 = vld [vmem:[%s16063_s17 + $0x324] ss:$8 sps:$4 sm:$0xff]  }
 0xd74   : > { %6639 = vmatpush1.bf16.msra.mxu1 %v12373_v42  ;;  %v12451_v42 = vld [vmem:[%s16063_s17 + $0x270] ss:$8 sps:$4 sm:$0xff]  }
 0xd75   : > { %6640 = vmatprep.subr.bf16.mxu1 %v12378_v43  ;;  %v12459_v43 = vld [vmem:[%s16063_s17 + $0x284] ss:$8 sps:$4 sm:$0xff]  }
 0xd78   : > { %6641 = vmatpush1.bf16.msra.mxu1 %v12376_v44  ;;  %v12436_v44 = vld [vmem:[%s16063_s17 + $0x320] ss:$8 sps:$4 sm:$0xff]  }
 0xd79   : > { %6642 = vmatprep.subr.bf16.mxu1 %v12381_v45  ;;  %v12444_v45 = vld [vmem:[%s16063_s17 + $0x334] ss:$8 sps:$4 sm:$0xff]  }
 0xd7c   : > { %6643 = vmatpush1.bf16.msra.mxu1 %v12379_v46  ;;  %v12457_v46 = vld [vmem:[%s16063_s17 + $0x280] ss:$8 sps:$4 sm:$0xff]  }
 0xd7d   : > { %6644 = vmatprep.subr.bf16.mxu1 %v12384_v47  ;;  %v12465_v47 = vld [vmem:[%s16063_s17 + $0x294] ss:$8 sps:$4 sm:$0xff]  }
 0xd80   : > { %6645 = vmatpush1.bf16.msra.mxu1 %v12382_v48  ;;  %v12442_v48 = vld [vmem:[%s16063_s17 + $0x330] ss:$8 sps:$4 sm:$0xff]  }
 0xd81   : > { %6646 = vmatprep.subr.bf16.mxu1 %v12387_v49  ;;  %v12450_v49 = vld [vmem:[%s16063_s17 + $0x344] ss:$8 sps:$4 sm:$0xff]  }
 0xd84   : > { %6647 = vmatpush1.bf16.msra.mxu1 %v12385_v50  ;;  %v12463_v50 = vld [vmem:[%s16063_s17 + $0x290] ss:$8 sps:$4 sm:$0xff]  }
 0xd85   : > { %6648 = vmatprep.subr.bf16.mxu1 %v12390_v51  ;;  %v12471_v51 = vld [vmem:[%s16063_s17 + $0x2a4] ss:$8 sps:$4 sm:$0xff]  }
 0xd88   : > { %6649 = vmatpush1.bf16.msra.mxu1 %v12388_v52  ;;  %v12448_v52 = vld [vmem:[%s16063_s17 + $0x340] ss:$8 sps:$4 sm:$0xff]  }
 0xd89   : > { %6650 = vmatprep.subr.bf16.mxu1 %v12393_v53  ;;  %v12456_v53 = vld [vmem:[%s16063_s17 + $0x354] ss:$8 sps:$4 sm:$0xff]  }
 0xd8c   : > { %6651 = vmatpush1.bf16.msra.mxu1 %v12391_v54  ;;  %v12469_v54 = vld [vmem:[%s16063_s17 + $0x2a0] ss:$8 sps:$4 sm:$0xff]  }
 0xd8d   : > { %6652 = vmatprep.subr.bf16.mxu1 %v12396_v56  ;;  %v12454_v56 = vld [vmem:[%s16063_s17 + $0x350] ss:$8 sps:$4 sm:$0xff]  }
 0xd90   : > { %6653 = vmatpush1.bf16.msra.mxu1 %v12394_v58  ;;  %v12462_v58 = vld [vmem:[%s16063_s17 + $0x364] ss:$8 sps:$4 sm:$0xff]  }
 0xd91   : > { %6654 = vmatprep.subr.bf16.mxu1 %v12399_v63  ;;  %v12460_v63 = vld [vmem:[%s16063_s17 + $0x360] ss:$8 sps:$4 sm:$0xff]  }
 0xd94   : > { %6655 = vmatpush1.bf16.msra.mxu1 %v12397_v0  ;;  %v12468_v0 = vld [vmem:[%s16063_s17 + $0x374] ss:$8 sps:$4 sm:$0xff]  }
 0xd95   : > { %6656 = vmatprep.subr.bf16.mxu1 %v12402_v1  ;;  %v12466_v1 = vld [vmem:[%s16063_s17 + $0x370] ss:$8 sps:$4 sm:$0xff]  }
 0xd98   : > { %6657 = vmatpush1.bf16.msra.mxu1 %v12400_v2  ;;  %v12474_v2 = vld [vmem:[%s16063_s17 + $0x384] ss:$8 sps:$4 sm:$0xff]  }
 0xd99   : > { %6658 = vmatprep.subr.bf16.mxu1 %v12405_v3  ;;  %v12472_v3 = vld [vmem:[%s16063_s17 + $0x380] ss:$8 sps:$4 sm:$0xff]  }
 0xd9c   : > { %6659 = vmatpush1.bf16.msra.mxu1 %v12403_v4  ;;  %v12477_v4 = vld [vmem:[%s16063_s17 + $0x2b4] ss:$8 sps:$4 sm:$0xff]  }
 0xd9d   : > { %6660 = vmatprep.subr.bf16.mxu1 %v12408_v5  ;;  %v12480_v5 = vld [vmem:[%s16063_s17 + $0x394] ss:$8 sps:$4 sm:$0xff]  }
 0xda0   : > { %6661 = vmatpush1.bf16.msra.mxu1 %v12406_v6  ;;  %v12475_v6 = vld [vmem:[%s16063_s17 + $0x2b0] ss:$8 sps:$4 sm:$0xff]  }
 0xda1   : > { %6662 = vmatprep.subr.bf16.mxu1 %v12411_v7  ;;  %v12478_v7 = vld [vmem:[%s16063_s17 + $0x390] ss:$8 sps:$4 sm:$0xff]  }
 0xda4   : > { %6663 = vmatpush1.bf16.msra.mxu1 %v12409_v8  ;;  %v12481_v8 = vld [vmem:[%s16063_s17 + $0x2c0] ss:$8 sps:$4 sm:$0xff]  }
 0xda5   : > { %6664 = vmatprep.subr.bf16.mxu1 %v12414_v9  ;;  %v12483_v9 = vld [vmem:[%s16063_s17 + $0x2c4] ss:$8 sps:$4 sm:$0xff]  }
 0xda8   : > { %6665 = vmatpush1.bf16.msra.mxu1 %v12412_v10  ;;  %v12484_v10 = vld [vmem:[%s16063_s17 + $0x3a0] ss:$8 sps:$4 sm:$0xff]  }
 0xda9   : > { %6916 = vmatprep.subr.bf16.mxu1 %v12417_v11  ;;  %v12486_v11 = vld [vmem:[%s16063_s17 + $0x3a4] ss:$8 sps:$4 sm:$0xff]  }
 0xe36   : > { %v6151_v12 = vpop.f32.mrb[96].mxu1 }
 0xe37   : > { %v6153_v13 = vpop.f32.mrb[97].mxu1  ;;  %v6158_v60 = vpack.c.bf16 %v6151_v12, %v6151_v12  ;;  %v12489_v12 = vld [vmem:[%s16063_s17 + $0x2d4] ss:$8 sps:$4 sm:$0xff]  }
 0xe38   : > { %v6159_v14 = vpack.c.bf16 %v6153_v13, %v6153_v13  ;;  %v6155_v16 = vpop.f32.mrb[98].mxu1  ;;  %v12492_v13 = vld [vmem:[%s16063_s17 + $0x3b4] ss:$8 sps:$4 sm:$0xff]  }
 0xe39   : > { %v6156_v62 = vpop.f32.mrb[99].mxu1  ;;  %v12490_v16 = vld [vmem:[%s16063_s17 + $0x3b0] ss:$8 sps:$4 sm:$0xff]  }
 0xe3a   : > { %6666 = vmatprep.mubr.bf16.mxu1 %v6159_v14  ;;  %v12487_v14 = vld [vmem:[%s16063_s17 + $0x2d0] ss:$8 sps:$4 sm:$0xff]   ;;  %v12496_v62 = vld [vmem:[%s16063_s17 + $0x3c0] ss:$8 sps:$4 sm:$0xff]  }
 0xe3b   : > { %6667 = vmatmul.mubr.bf16.vlgmr.msra.gmra.mrb[104].mxu1 %v6158_v60  ;;  %v12495_v60 = vld [vmem:[%s16063_s17 + $0x2e4] ss:$8 sps:$4 sm:$0xff]  }
 0xe3c   : > { %6917 = vmatpush1.bf16.msra.mxu1 %v12415_v59  ;;  %v12493_v59 = vld [vmem:[%s16063_s17 + $0x2e0] ss:$8 sps:$4 sm:$0xff]  }
 0xe3d   : > { %6918 = vmatprep.subr.bf16.mxu1 %v12420_v17  ;;  %v12498_v17 = vld [vmem:[%s16063_s17 + $0x3c4] ss:$8 sps:$4 sm:$0xff]  }
 0xe3e   : > { %v6231_v61 = vpop.f32.mrb[100].mxu1 }
 0xe3f   : > { %v6233_v22 = vpop.f32.mrb[101].mxu1  ;;  %v6238_v18 = vpack.c.bf16 %v6231_v61, %v6231_v61  ;;  %v12499_v61 = vld [vmem:[%s16063_s17 + $0x2f0] ss:$8 sps:$4 sm:$0xff]  }
 0xe40   : > { %v6239_v23 = vpack.c.bf16 %v6233_v22, %v6233_v22  ;;  %v6235_v25 = vpop.f32.mrb[102].mxu1  ;;  %6919 = vmatpush1.bf16.msra.mxu1 %v12418_v19  ;;  %v12501_v19 = vld [vmem:[%s16063_s17 + $0x2f4] ss:$8 sps:$4 sm:$0xff]   ;;  %v12502_v22 = vld [vmem:[%s16063_s17 + $0x3d0] ss:$8 sps:$4 sm:$0xff]  }
 0xe41   : > { %v6236_v20 = vpop.f32.mrb[103].mxu1  ;;  %6920 = vmatprep.subr.bf16.mxu1 %v12423_v15  ;;  %v12504_v15 = vld [vmem:[%s16063_s17 + $0x3d4] ss:$8 sps:$4 sm:$0xff]   ;;  %v12505_v25 = vld [vmem:[%s16063_s17 + $0x3e0] ss:$8 sps:$4 sm:$0xff]  }
 0xe42   : > { %6465 = vmatprep.mubr.bf16.mxu0 %v6239_v23  ;;  %v12507_v23 = vld [vmem:[%s16063_s17 + $0x3e4] ss:$8 sps:$4 sm:$0xff]   ;;  %v12508_v20 = vld [vmem:[%s16063_s17 + $0x3f0] ss:$8 sps:$4 sm:$0xff]  }
 0xe43   : > { %6466 = vmatmul.mubr.bf16.vlgmr.msra.gmra.mrb[56].mxu0 %v6238_v18  ;;  %v12510_v18 = vld [vmem:[%s16063_s17 + $0x3f4] ss:$8 sps:$4 sm:$0xff]  }
 0xe44   : > { %6681 = vmatpush1.bf16.msra.mxu0 %v14984_v29  ;;  %6712 = vmatprep.mubr.bf16.mxu0 %v12797_v21 }
 0xe45   : > { %10783 = vmatprep.subr.msk.bf16.mxu0 %vm3800_vm6, %v14981_v35  ;;  %6921 = vmatpush1.bf16.msra.mxu1 %v12421_v27  ;;  %v12439_v35 = vld [vmem:[%s16063_s17 + $0x250] ss:$8 sps:$4 sm:$0xff]  }
 0xe46   : > { %6922 = vmatprep.subr.bf16.mxu1 %v12429_v28 }
 0xe49   : > { %6923 = vmatpush1.bf16.msra.mxu1 %v12427_v30 }
 0xe4a   : > { %6924 = vmatprep.subr.bf16.mxu1 %v12435_v24 }
 0xe4b   : > { %10717 = vmatmul.mubr.msk.bf16.vlgmr.msra.gmra.mrb[60].mxu0 %vm3796_vm7, %v10715_v26 }
 0xe4c   : > { %6965 = vmatpush1.bf16.msra.mxu0 %v14984_v29  ;;  %6996 = vmatprep.mubr.bf16.mxu0 %v12797_v21  ;;  %v12424_v29 = vld [vmem:[%s16063_s17 + $0x300] ss:$8 sps:$4 sm:$0xff]  }
 0xe4d   : > { %7200 = vmatprep.subr.bf16.mxu0 %v12426_v32  ;;  %6925 = vmatpush1.bf16.msra.mxu1 %v12433_v33 }
 0xe4e   : > { %6926 = vmatprep.subr.bf16.mxu1 %v12441_v34 }
 0xe51   : > { %6927 = vmatpush1.bf16.msra.mxu1 %v12439_v35 }
 0xe52   : > { %6928 = vmatprep.subr.bf16.mxu1 %v12447_v31 }
 0xe53   : > { %10784 = vmatmul.mubr.msk.bf16.vlgmr.msra.gmra.mrb[64].mxu0 %vm3796_vm7, %v10782_v36 }
 0xe54   : > { %7201 = vmatpush1.bf16.msra.mxu0 %v12424_v29 }
 0xe55   : > { %7202 = vmatprep.subr.bf16.mxu0 %v12432_v37  ;;  %6929 = vmatpush1.bf16.msra.mxu1 %v12445_v38 }
 0xe56   : > { %6930 = vmatprep.subr.bf16.mxu1 %v12453_v39 }
 0xe58   : > { %7203 = vmatpush1.bf16.msra.mxu0 %v12430_v40 }
 0xe59   : > { %7204 = vmatprep.subr.bf16.mxu0 %v12438_v41  ;;  %6931 = vmatpush1.bf16.msra.mxu1 %v12451_v42 }
 0xe5a   : > { %6932 = vmatprep.subr.bf16.mxu1 %v12459_v43 }
 0xe5c   : > { %7205 = vmatpush1.bf16.msra.mxu0 %v12436_v44 }
 0xe5d   : > { %7206 = vmatprep.subr.bf16.mxu0 %v12444_v45  ;;  %6933 = vmatpush1.bf16.msra.mxu1 %v12457_v46 }
 0xe5e   : > { %6934 = vmatprep.subr.bf16.mxu1 %v12465_v47  ;;  %v12514_v47 = vld [vmem:[%s16066_s20 + $0x100] ss:$8 sps:$4 sm:$0xff]  }
 0xe60   : > { %7207 = vmatpush1.bf16.msra.mxu0 %v12442_v48  ;;  %v12516_v48 = vld [vmem:[%s16066_s20 + $0x104] ss:$8 sps:$4 sm:$0xff]  }
 0xe61   : > { %7208 = vmatprep.subr.bf16.mxu0 %v12450_v49  ;;  %6935 = vmatpush1.bf16.msra.mxu1 %v12463_v50  ;;  %v12519_v49 = vld [vmem:[%s16066_s20 + $0x114] ss:$8 sps:$4 sm:$0xff]   ;;  %v12517_v50 = vld [vmem:[%s16066_s20 + $0x110] ss:$8 sps:$4 sm:$0xff]  }
 0xe62   : > { %6936 = vmatprep.subr.bf16.mxu1 %v12471_v51  ;;  %v12522_v51 = vld [vmem:[%s16066_s20 + $0x124] ss:$8 sps:$4 sm:$0xff]  }
 0xe64   : > { %7209 = vmatpush1.bf16.msra.mxu0 %v12448_v52  ;;  %v12520_v52 = vld [vmem:[%s16066_s20 + $0x120] ss:$8 sps:$4 sm:$0xff]  }
 0xe65   : > { %7210 = vmatprep.subr.bf16.mxu0 %v12456_v53  ;;  %6937 = vmatpush1.bf16.msra.mxu1 %v12469_v54  ;;  %v12525_v53 = vld [vmem:[%s16066_s20 + $0x134] ss:$8 sps:$4 sm:$0xff]   ;;  %v12523_v54 = vld [vmem:[%s16066_s20 + $0x130] ss:$8 sps:$4 sm:$0xff]  }
 0xe66   : > { %6938 = vmatprep.subr.bf16.mxu1 %v12477_v4  ;;  %v12535_v4 = vld [vmem:[%s16066_s20 + $0x170] ss:$8 sps:$4 sm:$0xff]  }
 0xe68   : > { %7211 = vmatpush1.bf16.msra.mxu0 %v12454_v56  ;;  %v12528_v56 = vld [vmem:[%s16066_s20 + $0x144] ss:$8 sps:$4 sm:$0xff]  }
 0xe69   : > { %7212 = vmatprep.subr.bf16.mxu0 %v12462_v58  ;;  %6939 = vmatpush1.bf16.msra.mxu1 %v12475_v6  ;;  %v12526_v58 = vld [vmem:[%s16066_s20 + $0x140] ss:$8 sps:$4 sm:$0xff]  }
 0xe6a   : > { %6940 = vmatprep.subr.bf16.mxu1 %v12483_v9  ;;  %v12538_v6 = vld [vmem:[%s16066_s20 + $0x180] ss:$8 sps:$4 sm:$0xff]   ;;  %v12547_v9 = vld [vmem:[%s16066_s20 + $0x1a4] ss:$8 sps:$4 sm:$0xff]  }
 0xe6c   : > { %7213 = vmatpush1.bf16.msra.mxu0 %v12460_v63  ;;  %v12531_v63 = vld [vmem:[%s16066_s20 + $0x154] ss:$8 sps:$4 sm:$0xff]  }
 0xe6d   : > { %7214 = vmatprep.subr.bf16.mxu0 %v12468_v0  ;;  %6941 = vmatpush1.bf16.msra.mxu1 %v12481_v8  ;;  %v12529_v0 = vld [vmem:[%s16066_s20 + $0x150] ss:$8 sps:$4 sm:$0xff]  }
 0xe6e   : > { %6942 = vmatprep.subr.bf16.mxu1 %v12489_v12  ;;  %v12542_v8 = vld [vmem:[%s16066_s20 + $0x190] ss:$8 sps:$4 sm:$0xff]  }
 0xe6f   : > { %v12548_v12 = vld [vmem:[%s16066_s20 + $0x1b0] ss:$8 sps:$4 sm:$0xff]  }
 0xe70   : > { %7215 = vmatpush1.bf16.msra.mxu0 %v12466_v1  ;;  %v12534_v1 = vld [vmem:[%s16066_s20 + $0x164] ss:$8 sps:$4 sm:$0xff]  }
 0xe71   : > { %7216 = vmatprep.subr.bf16.mxu0 %v12474_v2  ;;  %6943 = vmatpush1.bf16.msra.mxu1 %v12487_v14  ;;  %v12532_v2 = vld [vmem:[%s16066_s20 + $0x160] ss:$8 sps:$4 sm:$0xff]  }
 0xe72   : > { %6944 = vmatprep.subr.bf16.mxu1 %v12495_v60  ;;  %v12551_v14 = vld [vmem:[%s16066_s20 + $0x1c0] ss:$8 sps:$4 sm:$0xff]  }
 0xe74   : > { %7217 = vmatpush1.bf16.msra.mxu0 %v12472_v3  ;;  %v12537_v3 = vld [vmem:[%s16066_s20 + $0x174] ss:$8 sps:$4 sm:$0xff]  }
 0xe75   : > { %7218 = vmatprep.subr.bf16.mxu0 %v12480_v5  ;;  %6945 = vmatpush1.bf16.msra.mxu1 %v12493_v59  ;;  %v12540_v5 = vld [vmem:[%s16066_s20 + $0x184] ss:$8 sps:$4 sm:$0xff]  }
 0xe76   : > { %6946 = vmatprep.subr.bf16.mxu1 %v12501_v19 }
 0xe78   : > { %7219 = vmatpush1.bf16.msra.mxu0 %v12478_v7  ;;  %v12544_v7 = vld [vmem:[%s16066_s20 + $0x194] ss:$8 sps:$4 sm:$0xff]  }
 0xe79   : > { %7220 = vmatprep.subr.bf16.mxu0 %v12486_v11  ;;  %6947 = vmatpush1.bf16.msra.mxu1 %v12499_v61  ;;  %v12550_v11 = vld [vmem:[%s16066_s20 + $0x1b4] ss:$8 sps:$4 sm:$0xff]  }
 0xe7c   : > { %7221 = vmatpush1.bf16.msra.mxu0 %v12484_v10  ;;  %v12545_v10 = vld [vmem:[%s16066_s20 + $0x1a0] ss:$8 sps:$4 sm:$0xff]  }
 0xe7d   : > { %7222 = vmatprep.subr.bf16.mxu0 %v12492_v13  ;;  %v12553_v13 = vld [vmem:[%s16066_s20 + $0x1c4] ss:$8 sps:$4 sm:$0xff]  }
 0xe80   : > { %7223 = vmatpush1.bf16.msra.mxu0 %v12490_v16 }
 0xe81   : > { %7224 = vmatprep.subr.bf16.mxu0 %v12498_v17 }
 0xe84   : > { %7225 = vmatpush1.bf16.msra.mxu0 %v12496_v62 }
 0xe85   : > { %7226 = vmatprep.subr.bf16.mxu0 %v12504_v15  ;;  %v7243_v15 = vld [vmem:[%s16064_s18] sm:$0x3] }
 0xe86   : > { %v7248_v61 = vrot.slane %v7243_v15, %v13245_v55 }
 0xe88   : > { %7227 = vmatpush1.bf16.msra.mxu0 %v12502_v22 }
 0xe89   : > { %7228 = vmatprep.subr.bf16.mxu0 %v12507_v23  ;;  %v7252_v23 = vrot.slane %v7243_v15, %v13250_v57  ;;  %v12587_v15 = vld [vmem:[%s16066_s20 + $0x80] ss:$8 sps:$4 sm:$0xff]  }
 0xe8c   : > { %7229 = vmatpush1.bf16.msra.mxu0 %v12505_v25 }
 0xe8d   : > { %7230 = vmatprep.subr.bf16.mxu0 %v12510_v18 }
 0xe90   : > { %7231 = vmatpush1.bf16.msra.mxu0 %v12508_v20 }
 0xe91   : > { %7603 = vmatprep.subr.bf16.mxu0 %v12516_v48 }
 0xf0e   : > { %v6668_v27 = vpop.f32.mrb[104].mxu1 }
 0xf0f   : > { %v6670_v28 = vpop.f32.mrb[105].mxu1 }
 0xf10   : > { %v6672_v30 = vpop.f32.mrb[106].mxu1 }
 0xf11   : > { %v6673_v24 = vpop.f32.mrb[107].mxu1 }
 0xf16   : > { %v6467_v26 = vpop.f32.mrb[56].mxu0 }
 0xf17   : > { %v15305_v32 = vadd.f32 %v6668_v27, %v6467_v26  ;;  %v6469_v33 = vpop.f32.mrb[57].mxu0 }
 0xf18   : > { %v15307_v34 = vadd.f32 %v6670_v28, %v6469_v33  ;;  %v6471_v35 = vpop.f32.mrb[58].mxu0 }
 0xf19   : > { %v6472_v31 = vpop.f32.mrb[59].mxu0 }
 0xf1a   : > { %v12511_v31 = vld [vmem:[%s16065_s19] sm:$0xff]  }
 0xf1e   : > { %v6714_v36 = vpop.f32.mrb[60].mxu0 }
 0xf1f   : > { %v6716_v29 = vpop.f32.mrb[61].mxu0  ;;  %v6721_v39 = vpack.c.bf16 %v6714_v36, %v6714_v36  ;;  %v12512_v36 = vld [vmem:[%s16065_s19 + $0x8] sm:$0xff]  }
 0xf20   : > { %v6722_v37 = vpack.c.bf16 %v6716_v29, %v6716_v29  ;;  %v6718_v38 = vpop.f32.mrb[62].mxu0  ;;  %v12513_v29 = vld [vmem:[%s16065_s19 + $0x10] sm:$0xff]  }
 0xf21   : > { %v6719_v40 = vpop.f32.mrb[63].mxu0  ;;  %v12556_v38 = vld [vmem:[%s16066_s20 + $0x1d4] ss:$8 sps:$4 sm:$0xff]  }
 0xf22   : > { %6948 = vmatprep.mubr.bf16.mxu1 %v6722_v37  ;;  %v12541_v37 = vld [vmem:[%s16065_s19 + $0x18] sm:$0xff]   ;;  %v12557_v40 = vld [vmem:[%s16066_s20 + $0x1e0] ss:$8 sps:$4 sm:$0xff]  }
 0xf23   : > { %6949 = vmatmul.mubr.bf16.vlgmr.msra.gmra.mrb[108].mxu1 %v6721_v39  ;;  %v12554_v39 = vld [vmem:[%s16066_s20 + $0x1d0] ss:$8 sps:$4 sm:$0xff]  }
 0xf24   : > { %7309 = vmatprep.mubr.bf16.mxu1 %v12797_v21 }
 0xf26   : > { %v6998_v41 = vpop.f32.mrb[64].mxu0 }
 0xf27   : > { %v7000_v42 = vpop.f32.mrb[65].mxu0  ;;  %v7005_v45 = vpack.c.bf16 %v6998_v41, %v6998_v41  ;;  %v12559_v41 = vld [vmem:[%s16066_s20 + $0x1e4] ss:$8 sps:$4 sm:$0xff]  }
 0xf28   : > { %v7006_v43 = vpack.c.bf16 %v7000_v42, %v7000_v42  ;;  %v7002_v44 = vpop.f32.mrb[66].mxu0  ;;  %v12562_v42 = vld [vmem:[%s16066_s20 + $0x1f4] ss:$8 sps:$4 sm:$0xff]  }
 0xf29   : > { %v7003_v46 = vpop.f32.mrb[67].mxu0  ;;  %v12565_v44 = vld [vmem:[%s16066_s20 + $0x4] ss:$8 sps:$4 sm:$0xff]  }
 0xf2a   : > { %7232 = vmatprep.mubr.bf16.mxu0 %v7006_v43  ;;  %v12560_v43 = vld [vmem:[%s16066_s20 + $0x1f0] ss:$8 sps:$4 sm:$0xff]  }
 0xf2b   : > { %7233 = vmatmul.mubr.bf16.vlgmr.msra.gmra.mrb[68].mxu0 %v7005_v45 }
 0xf2c   : > { %7604 = vmatpush1.bf16.msra.mxu0 %v12514_v47 }
 0xf2d   : > { %7605 = vmatprep.subr.bf16.mxu0 %v12519_v49 }
 0xf30   : > { %7606 = vmatpush1.bf16.msra.mxu0 %v12517_v50 }
 0xf31   : > { %7607 = vmatprep.subr.bf16.mxu0 %v12522_v51 }
 0xf34   : > { %7608 = vmatpush1.bf16.msra.mxu0 %v12520_v52 }
 0xf35   : > { %7609 = vmatprep.subr.bf16.mxu0 %v12525_v53 }
 0xf38   : > { %7610 = vmatpush1.bf16.msra.mxu0 %v12523_v54 }
 0xf39   : > { %7611 = vmatprep.subr.bf16.mxu0 %v12528_v56 }
 0xf3c   : > { %7612 = vmatpush1.bf16.msra.mxu0 %v12526_v58 }
 0xf3d   : > { %7613 = vmatprep.subr.bf16.mxu0 %v12531_v63  ;;  %v12563_v63 = vld [vmem:[%s16066_s20] ss:$8 sps:$4 sm:$0xff]  }
 0xf40   : > { %7614 = vmatpush1.bf16.msra.mxu0 %v12529_v0  ;;  %v12568_v0 = vld [vmem:[%s16066_s20 + $0x14] ss:$8 sps:$4 sm:$0xff]  }
 0xf41   : > { %7615 = vmatprep.subr.bf16.mxu0 %v12534_v1  ;;  %v12566_v1 = vld [vmem:[%s16066_s20 + $0x10] ss:$8 sps:$4 sm:$0xff]  }
 0xf44   : > { %7616 = vmatpush1.bf16.msra.mxu0 %v12532_v2 }
 0xf45   : > { %7617 = vmatprep.subr.bf16.mxu0 %v12537_v3  ;;  %v12571_v3 = vld [vmem:[%s16066_s20 + $0x24] ss:$8 sps:$4 sm:$0xff]  }
 0xf48   : > { %7618 = vmatpush1.bf16.msra.mxu0 %v12535_v4 }
 0xf49   : > { %7619 = vmatprep.subr.bf16.mxu0 %v12540_v5 }
 0xf4c   : > { %7620 = vmatpush1.bf16.msra.mxu0 %v12538_v6 }
 0xf4d   : > { %7621 = vmatprep.subr.bf16.mxu0 %v12544_v7 }
 0xf50   : > { %7622 = vmatpush1.bf16.msra.mxu0 %v12542_v8  ;;  %v12569_v8 = vld [vmem:[%s16066_s20 + $0x20] ss:$8 sps:$4 sm:$0xff]  }
 0xf51   : > { %7623 = vmatprep.subr.bf16.mxu0 %v12547_v9 }
 0xf54   : > { %7624 = vmatpush1.bf16.msra.mxu0 %v12545_v10  ;;  %v12574_v10 = vld [vmem:[%s16066_s20 + $0x34] ss:$8 sps:$4 sm:$0xff]  }
 0xf55   : > { %7625 = vmatprep.subr.bf16.mxu0 %v12550_v11  ;;  %v12572_v11 = vld [vmem:[%s16066_s20 + $0x30] ss:$8 sps:$4 sm:$0xff]  }
 0xf58   : > { %7626 = vmatpush1.bf16.msra.mxu0 %v12548_v12  ;;  %v12577_v12 = vld [vmem:[%s16066_s20 + $0x44] ss:$8 sps:$4 sm:$0xff]  }
 0xf59   : > { %7627 = vmatprep.subr.bf16.mxu0 %v12553_v13  ;;  %v12575_v13 = vld [vmem:[%s16066_s20 + $0x40] ss:$8 sps:$4 sm:$0xff]  }
 0xf5c   : > { %7628 = vmatpush1.bf16.msra.mxu0 %v12551_v14  ;;  %v12580_v14 = vld [vmem:[%s16066_s20 + $0x54] ss:$8 sps:$4 sm:$0xff]  }
 0xf5d   : > { %7629 = vmatprep.subr.bf16.mxu0 %v12556_v38 }
 0xf60   : > { %7630 = vmatpush1.bf16.msra.mxu0 %v12554_v39  ;;  %v12613_v39 = vld [vmem:[%s16066_s20 + $0x204] ss:$8 sps:$4 sm:$0xff]  }
 0xf61   : > { %7631 = vmatprep.subr.bf16.mxu0 %v12559_v41  ;;  %v12616_v41 = vld [vmem:[%s16066_s20 + $0x214] ss:$8 sps:$4 sm:$0xff]  }
 0xf64   : > { %7632 = vmatpush1.bf16.msra.mxu0 %v12557_v40  ;;  %v12611_v40 = vld [vmem:[%s16066_s20 + $0x200] ss:$8 sps:$4 sm:$0xff]  }
 0xf65   : > { %7633 = vmatprep.subr.bf16.mxu0 %v12562_v42  ;;  %v12614_v42 = vld [vmem:[%s16066_s20 + $0x210] ss:$8 sps:$4 sm:$0xff]  }
 0xf68   : > { %7634 = vmatpush1.bf16.msra.mxu0 %v12560_v43  ;;  %v12619_v43 = vld [vmem:[%s16066_s20 + $0x224] ss:$8 sps:$4 sm:$0xff]  }
 0xf69   : > { %7806 = vmatprep.subr.bf16.mxu0 %v12565_v44  ;;  %v12617_v44 = vld [vmem:[%s16066_s20 + $0x220] ss:$8 sps:$4 sm:$0xff]  }
 0xff6   : > { %v6950_v16 = vpop.f32.mrb[108].mxu1 }
 0xff7   : > { %v6957_v59 = vadd.f32 %v6950_v16, %v15305_v32  ;;  %v6952_v60 = vpop.f32.mrb[109].mxu1  ;;  %v12578_v16 = vld [vmem:[%s16066_s20 + $0x50] ss:$8 sps:$4 sm:$0xff]  }
 0xff8   : > { %v6958_v62 = vadd.f32 %v6952_v60, %v15307_v34  ;;  %v6954_v17 = vpop.f32.mrb[110].mxu1  ;;  %v12581_v60 = vld [vmem:[%s16066_s20 + $0x60] ss:$8 sps:$4 sm:$0xff]  }
 0xff9   : > { %v6955_v19 = vpop.f32.mrb[111].mxu1  ;;  %v12584_v17 = vld [vmem:[%s16066_s20 + $0x70] ss:$8 sps:$4 sm:$0xff]  }
 0xffa   : > { %v12589_v19 = vld [vmem:[%s16066_s20 + $0x84] ss:$8 sps:$4 sm:$0xff]  }
 0xffe   : > { %v7234_v22 = vpop.f32.mrb[68].mxu0 }
 0xfff   : > { %v7241_v25 = vadd.f32 %v7234_v22, %v6957_v59  ;;  %v7236_v18 = vpop.f32.mrb[69].mxu0  ;;  %v12583_v59 = vld [vmem:[%s16066_s20 + $0x64] ss:$8 sps:$4 sm:$0xff]   ;;  %v12590_v22 = vld [vmem:[%s16066_s20 + $0x90] ss:$8 sps:$4 sm:$0xff]  }
0x1000   : > { %v7242_v20 = vadd.f32 %v7236_v18, %v6958_v62  ;;  %v7238_v27 = vpop.f32.mrb[70].mxu0  ;;  %v12586_v62 = vld [vmem:[%s16066_s20 + $0x74] ss:$8 sps:$4 sm:$0xff]  }
0x1001   : > { %v7255_v28 = vadd.f32 %v7248_v61, %v7241_v25  ;;  %v7239_v30 = vpop.f32.mrb[71].mxu0  ;;  %v12592_v61 = vld [vmem:[%s16066_s20 + $0x94] ss:$8 sps:$4 sm:$0xff]   ;;  %v12593_v25 = vld [vmem:[%s16066_s20 + $0xa0] ss:$8 sps:$4 sm:$0xff]  }
0x1002   : > { %v7256_v24 = vadd.f32 %v7252_v23, %v7242_v20  ;;  %v12595_v23 = vld [vmem:[%s16066_s20 + $0xa4] ss:$8 sps:$4 sm:$0xff]   ;;  %v12598_v18 = vld [vmem:[%s16066_s20 + $0xb4] ss:$8 sps:$4 sm:$0xff]   ;;  %v12596_v20 = vld [vmem:[%s16066_s20 + $0xb0] ss:$8 sps:$4 sm:$0xff]  }
0x1003   : > { %v7257_v26 = vmax.f32 %v7255_v28, 0.0  ;;  %v12601_v27 = vld [vmem:[%s16066_s20 + $0xc4] ss:$8 sps:$4 sm:$0xff]   ;;  %v12599_v28 = vld [vmem:[%s16066_s20 + $0xc0] ss:$8 sps:$4 sm:$0xff]  }
0x1004   : > { %v7258_v32 = vmax.f32 %v7256_v24, 0.0  ;;  %v12604_v30 = vld [vmem:[%s16066_s20 + $0xd4] ss:$8 sps:$4 sm:$0xff]   ;;  %v12602_v24 = vld [vmem:[%s16066_s20 + $0xd0] ss:$8 sps:$4 sm:$0xff]  }
0x1005   : > { %v7259_v33 = vpack.c.bf16 %v7257_v26, %v7257_v26  ;;  %v12607_v26 = vld [vmem:[%s16066_s20 + $0xe4] ss:$8 sps:$4 sm:$0xff]  }
0x1006   : > { %v7260_v34 = vpack.c.bf16 %v7258_v32, %v7258_v32  ;;  %v12605_v32 = vld [vmem:[%s16066_s20 + $0xe0] ss:$8 sps:$4 sm:$0xff]  }
0x1007   : > { %v7272_v35 = vsel %vm2644_vm4, %v7259_v33, 0 }
0x1008   : > { %10850 = vmatprep.subr.msk.bf16.mxu1 %vm2644_vm4, %v7260_v34 }
0x1009   : > { %7278 = vmatpush1.bf16.msra.mxu1 %v7272_v35 }
0x100a   : > { %10855 = vmatprep.subr.msk.bf16.mxu1 %vm2644_vm4, %v7260_v34 }
0x100c   : > { %10851 = vmatmul.mubr.msk.bf16.vlgmr.msra.gmra.mrb[112].mxu1 %vm2640_vm5, %v12511_v31 }
0x100d   : > { %7366 = vmatpush1.bf16.msra.mxu1 %v7272_v35  ;;  %7397 = vmatprep.mubr.bf16.mxu1 %v12797_v21 }
0x100e   : > { %10956 = vmatprep.subr.msk.bf16.mxu1 %vm2644_vm4, %v7260_v34 }
0x1014   : > { %10856 = vmatmul.mubr.msk.bf16.vlgmr.msra.gmra.mrb[116].mxu1 %vm2640_vm5, %v12512_v36 }
0x1015   : > { %7861 = vmatpush1.bf16.msra.mxu1 %v7272_v35  ;;  %7892 = vmatprep.mubr.bf16.mxu1 %v12797_v21 }
0x1016   : > { %11025 = vmatprep.subr.msk.bf16.mxu1 %vm2644_vm4, %v7260_v34  ;;  %v12610_v34 = vld [vmem:[%s16066_s20 + $0xf4] ss:$8 sps:$4 sm:$0xff]  }
0x101c   : > { %10957 = vmatmul.mubr.msk.bf16.vlgmr.msra.gmra.mrb[120].mxu1 %vm2640_vm5, %v12513_v29 }
0x101d   : > { %8157 = vmatpush1.bf16.msra.mxu1 %v7272_v35  ;;  %8188 = vmatprep.mubr.bf16.mxu1 %v12797_v21 }
0x1024   : > { %11026 = vmatmul.mubr.msk.bf16.vlgmr.msra.gmra.mrb[124].mxu1 %vm2640_vm5, %v12541_v37  ;;  %v12608_v37 = vld [vmem:[%s16066_s20 + $0xf0] ss:$8 sps:$4 sm:$0xff]  }
0x1025   : > { %8515 = vmatprep.mubr.bf16.mxu1 %v12797_v21 }
0x10df   : > { %v15441_v45 = vpop.f32.mrb[112].mxu1 }
0x10e0   : > { %v7313_v46 = vpop.f32.mrb[113].mxu1 }
0x10e1   : > { %v15443_v47 = vpop.f32.mrb[114].mxu1 }
0x10e2   : > { %v7320_v48 = vpack.c.bf16 %v15443_v47, %v15441_v45  ;;  %v7317_v49 = vpop.f32.mrb[115].mxu1  ;;  %v12622_v45 = vld [vmem:[%s16066_s20 + $0x234] ss:$8 sps:$4 sm:$0xff]   ;;  %v12625_v47 = vld [vmem:[%s16066_s20 + $0x244] ss:$8 sps:$4 sm:$0xff]  }
0x10e3   : > { %v7321_v50 = vpack.c.bf16 %v7317_v49, %v7313_v46  ;;  %v12620_v46 = vld [vmem:[%s16066_s20 + $0x230] ss:$8 sps:$4 sm:$0xff]   ;;  %v12628_v49 = vld [vmem:[%s16066_s20 + $0x254] ss:$8 sps:$4 sm:$0xff]  }
0x10e7   : > { %v7399_v51 = vpop.f32.mrb[116].mxu1 }
0x10e8   : > { %v7401_v52 = vpop.f32.mrb[117].mxu1 }
0x10e9   : > { %v7403_v53 = vpop.f32.mrb[118].mxu1 }
0x10ea   : > { %v7408_v54 = vpack.c.bf16 %v7403_v53, %v7399_v51  ;;  %v7405_v56 = vpop.f32.mrb[119].mxu1  ;;  %v12631_v51 = vld [vmem:[%s16066_s20 + $0x264] ss:$8 sps:$4 sm:$0xff]   ;;  %v12634_v53 = vld [vmem:[%s16066_s20 + $0x274] ss:$8 sps:$4 sm:$0xff]  }
0x10eb   : > { %v7409_v58 = vpack.c.bf16 %v7405_v56, %v7401_v52  ;;  %v12629_v52 = vld [vmem:[%s16066_s20 + $0x260] ss:$8 sps:$4 sm:$0xff]   ;;  %v12637_v56 = vld [vmem:[%s16066_s20 + $0x284] ss:$8 sps:$4 sm:$0xff]  }
0x10ed   : > { %7635 = vmatprep.mubr.bf16.mxu0 %v7409_v58  ;;  %v12635_v58 = vld [vmem:[%s16066_s20 + $0x280] ss:$8 sps:$4 sm:$0xff]  }
0x10ee   : > { %7636 = vmatmul.mubr.bf16.vlgmr.msra.gmra.mrb[72].mxu0 %v7408_v54  ;;  %v12632_v54 = vld [vmem:[%s16066_s20 + $0x270] ss:$8 sps:$4 sm:$0xff]  }
0x10ef   : > { %7807 = vmatpush1.bf16.msra.mxu0 %v12563_v63  ;;  %7838 = vmatprep.mubr.bf16.mxu0 %v7321_v50  ;;  %v15456_v2 = vpop.f32.mrb[120].mxu1  ;;  %v12626_v50 = vld [vmem:[%s16066_s20 + $0x250] ss:$8 sps:$4 sm:$0xff]   ;;  %v12640_v63 = vld [vmem:[%s16066_s20 + $0x294] ss:$8 sps:$4 sm:$0xff]  }
0x10f0   : > { %7808 = vmatprep.subr.bf16.mxu0 %v12568_v0  ;;  %v15461_v4 = vpop.f32.mrb[121].mxu1  ;;  %v12638_v0 = vld [vmem:[%s16066_s20 + $0x290] ss:$8 sps:$4 sm:$0xff]  }
0x10f1   : > { %v15463_v5 = vpop.f32.mrb[122].mxu1 }
0x10f2   : > { %v7903_v6 = vpack.c.bf16 %v15463_v5, %v15456_v2  ;;  %v15467_v7 = vpop.f32.mrb[123].mxu1  ;;  %v12665_v2 = vld [vmem:[%s16066_s20 + $0x320] ss:$8 sps:$4 sm:$0xff]   ;;  %v12670_v5 = vld [vmem:[%s16066_s20 + $0x334] ss:$8 sps:$4 sm:$0xff]  }
0x10f3   : > { %7809 = vmatpush1.bf16.msra.mxu0 %v12566_v1  ;;  %v7904_v9 = vpack.c.bf16 %v15467_v7, %v15461_v4  ;;  %v12643_v1 = vld [vmem:[%s16066_s20 + $0x2a4] ss:$8 sps:$4 sm:$0xff]   ;;  %v12646_v4 = vld [vmem:[%s16066_s20 + $0x2b4] ss:$8 sps:$4 sm:$0xff]   ;;  %v12644_v7 = vld [vmem:[%s16066_s20 + $0x2b0] ss:$8 sps:$4 sm:$0xff]  }
0x10f4   : > { %7810 = vmatprep.subr.bf16.mxu0 %v12571_v3  ;;  %v12641_v3 = vld [vmem:[%s16066_s20 + $0x2a0] ss:$8 sps:$4 sm:$0xff]  }
0x10f7   : > { %7811 = vmatpush1.bf16.msra.mxu0 %v12569_v8  ;;  %v15546_v33 = vpop.f32.mrb[124].mxu1  ;;  %v12649_v8 = vld [vmem:[%s16066_s20 + $0x2c4] ss:$8 sps:$4 sm:$0xff]  }
0x10f8   : > { %7812 = vmatprep.subr.bf16.mxu0 %v12574_v10  ;;  %v15551_v35 = vpop.f32.mrb[125].mxu1  ;;  %v12652_v10 = vld [vmem:[%s16066_s20 + $0x2d4] ss:$8 sps:$4 sm:$0xff]  }
0x10f9   : > { %v15553_v31 = vpop.f32.mrb[126].mxu1 }
0x10fa   : > { %v8199_v36 = vpack.c.bf16 %v15553_v31, %v15546_v33  ;;  %v15557_v29 = vpop.f32.mrb[127].mxu1 }
0x10fb   : > { %7813 = vmatpush1.bf16.msra.mxu0 %v12572_v11  ;;  %v8200_v38 = vpack.c.bf16 %v15557_v29, %v15551_v35  ;;  %v12650_v11 = vld [vmem:[%s16066_s20 + $0x2d0] ss:$8 sps:$4 sm:$0xff]   ;;  %v12694_v35 = vld [vmem:[%s16066_s20 + $0x3b4] ss:$8 sps:$4 sm:$0xff]  }
0x10fc   : > { %7814 = vmatprep.subr.bf16.mxu0 %v12577_v12  ;;  %v12655_v12 = vld [vmem:[%s16066_s20 + $0x2e4] ss:$8 sps:$4 sm:$0xff]   ;;  %v12692_v29 = vld [vmem:[%s16066_s20 + $0x3b0] ss:$8 sps:$4 sm:$0xff]  }
0x10ff   : > { %7815 = vmatpush1.bf16.msra.mxu0 %v12575_v13  ;;  %v12653_v13 = vld [vmem:[%s16066_s20 + $0x2e0] ss:$8 sps:$4 sm:$0xff]  }
0x1100   : > { %7816 = vmatprep.subr.bf16.mxu0 %v12580_v14  ;;  %v12658_v14 = vld [vmem:[%s16066_s20 + $0x2f4] ss:$8 sps:$4 sm:$0xff]  }
0x1103   : > { %7817 = vmatpush1.bf16.msra.mxu0 %v12578_v16  ;;  %v12656_v16 = vld [vmem:[%s16066_s20 + $0x2f0] ss:$8 sps:$4 sm:$0xff]  }
0x1104   : > { %7818 = vmatprep.subr.bf16.mxu0 %v12583_v59  ;;  %v12661_v59 = vld [vmem:[%s16066_s20 + $0x304] ss:$8 sps:$4 sm:$0xff]  }
0x1107   : > { %7819 = vmatpush1.bf16.msra.mxu0 %v12581_v60  ;;  %v12659_v60 = vld [vmem:[%s16066_s20 + $0x300] ss:$8 sps:$4 sm:$0xff]  }
0x1108   : > { %7820 = vmatprep.subr.bf16.mxu0 %v12586_v62  ;;  %v12664_v62 = vld [vmem:[%s16066_s20 + $0x314] ss:$8 sps:$4 sm:$0xff]  }
0x110b   : > { %7821 = vmatpush1.bf16.msra.mxu0 %v12584_v17  ;;  %v12662_v17 = vld [vmem:[%s16066_s20 + $0x310] ss:$8 sps:$4 sm:$0xff]  }
0x110c   : > { %7822 = vmatprep.subr.bf16.mxu0 %v12589_v19  ;;  %v12667_v19 = vld [vmem:[%s16066_s20 + $0x324] ss:$8 sps:$4 sm:$0xff]  }
0x110f   : > { %7823 = vmatpush1.bf16.msra.mxu0 %v12587_v15  ;;  %v12673_v15 = vld [vmem:[%s16066_s20 + $0x344] ss:$8 sps:$4 sm:$0xff]  }
0x1110   : > { %7824 = vmatprep.subr.bf16.mxu0 %v12592_v61  ;;  %v12671_v61 = vld [vmem:[%s16066_s20 + $0x340] ss:$8 sps:$4 sm:$0xff]  }
0x1113   : > { %7825 = vmatpush1.bf16.msra.mxu0 %v12590_v22  ;;  %v12676_v22 = vld [vmem:[%s16066_s20 + $0x354] ss:$8 sps:$4 sm:$0xff]  }
0x1114   : > { %7826 = vmatprep.subr.bf16.mxu0 %v12595_v23  ;;  %v12674_v23 = vld [vmem:[%s16066_s20 + $0x350] ss:$8 sps:$4 sm:$0xff]  }
0x1117   : > { %7827 = vmatpush1.bf16.msra.mxu0 %v12593_v25  ;;  %v12679_v25 = vld [vmem:[%s16066_s20 + $0x364] ss:$8 sps:$4 sm:$0xff]  }
0x1118   : > { %7828 = vmatprep.subr.bf16.mxu0 %v12598_v18  ;;  %v12677_v18 = vld [vmem:[%s16066_s20 + $0x360] ss:$8 sps:$4 sm:$0xff]  }
0x111b   : > { %7829 = vmatpush1.bf16.msra.mxu0 %v12596_v20  ;;  %v12682_v20 = vld [vmem:[%s16066_s20 + $0x374] ss:$8 sps:$4 sm:$0xff]  }
0x111c   : > { %7830 = vmatprep.subr.bf16.mxu0 %v12601_v27  ;;  %v12680_v27 = vld [vmem:[%s16066_s20 + $0x370] ss:$8 sps:$4 sm:$0xff]  }
0x111f   : > { %7831 = vmatpush1.bf16.msra.mxu0 %v12599_v28  ;;  %v12685_v28 = vld [vmem:[%s16066_s20 + $0x384] ss:$8 sps:$4 sm:$0xff]  }
0x1120   : > { %7832 = vmatprep.subr.bf16.mxu0 %v12604_v30  ;;  %v12683_v30 = vld [vmem:[%s16066_s20 + $0x380] ss:$8 sps:$4 sm:$0xff]  }
0x1123   : > { %7833 = vmatpush1.bf16.msra.mxu0 %v12602_v24  ;;  %v12688_v24 = vld [vmem:[%s16066_s20 + $0x394] ss:$8 sps:$4 sm:$0xff]  }
0x1124   : > { %7834 = vmatprep.subr.bf16.mxu0 %v12607_v26  ;;  %v12686_v26 = vld [vmem:[%s16066_s20 + $0x390] ss:$8 sps:$4 sm:$0xff]  }
0x1127   : > { %7835 = vmatpush1.bf16.msra.mxu0 %v12605_v32  ;;  %v12691_v32 = vld [vmem:[%s16066_s20 + $0x3a4] ss:$8 sps:$4 sm:$0xff]  }
0x1128   : > { %7836 = vmatprep.subr.bf16.mxu0 %v12610_v34  ;;  %v12689_v34 = vld [vmem:[%s16066_s20 + $0x3a0] ss:$8 sps:$4 sm:$0xff]  }
0x112b   : > { %7837 = vmatpush1.bf16.msra.mxu0 %v12608_v37  ;;  %v12697_v37 = vld [vmem:[%s16066_s20 + $0x3c4] ss:$8 sps:$4 sm:$0xff]  }
0x112c   : > { %8098 = vmatprep.subr.bf16.mxu0 %v12613_v39  ;;  %v12700_v39 = vld [vmem:[%s16066_s20 + $0x3d4] ss:$8 sps:$4 sm:$0xff]  }
0x112e   : > { %7839 = vmatmul.mubr.bf16.vlgmr.msra.gmra.mrb[72].mxu0 %v7320_v48  ;;  %v12623_v48 = vld [vmem:[%s16066_s20 + $0x240] ss:$8 sps:$4 sm:$0xff]  }
0x112f   : > { %8099 = vmatpush1.bf16.msra.mxu0 %v12611_v40  ;;  %8130 = vmatprep.mubr.bf16.mxu0 %v7904_v9  ;;  %v12647_v9 = vld [vmem:[%s16066_s20 + $0x2c0] ss:$8 sps:$4 sm:$0xff]   ;;  %v12698_v40 = vld [vmem:[%s16066_s20 + $0x3d0] ss:$8 sps:$4 sm:$0xff]  }
0x1130   : > { %8100 = vmatprep.subr.bf16.mxu0 %v12616_v41  ;;  %v12703_v41 = vld [vmem:[%s16066_s20 + $0x3e4] ss:$8 sps:$4 sm:$0xff]  }
0x1133   : > { %8101 = vmatpush1.bf16.msra.mxu0 %v12614_v42  ;;  %v12701_v42 = vld [vmem:[%s16066_s20 + $0x3e0] ss:$8 sps:$4 sm:$0xff]  }
0x1134   : > { %8102 = vmatprep.subr.bf16.mxu0 %v12619_v43  ;;  %v12706_v43 = vld [vmem:[%s16066_s20 + $0x3f4] ss:$8 sps:$4 sm:$0xff]  }
0x1137   : > { %8103 = vmatpush1.bf16.msra.mxu0 %v12617_v44  ;;  %v12704_v44 = vld [vmem:[%s16066_s20 + $0x3f0] ss:$8 sps:$4 sm:$0xff]  }
0x1138   : > { %8104 = vmatprep.subr.bf16.mxu0 %v12622_v45  ;;  %v8441_v45 = vld [vmem:[%s16067_s21] sm:$0x3] }
0x113b   : > { %8105 = vmatpush1.bf16.msra.mxu0 %v12620_v46  ;;  %v8446_v46 = vrot.slane %v8441_v45, %v13245_v55  ;;  %v12707_v55 = vld [vmem:[%s16068_s22] sm:$0xff]  }
0x113c   : > { %8106 = vmatprep.subr.bf16.mxu0 %v12625_v47  ;;  %v8450_v47 = vrot.slane %v8441_v45, %v13250_v57  ;;  %v12711_v57 = vld [vmem:[%s16069_s23 + $0xc0] sm:$0xff]  }
0x113f   : > { %8107 = vmatpush1.bf16.msra.mxu0 %v12623_v48 }
0x1140   : > { %8108 = vmatprep.subr.bf16.mxu0 %v12628_v49 }
0x1143   : > { %8109 = vmatpush1.bf16.msra.mxu0 %v12626_v50 }
0x1144   : > { %8110 = vmatprep.subr.bf16.mxu0 %v12631_v51 }
0x1147   : > { %8111 = vmatpush1.bf16.msra.mxu0 %v12629_v52 }
0x1148   : > { %8112 = vmatprep.subr.bf16.mxu0 %v12634_v53 }
0x114b   : > { %8113 = vmatpush1.bf16.msra.mxu0 %v12632_v54 }
0x114c   : > { %8114 = vmatprep.subr.bf16.mxu0 %v12637_v56 }
0x114f   : > { %8115 = vmatpush1.bf16.msra.mxu0 %v12635_v58 }
0x1150   : > { %8116 = vmatprep.subr.bf16.mxu0 %v12640_v63 }
0x1153   : > { %8117 = vmatpush1.bf16.msra.mxu0 %v12638_v0 }
0x1154   : > { %8118 = vmatprep.subr.bf16.mxu0 %v12643_v1  ;;  %v12708_v1 = vld [vmem:[%s16068_s22 + $0x8] sm:$0xff]  }
0x1157   : > { %8119 = vmatpush1.bf16.msra.mxu0 %v12641_v3  ;;  %v12709_v3 = vld [vmem:[%s16068_s22 + $0x10] sm:$0xff]  }
0x1158   : > { %8120 = vmatprep.subr.bf16.mxu0 %v12646_v4  ;;  %v12712_v4 = vld [vmem:[%s16069_s23 + $0x80] sm:$0xff]  }
0x115b   : > { %8121 = vmatpush1.bf16.msra.mxu0 %v12644_v7  ;;  %v12713_v7 = vld [vmem:[%s16069_s23 + $0xc8] sm:$0xff]  }
0x115c   : > { %8122 = vmatprep.subr.bf16.mxu0 %v12649_v8  ;;  %v12714_v8 = vld [vmem:[%s16069_s23 + $0x88] sm:$0xff]  }
0x115f   : > { %8123 = vmatpush1.bf16.msra.mxu0 %v12647_v9  ;;  %v12715_v9 = vld [vmem:[%s16069_s23 + $0xd0] sm:$0xff]  }
0x1160   : > { %8124 = vmatprep.subr.bf16.mxu0 %v12652_v10  ;;  %v12710_v10 = vld [vmem:[%s16068_s22 + $0x18] sm:$0xff]  }
0x1163   : > { %8125 = vmatpush1.bf16.msra.mxu0 %v12650_v11  ;;  %v12716_v11 = vld [vmem:[%s16069_s23 + $0x90] sm:$0xff]  }
0x1164   : > { %8126 = vmatprep.subr.bf16.mxu0 %v12655_v12  ;;  %v12717_v12 = vld [vmem:[%s16069_s23 + $0xd8] sm:$0xff]  }
0x1167   : > { %8127 = vmatpush1.bf16.msra.mxu0 %v12653_v13  ;;  %v12718_v13 = vld [vmem:[%s16069_s23 + $0x98] sm:$0xff]  }
0x1168   : > { %8128 = vmatprep.subr.bf16.mxu0 %v12658_v14  ;;  %v12719_v14 = vld [vmem:[%s16069_s23 + $0xe0] sm:$0xff]  }
0x116b   : > { %8129 = vmatpush1.bf16.msra.mxu0 %v12656_v16  ;;  %v12720_v16 = vld [vmem:[%s16069_s23 + $0xa0] sm:$0xff]  }
0x116c   : > { %8394 = vmatprep.subr.bf16.mxu0 %v12661_v59  ;;  %v12721_v59 = vld [vmem:[%s16069_s23 + $0xe8] sm:$0xff]  }
0x116e   : > { %8131 = vmatmul.mubr.bf16.vlgmr.msra.gmra.mrb[72].mxu0 %v7903_v6  ;;  %v12668_v6 = vld [vmem:[%s16066_s20 + $0x330] ss:$8 sps:$4 sm:$0xff]  }
0x116f   : > { %8395 = vmatpush1.bf16.msra.mxu0 %v12659_v60  ;;  %8426 = vmatprep.mubr.bf16.mxu0 %v8200_v38  ;;  %v12695_v38 = vld [vmem:[%s16066_s20 + $0x3c0] ss:$8 sps:$4 sm:$0xff]  }
0x1170   : > { %8396 = vmatprep.subr.bf16.mxu0 %v12664_v62  ;;  %v12722_v60 = vld [vmem:[%s16069_s23 + $0xa8] sm:$0xff]   ;;  %v12723_v62 = vld [vmem:[%s16069_s23 + $0xf0] sm:$0xff]  }
0x1173   : > { %8397 = vmatpush1.bf16.msra.mxu0 %v12662_v17  ;;  %v12724_v17 = vld [vmem:[%s16069_s23 + $0xb0] sm:$0xff]  }
0x1174   : > { %8398 = vmatprep.subr.bf16.mxu0 %v12667_v19  ;;  %v12725_v19 = vld [vmem:[%s16069_s23 + $0xf8] sm:$0xff]  }
0x1177   : > { %8399 = vmatpush1.bf16.msra.mxu0 %v12665_v2  ;;  %v12726_v2 = vld [vmem:[%s16069_s23 + $0xb8] sm:$0xff]  }
0x1178   : > { %8400 = vmatprep.subr.bf16.mxu0 %v12670_v5  ;;  %v12727_v5 = vld [vmem:[%s16069_s23 + $0x40] sm:$0xff]  }
0x117b   : > { %8401 = vmatpush1.bf16.msra.mxu0 %v12668_v6 }
0x117c   : > { %8402 = vmatprep.subr.bf16.mxu0 %v12673_v15 }
0x117f   : > { %8403 = vmatpush1.bf16.msra.mxu0 %v12671_v61 }
0x1180   : > { %8404 = vmatprep.subr.bf16.mxu0 %v12676_v22 }
0x1183   : > { %8405 = vmatpush1.bf16.msra.mxu0 %v12674_v23 }
0x1184   : > { %8406 = vmatprep.subr.bf16.mxu0 %v12679_v25 }
0x1187   : > { %8407 = vmatpush1.bf16.msra.mxu0 %v12677_v18 }
0x1188   : > { %8408 = vmatprep.subr.bf16.mxu0 %v12682_v20 }
0x118b   : > { %8409 = vmatpush1.bf16.msra.mxu0 %v12680_v27 }
0x118c   : > { %8410 = vmatprep.subr.bf16.mxu0 %v12685_v28 }
0x118f   : > { %8411 = vmatpush1.bf16.msra.mxu0 %v12683_v30 }
0x1190   : > { %8412 = vmatprep.subr.bf16.mxu0 %v12688_v24 }
0x1193   : > { %8413 = vmatpush1.bf16.msra.mxu0 %v12686_v26 }
0x1194   : > { %8414 = vmatprep.subr.bf16.mxu0 %v12691_v32 }
0x1197   : > { %8415 = vmatpush1.bf16.msra.mxu0 %v12689_v34 }
0x1198   : > { %8416 = vmatprep.subr.bf16.mxu0 %v12694_v35 }
0x119b   : > { %8417 = vmatpush1.bf16.msra.mxu0 %v12692_v29 }
0x119c   : > { %8418 = vmatprep.subr.bf16.mxu0 %v12697_v37 }
0x119f   : > { %8419 = vmatpush1.bf16.msra.mxu0 %v12695_v38  ;;  %v12728_v38 = vld [vmem:[%s16069_s23] sm:$0xff]  }
0x11a0   : > { %8420 = vmatprep.subr.bf16.mxu0 %v12700_v39  ;;  %v12729_v39 = vld [vmem:[%s16069_s23 + $0x48] sm:$0xff]  }
0x11a3   : > { %8421 = vmatpush1.bf16.msra.mxu0 %v12698_v40 }
0x11a4   : > { %8422 = vmatprep.subr.bf16.mxu0 %v12703_v41  ;;  %v12730_v41 = vld [vmem:[%s16069_s23 + $0x8] sm:$0xff]  }
0x11a7   : > { %8423 = vmatpush1.bf16.msra.mxu0 %v12701_v42 }
0x11a8   : > { %8424 = vmatprep.subr.bf16.mxu0 %v12706_v43  ;;  %v12731_v43 = vld [vmem:[%s16069_s23 + $0x50] sm:$0xff]  }
0x11ab   : > { %8425 = vmatpush1.bf16.msra.mxu0 %v12704_v44 }
0x11ae   : > { %8427 = vmatmul.mubr.bf16.vlgmr.msra.gmra.mrb[72].mxu0 %v8199_v36 }
0x1281   : > { %v8428_v48 = vpop.f32.mrb[72].mxu0 }
0x1282   : > { %v8453_v49 = vadd.f32 %v8446_v46, %v8428_v48  ;;  %v8430_v50 = vpop.f32.mrb[73].mxu0  ;;  %v12732_v48 = vld [vmem:[%s16069_s23 + $0x10] sm:$0xff]  }
0x1283   : > { %v8454_v51 = vadd.f32 %v8450_v47, %v8430_v50  ;;  %v8432_v52 = vpop.f32.mrb[74].mxu0  ;;  %v12734_v50 = vld [vmem:[%s16069_s23 + $0x18] sm:$0xff]  }
0x1284   : > { %v8455_v53 = vadd.f32 %v8446_v46, %v8432_v52  ;;  %v8434_v54 = vpop.f32.mrb[75].mxu0  ;;  %v8457_v58 = vmax.f32 %v8453_v49, 0.0  ;;  %v12733_v49 = vld [vmem:[%s16069_s23 + $0x58] sm:$0xff]   ;;  %v12736_v52 = vld [vmem:[%s16069_s23 + $0x20] sm:$0xff]  }
0x1285   : > { %v8456_v56 = vadd.f32 %v8450_v47, %v8434_v54  ;;  %v8458_v33 = vmax.f32 %v8454_v51, 0.0  ;;  %v12735_v51 = vld [vmem:[%s16069_s23 + $0x60] sm:$0xff]   ;;  %v12738_v54 = vld [vmem:[%s16069_s23 + $0x28] sm:$0xff]  }
0x1286   : > { %v8459_v63 = vmax.f32 %v8455_v53, 0.0  ;;  %v12737_v53 = vld [vmem:[%s16069_s23 + $0x68] sm:$0xff]  }
0x1287   : > { %v8460_v31 = vmax.f32 %v8456_v56, 0.0  ;;  %v12739_v56 = vld [vmem:[%s16069_s23 + $0x70] sm:$0xff]  }
0x1288   : > { %v15776_v36 = vpack.c.bf16 %v8459_v63, %v8457_v58  ;;  %v12740_v58 = vld [vmem:[%s16069_s23 + $0x30] sm:$0xff]   ;;  %v12741_v63 = vld [vmem:[%s16069_s23 + $0x78] sm:$0xff]  }
0x1289   : > { %v15778_v0 = vpack.c.bf16 %v8460_v31, %v8458_v33  ;;  %v12742_v33 = vld [vmem:[%s16069_s23 + $0x38] sm:$0xff]   ;;  %v12743_v31 = vld [vmem:[%s16069_s23 + $0x140] sm:$0xff]  }
0x128b   : > { %8483 = vmatprep.subr.bf16.mxu1 %v15778_v0 }
0x128c   : > { %8484 = vmatpush1.bf16.msra.mxu1 %v15776_v36 }
0x128d   : > { %8593 = vmatprep.subr.bf16.mxu1 %v15778_v0 }
0x128f   : > { %11093 = vmatmul.mubr.msk.bf16.vlgmr.msra.gmra.mrb[128].mxu1 %vm1491_vm3, %v12707_v55  ;;  %v12744_v55 = vld [vmem:[%s16068_s22 + $0x20] sm:$0xff]  }
0x1290   : > { %8594 = vmatpush1.bf16.msra.mxu1 %v15776_v36  ;;  %8525 = vmatprep.mubr.bf16.mxu1 %v12797_v21 }
0x1291   : > { %11296 = vmatprep.subr.bf16.mxu1 %v12711_v57  ;;  %v12745_v57 = vld [vmem:[%s16069_s23 + $0x100] sm:$0xff]  }
0x1297   : > { %11094 = vmatmul.mubr.msk.bf16.gmra.mrb[132].mxu1 %vm1491_vm3, %v12708_v1  ;;  %v12746_v1 = vld [vmem:[%s16069_s23 + $0x148] sm:$0xff]  }
0x1298   : > { %8625 = vmatprep.mubr.bf16.mxu1 %v12797_v21 }
0x129f   : > { %11101 = vmatmul.mubr.msk.bf16.vlgmr.msra.gmra.mrb[136].mxu1 %vm1491_vm3, %v12709_v3  ;;  %v12747_v3 = vld [vmem:[%s16069_s23 + $0x108] sm:$0xff]  }
0x12a0   : > { %8635 = vmatprep.mubr.bf16.mxu1 %v12797_v21  ;;  %11297 = vmatpush3.bf16.msra.mxu1 %v12712_v4  ;;  %v12748_v4 = vld [vmem:[%s16069_s23 + $0x150] sm:$0xff]  }
0x12a1   : > { %11298 = vmatprep.subr.bf16.mxu1 %v12713_v7  ;;  %v12749_v7 = vld [vmem:[%s16068_s22 + $0x28] sm:$0xff]  }
0x12a4   : > { %11299 = vmatpush3.bf16.msra.mxu1 %v12714_v8  ;;  %v12750_v8 = vld [vmem:[%s16069_s23 + $0x110] sm:$0xff]  }
0x12a5   : > { %11300 = vmatprep.subr.bf16.mxu1 %v12715_v9  ;;  %v12751_v9 = vld [vmem:[%s16069_s23 + $0x158] sm:$0xff]  }
0x12a7   : > { %11102 = vmatmul.mubr.msk.bf16.gmra.mrb[140].mxu1 %vm1491_vm3, %v12710_v10  ;;  %v12752_v10 = vld [vmem:[%s16069_s23 + $0x118] sm:$0xff]  }
0x12a8   : > { %11301 = vmatpush3.bf16.msra.mxu1 %v12716_v11  ;;  %v12753_v11 = vld [vmem:[%s16069_s23 + $0x160] sm:$0xff]  }
0x12a9   : > { %11302 = vmatprep.subr.bf16.mxu1 %v12717_v12  ;;  %v12754_v12 = vld [vmem:[%s16069_s23 + $0x120] sm:$0xff]  }
0x12ac   : > { %11303 = vmatpush3.bf16.msra.mxu1 %v12718_v13  ;;  %v12755_v13 = vld [vmem:[%s16069_s23 + $0x168] sm:$0xff]  }
0x12ad   : > { %11304 = vmatprep.subr.bf16.mxu1 %v12719_v14  ;;  %v12756_v14 = vld [vmem:[%s16069_s23 + $0x128] sm:$0xff]  }
0x12b0   : > { %11305 = vmatpush3.bf16.msra.mxu1 %v12720_v16  ;;  %v12757_v16 = vld [vmem:[%s16069_s23 + $0x170] sm:$0xff]  }
0x12b1   : > { %11306 = vmatprep.subr.bf16.mxu1 %v12721_v59  ;;  %v12758_v59 = vld [vmem:[%s16069_s23 + $0x130] sm:$0xff]  }
0x12b4   : > { %11307 = vmatpush3.bf16.msra.mxu1 %v12722_v60  ;;  %v12759_v60 = vld [vmem:[%s16069_s23 + $0x178] sm:$0xff]  }
0x12b5   : > { %11308 = vmatprep.subr.bf16.mxu1 %v12723_v62  ;;  %v12760_v62 = vld [vmem:[%s16069_s23 + $0x138] sm:$0xff]  }
0x12b8   : > { %11309 = vmatpush3.bf16.msra.mxu1 %v12724_v17 }
0x12b9   : > { %11310 = vmatprep.subr.bf16.mxu1 %v12725_v19 }
0x12bc   : > { %11311 = vmatpush3.bf16.msra.mxu1 %v12726_v2 }
0x12bd   : > { %11324 = vmatprep.subr.bf16.mxu1 %v12727_v5 }
0x1362   : > { %v8517_v6 = vpop.f32.mrb[128].mxu1 }
0x1363   : > { %v8519_v15 = vpop.f32.mrb[129].mxu1 }
0x1364   : > { %v8521_v61 = vpop.f32.mrb[130].mxu1 }
0x1365   : > { %v8536_v22 = vpack.c.bf16 %v8521_v61, %v8517_v6  ;;  %v8523_v23 = vpop.f32.mrb[131].mxu1 }
0x1366   : > { %v8537_v25 = vpack.c.bf16 %v8523_v23, %v8519_v15 }
0x136a   : > { %v8527_v18 = vpop.f32.mrb[132].mxu1 }
0x136b   : > { %v8529_v20 = vpop.f32.mrb[133].mxu1 }
0x136c   : > { %v8531_v27 = vpop.f32.mrb[134].mxu1 }
0x136d   : > { %v8538_v28 = vpack.c.bf16 %v8531_v27, %v8527_v18  ;;  %v8533_v30 = vpop.f32.mrb[135].mxu1 }
0x136e   : > { %v8539_v24 = vpack.c.bf16 %v8533_v30, %v8529_v20 }
0x1372   : > { %v8627_v26 = vpop.f32.mrb[136].mxu1 }
0x1373   : > { %v8629_v32 = vpop.f32.mrb[137].mxu1 }
0x1374   : > { %v8631_v34 = vpop.f32.mrb[138].mxu1 }
0x1375   : > { %v8646_v35 = vpack.c.bf16 %v8631_v34, %v8627_v26  ;;  %v8633_v29 = vpop.f32.mrb[139].mxu1 }
0x1376   : > { %v8647_v37 = vpack.c.bf16 %v8633_v29, %v8629_v32 }
0x1378   : > { %8811 = vmatprep.mubr.bf16.mxu1 %v8647_v37 }
0x1379   : > { %8812 = vmatmul.mubr.bf16.vlgmr.msra.gmra.mrb[144].mxu1 %v8646_v35 }
0x137a   : > { %11325 = vmatpush3.bf16.msra.mxu1 %v12728_v38  ;;  %v8637_v40 = vpop.f32.mrb[140].mxu1 }
0x137b   : > { %v8639_v42 = vpop.f32.mrb[141].mxu1  ;;  %11326 = vmatprep.subr.bf16.mxu1 %v12729_v39 }
0x137c   : > { %v8641_v44 = vpop.f32.mrb[142].mxu1 }
0x137d   : > { %v8648_v45 = vpack.c.bf16 %v8641_v44, %v8637_v40  ;;  %v8643_v46 = vpop.f32.mrb[143].mxu1 }
0x137e   : > { %v8649_v47 = vpack.c.bf16 %v8643_v46, %v8639_v42  ;;  %11327 = vmatpush3.bf16.msra.mxu1 %v12730_v41 }
0x137f   : > { %11328 = vmatprep.subr.bf16.mxu1 %v12731_v43 }
0x1380   : > { %8819 = vmatprep.mubr.bf16.mxu1 %v8649_v47 }
0x1381   : > { %8820 = vmatmul.mubr.bf16.gmra.mrb[148].mxu1 %v8648_v45 }
0x1382   : > { %11329 = vmatpush3.bf16.msra.mxu1 %v12732_v48  ;;  %8956 = vmatprep.mubr.bf16.mxu1 %v8537_v25 }
0x1383   : > { %11330 = vmatprep.subr.bf16.mxu1 %v12733_v49  ;;  %v12763_v49 = vld [vmem:[%s16069_s23 + $0x1c0] sm:$0xff]  }
0x1386   : > { %11331 = vmatpush3.bf16.msra.mxu1 %v12734_v50 }
0x1387   : > { %11332 = vmatprep.subr.bf16.mxu1 %v12735_v51 }
0x138a   : > { %11333 = vmatpush3.bf16.msra.mxu1 %v12736_v52 }
0x138b   : > { %11334 = vmatprep.subr.bf16.mxu1 %v12737_v53 }
0x138e   : > { %11335 = vmatpush3.bf16.msra.mxu1 %v12738_v54 }
0x138f   : > { %11336 = vmatprep.subr.bf16.mxu1 %v12739_v56 }
0x1392   : > { %11337 = vmatpush3.bf16.msra.mxu1 %v12740_v58  ;;  %v12761_v58 = vld [vmem:[%s16068_s22 + $0x30] sm:$0xff]  }
0x1393   : > { %11338 = vmatprep.subr.bf16.mxu1 %v12741_v63  ;;  %v12764_v63 = vld [vmem:[%s16069_s23 + $0x180] sm:$0xff]  }
0x1396   : > { %11339 = vmatpush3.bf16.msra.mxu1 %v12742_v33  ;;  %v12766_v33 = vld [vmem:[%s16069_s23 + $0x188] sm:$0xff]  }
0x1397   : > { %8994 = vmatprep.subr.bf16.mxu1 %v15778_v0 }
0x1399   : > { %8957 = vmatmul.mubr.bf16.vlgmr.msra.gmra.mrb[152].mxu1 %v8536_v22 }
0x139a   : > { %8964 = vmatprep.mubr.bf16.mxu1 %v8539_v24  ;;  %8995 = vmatpush1.bf16.msra.mxu1 %v15776_v36 }
0x139b   : > { %11352 = vmatprep.subr.bf16.mxu1 %v12743_v31  ;;  %v12767_v31 = vld [vmem:[%s16069_s23 + $0x1d0] sm:$0xff]  }
0x13a1   : > { %8965 = vmatmul.mubr.bf16.gmra.mrb[156].mxu1 %v8538_v28 }
0x13a2   : > { %9026 = vmatprep.mubr.bf16.mxu1 %v12797_v21 }
0x13a9   : > { %11173 = vmatmul.mubr.msk.bf16.vlgmr.msra.gmra.mrb[160].mxu1 %vm1491_vm3, %v12744_v55  ;;  %v12762_v55 = vld [vmem:[%s16068_s22 + $0x38] sm:$0xff]  }
0x13aa   : > { %11353 = vmatpush3.bf16.msra.mxu1 %v12745_v57  ;;  %9036 = vmatprep.mubr.bf16.mxu1 %v12797_v21  ;;  %v12769_v57 = vld [vmem:[%s16069_s23 + $0x1d8] sm:$0xff]  }
0x13ab   : > { %11354 = vmatprep.subr.bf16.mxu1 %v12746_v1  ;;  %v12770_v1 = vld [vmem:[%s16069_s23 + $0x198] sm:$0xff]  }
0x13ae   : > { %11355 = vmatpush3.bf16.msra.mxu1 %v12747_v3  ;;  %v12771_v3 = vld [vmem:[%s16069_s23 + $0x1e0] sm:$0xff]  }
0x13af   : > { %11356 = vmatprep.subr.bf16.mxu1 %v12748_v4  ;;  %v12772_v4 = vld [vmem:[%s16069_s23 + $0x1a0] sm:$0xff]  }
0x13b1   : > { %11174 = vmatmul.mubr.msk.bf16.gmra.mrb[164].mxu1 %vm1491_vm3, %v12749_v7  ;;  %v12773_v7 = vld [vmem:[%s16069_s23 + $0x1e8] sm:$0xff]  }
0x13b2   : > { %11357 = vmatpush3.bf16.msra.mxu1 %v12750_v8  ;;  %v12774_v8 = vld [vmem:[%s16069_s23 + $0x1a8] sm:$0xff]  }
0x13b3   : > { %11358 = vmatprep.subr.bf16.mxu1 %v12751_v9  ;;  %v12775_v9 = vld [vmem:[%s16069_s23 + $0x1f0] sm:$0xff]  }
0x13b6   : > { %11359 = vmatpush3.bf16.msra.mxu1 %v12752_v10  ;;  %v12776_v10 = vld [vmem:[%s16069_s23 + $0x1b0] sm:$0xff]  }
0x13b7   : > { %11360 = vmatprep.subr.bf16.mxu1 %v12753_v11  ;;  %v12777_v11 = vld [vmem:[%s16069_s23 + $0x1f8] sm:$0xff]  }
0x13ba   : > { %11361 = vmatpush3.bf16.msra.mxu1 %v12754_v12  ;;  %v12778_v12 = vld [vmem:[%s16069_s23 + $0x1b8] sm:$0xff]  }
0x13bb   : > { %11362 = vmatprep.subr.bf16.mxu1 %v12755_v13 }
0x13be   : > { %11363 = vmatpush3.bf16.msra.mxu1 %v12756_v14 }
0x13bf   : > { %11364 = vmatprep.subr.bf16.mxu1 %v12757_v16 }
0x13c2   : > { %11365 = vmatpush3.bf16.msra.mxu1 %v12758_v59 }
0x13c3   : > { %11366 = vmatprep.subr.bf16.mxu1 %v12759_v60 }
0x13c6   : > { %11367 = vmatpush3.bf16.msra.mxu1 %v12760_v62 }
0x13c7   : > { %9254 = vmatprep.subr.bf16.mxu1 %v15778_v0 }
0x144c   : > { %v11312_v17 = vpop.f32.mrb[144].mxu1 }
0x144d   : > { %v11313_v19 = vpop.f32.mrb[145].mxu1 }
0x144e   : > { %v11314_v2 = vadd.f32 %v11313_v19, %v11312_v17  ;;  %v11315_v5 = vpop.f32.mrb[146].mxu1 }
0x144f   : > { %v11316_v6 = vpop.f32.mrb[147].mxu1 }
0x1450   : > { %v11317_v15 = vadd.f32 %v11316_v6, %v11315_v5 }
0x1454   : > { %v11318_v61 = vpop.f32.mrb[148].mxu1 }
0x1455   : > { %v11319_v22 = vpop.f32.mrb[149].mxu1 }
0x1456   : > { %v11320_v23 = vadd.f32 %v11319_v22, %v11318_v61  ;;  %v11321_v25 = vpop.f32.mrb[150].mxu1 }
0x1457   : > { %v11322_v18 = vpop.f32.mrb[151].mxu1 }
0x1458   : > { %v11323_v20 = vadd.f32 %v11322_v18, %v11321_v25 }
0x146c   : > { %v11340_v27 = vpop.f32.mrb[152].mxu1 }
0x146d   : > { %v11341_v28 = vpop.f32.mrb[153].mxu1 }
0x146e   : > { %v11342_v30 = vadd.f32 %v11341_v28, %v11340_v27  ;;  %v11343_v24 = vpop.f32.mrb[154].mxu1 }
0x146f   : > { %v11344_v26 = vpop.f32.mrb[155].mxu1 }
0x1470   : > { %v15960_v32 = vadd.f32 %v11342_v30, %v11314_v2  ;;  %v11345_v0 = vadd.f32 %v11344_v26, %v11343_v24 }
0x1472   : > { %v15962_v34 = vadd.f32 %v11345_v0, %v11317_v15 }
0x1474   : > { %v11346_v35 = vpop.f32.mrb[156].mxu1 }
0x1475   : > { %v11347_v29 = vpop.f32.mrb[157].mxu1 }
0x1476   : > { %v11348_v37 = vadd.f32 %v11347_v29, %v11346_v35  ;;  %v11349_v38 = vpop.f32.mrb[158].mxu1 }
0x1477   : > { %v11350_v39 = vpop.f32.mrb[159].mxu1 }
0x1478   : > { %v15964_v40 = vadd.f32 %v11348_v37, %v11320_v23  ;;  %v11351_v41 = vadd.f32 %v11350_v39, %v11349_v38 }
0x147a   : > { %v15966_v42 = vadd.f32 %v11351_v41, %v11323_v20  ;;  %v11279_v41 = vld [vmem:[%s16070_s24] ss:$0 sm:$0xff] }
0x147c   : > { %v9028_v43 = vpop.f32.mrb[160].mxu1 }
0x147d   : > { %v9030_v44 = vpop.f32.mrb[161].mxu1 }
0x147e   : > { %v9032_v45 = vpop.f32.mrb[162].mxu1 }
0x147f   : > { %v9047_v46 = vpack.c.bf16 %v9032_v45, %v9028_v43  ;;  %v9034_v47 = vpop.f32.mrb[163].mxu1 }
0x1480   : > { %v9048_v48 = vpack.c.bf16 %v9034_v47, %v9030_v44 }
0x1482   : > { %9212 = vmatprep.mubr.bf16.mxu1 %v9048_v48 }
0x1483   : > { %9213 = vmatmul.mubr.bf16.vlgmr.msra.gmra.mrb[168].mxu1 %v9047_v46 }
0x1484   : > { %9255 = vmatpush1.bf16.msra.mxu1 %v15776_v36  ;;  %v9038_v50 = vpop.f32.mrb[164].mxu1  ;;  %v12765_v36 = vld [vmem:[%s16069_s23 + $0x1c8] sm:$0xff]  }
0x1485   : > { %v9040_v51 = vpop.f32.mrb[165].mxu1  ;;  %11380 = vmatprep.subr.bf16.mxu1 %v12763_v49 }
0x1486   : > { %v9042_v52 = vpop.f32.mrb[166].mxu1 }
0x1487   : > { %v9049_v53 = vpack.c.bf16 %v9042_v52, %v9038_v50  ;;  %v9044_v54 = vpop.f32.mrb[167].mxu1 }
0x1488   : > { %v9050_v56 = vpack.c.bf16 %v9044_v54, %v9040_v51 }
0x148a   : > { %9220 = vmatprep.mubr.bf16.mxu1 %v9050_v56 }
0x148b   : > { %9221 = vmatmul.mubr.bf16.gmra.mrb[172].mxu1 %v9049_v53 }
0x148c   : > { %9286 = vmatprep.mubr.bf16.mxu1 %v12797_v21 }
0x1493   : > { %11229 = vmatmul.mubr.msk.bf16.vlgmr.msra.gmra.mrb[176].mxu1 %vm1491_vm3, %v12761_v58 }
0x1494   : > { %9296 = vmatprep.mubr.bf16.mxu1 %v12797_v21  ;;  %11381 = vmatpush3.bf16.msra.mxu1 %v12764_v63  ;;  %v12768_v21 = vld [vmem:[%s16069_s23 + $0x190] sm:$0xff]  }
0x1495   : > { %11382 = vmatprep.subr.bf16.mxu1 %v12765_v36 }
0x1498   : > { %11383 = vmatpush3.bf16.msra.mxu1 %v12766_v33 }
0x1499   : > { %11384 = vmatprep.subr.bf16.mxu1 %v12767_v31 }
0x149b   : > { %11230 = vmatmul.mubr.msk.bf16.gmra.mrb[180].mxu1 %vm1491_vm3, %v12762_v55 }
0x149c   : > { %11385 = vmatpush3.bf16.msra.mxu1 %v12768_v21 }
0x149d   : > { %11386 = vmatprep.subr.bf16.mxu1 %v12769_v57 }
0x14a0   : > { %11387 = vmatpush3.bf16.msra.mxu1 %v12770_v1 }
0x14a1   : > { %11388 = vmatprep.subr.bf16.mxu1 %v12771_v3 }
0x14a4   : > { %11389 = vmatpush3.bf16.msra.mxu1 %v12772_v4 }
0x14a5   : > { %11390 = vmatprep.subr.bf16.mxu1 %v12773_v7 }
0x14a8   : > { %11391 = vmatpush3.bf16.msra.mxu1 %v12774_v8 }
0x14a9   : > { %11392 = vmatprep.subr.bf16.mxu1 %v12775_v9 }
0x14ac   : > { %11393 = vmatpush3.bf16.msra.mxu1 %v12776_v10 }
0x14ad   : > { %11394 = vmatprep.subr.bf16.mxu1 %v12777_v11 }
0x14b0   : > { %11395 = vmatpush3.bf16.msra.mxu1 %v12778_v12 }
0x1556   : > { %v11368_v13 = vpop.f32.mrb[168].mxu1 }
0x1557   : > { %v11369_v14 = vpop.f32.mrb[169].mxu1 }
0x1558   : > { %v11370_v16 = vadd.f32 %v11369_v14, %v11368_v13  ;;  %v11371_v59 = vpop.f32.mrb[170].mxu1 }
0x1559   : > { %v11372_v60 = vpop.f32.mrb[171].mxu1 }
0x155a   : > { %v9229_v62 = vadd.f32 %v11370_v16, %v15960_v32  ;;  %v11373_v17 = vadd.f32 %v11372_v60, %v11371_v59 }
0x155c   : > { %v9230_v19 = vadd.f32 %v11373_v17, %v15962_v34 }
0x155e   : > { %v11374_v2 = vpop.f32.mrb[172].mxu1 }
0x155f   : > { %v11375_v5 = vpop.f32.mrb[173].mxu1 }
0x1560   : > { %v11376_v6 = vadd.f32 %v11375_v5, %v11374_v2  ;;  %v11377_v15 = vpop.f32.mrb[174].mxu1 }
0x1561   : > { %v11378_v61 = vpop.f32.mrb[175].mxu1 }
0x1562   : > { %v9231_v22 = vadd.f32 %v11376_v6, %v15964_v40  ;;  %v11379_v23 = vadd.f32 %v11378_v61, %v11377_v15 }
0x1564   : > { %v9232_v25 = vadd.f32 %v11379_v23, %v15966_v42 }
0x1566   : > { %v9288_v18 = vpop.f32.mrb[176].mxu1 }
0x1567   : > { %v9290_v20 = vpop.f32.mrb[177].mxu1 }
0x1568   : > { %v9292_v27 = vpop.f32.mrb[178].mxu1 }
0x1569   : > { %v9307_v28 = vpack.c.bf16 %v9292_v27, %v9288_v18  ;;  %v9294_v30 = vpop.f32.mrb[179].mxu1 }
0x156a   : > { %v9308_v24 = vpack.c.bf16 %v9294_v30, %v9290_v20 }
0x156c   : > { %9472 = vmatprep.mubr.bf16.mxu1 %v9308_v24 }
0x156d   : > { %9473 = vmatmul.mubr.bf16.vlgmr.msra.gmra.mrb[184].mxu1 %v9307_v28 }
0x156e   : > { %v9298_v26 = vpop.f32.mrb[180].mxu1 }
0x156f   : > { %v9300_v32 = vpop.f32.mrb[181].mxu1 }
0x1570   : > { %v9302_v0 = vpop.f32.mrb[182].mxu1 }
0x1571   : > { %v9309_v34 = vpack.c.bf16 %v9302_v0, %v9298_v26  ;;  %v9304_v35 = vpop.f32.mrb[183].mxu1 }
0x1572   : > { %v9310_v29 = vpack.c.bf16 %v9304_v35, %v9300_v32 }
0x1574   : > { %9480 = vmatprep.mubr.bf16.mxu1 %v9310_v29 }
0x1575   : > { %9481 = vmatmul.mubr.bf16.gmra.mrb[188].mxu1 %v9309_v34 }
0x1640   : > { %v11396_v37 = vpop.f32.mrb[184].mxu1 }
0x1641   : > { %v11397_v38 = vpop.f32.mrb[185].mxu1 }
0x1642   : > { %v11398_v39 = vadd.f32 %v11397_v38, %v11396_v37  ;;  %v11399_v40 = vpop.f32.mrb[186].mxu1 }
0x1643   : > { %v11400_v42 = vpop.f32.mrb[187].mxu1 }
0x1644   : > { %v9489_v43 = vadd.f32 %v11398_v39, %v9229_v62  ;;  %v11401_v44 = vadd.f32 %v11400_v42, %v11399_v40 }
0x1646   : > { %v9500_v45 = vadd.f32 %v11279_v41, %v9489_v43  ;;  %v9490_v46 = vadd.f32 %v11401_v44, %v9230_v19 }
0x1648   : > { %12779 = vtanh.f32 %v9500_v45  ;;  %v9501_v47 = vadd.f32 %v11279_v41, %v9490_v46  ;;  %v11402_v48 = vpop.f32.mrb[188].mxu1 }
0x1649   : > { %v11403_v49 = vpop.f32.mrb[189].mxu1 }
0x164a   : > { %12781 = vtanh.f32 %v9501_v47  ;;  %v11404_v50 = vadd.f32 %v11403_v49, %v11402_v48  ;;  %v11405_v51 = vpop.f32.mrb[190].mxu1 }
0x164b   : > { %v11406_v52 = vpop.f32.mrb[191].mxu1 }
0x164c   : > { %v9491_v53 = vadd.f32 %v11404_v50, %v9231_v22  ;;  %v11407_v54 = vadd.f32 %v11406_v52, %v11405_v51 }
0x164e   : > { %v9502_v56 = vadd.f32 %v11279_v41, %v9491_v53  ;;  %v9492_v58 = vadd.f32 %v11407_v54, %v9232_v25 }
0x1650   : > { %12783 = vtanh.f32 %v9502_v56  ;;  %v9503_v63 = vadd.f32 %v11279_v41, %v9492_v58 }
0x1652   : > { %v12780_v36 = vpop.eup %12779  ;;  %12785 = vtanh.f32 %v9503_v63 }
0x1653   : > { %9508 = vst.msk [vmem:[%s764_s27] sm:$0xff] %vm963_vm2, %v12780_v36 }
0x1654   : > { %v12782_v33 = vpop.eup %12781 }
0x1655   : > { %9509 = vst.msk [vmem:[%s764_s27 + $0x8] sm:$0xff] %vm963_vm2, %v12782_v33 }
0x165a   : > { %v12784_v31 = vpop.eup %12783 }
0x165b   : > { %9510 = vst.msk [vmem:[%s764_s27 + $0x10] sm:$0xff] %vm963_vm2, %v12784_v31 }
0x165c   : > { %v12786_v55 = vpop.eup %12785 }
0x165d   : > { %9511 = vst.msk [vmem:[%s764_s27 + $0x18] sm:$0xff] %vm963_vm2, %v12786_v55 }
0x165e PF: > { %s35_s29 = sadd.s32 1, %s12793_s29  }
0x165f   : > { %p32_p4 = scmp.ge.s32.totalorder %s35_s29, 4  }
0x1661   :  { %34 = sbr.rel (!%p32_p4) target bundleno = 11 (0xb), region = 198 }

</bundles_post_ra>
